<compile_context>
chip_gen: v6e
topology: v6e:2x2x1
jax: 0.10.0
libtpu: 0.0.40
codegen_flags: <defaults>
</compile_context>

<pallas_src>
import functools

import jax
import jax.numpy as jnp
from jax.experimental import pallas as pl
from jax.experimental.pallas import tpu as pltpu

ESM_DIM = 1280
H1, H2, H3 = 640, 320, 128
PRE_DIM = 32
RO_H = 80          # n_layer == 2 readout hidden (logical)
RO_PAD = 128       # lane-padded readout hidden
LN_EPS = 1e-5
NEG_SLOPE = 0.01   # PyTorch LeakyReLU default


def _leaky_relu(x):
    return jnp.where(x > 0, x, NEG_SLOPE * x)


def _round_up(x, m):
    return ((x + m - 1) // m) * m


# ----------------------------------------------------------------------------
# Chip-aware configuration (perf only; every path is numerically valid).
# ----------------------------------------------------------------------------
def _chip_config():
    kind = ""
    try:
        kind = jax.devices()[0].device_kind.lower()
    except Exception:
        pass
    is_v7 = "v7" in kind
    is_v6 = "v6" in kind
    return dict(
        two_tc=is_v7,                      # v7x: 2 TensorCores -> force >=2 grid steps
        bf16_epilogue=is_v6 or is_v7,      # bf16 VPU available
        tile_b=256 if is_v7 else 512,      # v7x has 64 MiB VMEM, others 128 MiB
        vmem_limit=(32 << 20) if is_v7 else (40 << 20),
    )


# ----------------------------------------------------------------------------
# Kernel
# ----------------------------------------------------------------------------
def _make_kernel(bf16_epilogue):
    def kernel(esm_ref, pre_ref,
               w1_ref, b1_ref, w2_ref, b2_ref,
               w3ra_ref, rb_ref, rb1_ref, r2_ref, rb2_ref,
               out_ref):
        # ---- LayerNorm(1280): one-pass stats in f32 (input streamed bf16) ----
        x = esm_ref[...].astype(jnp.float32)
        mu = jnp.mean(x, axis=-1, keepdims=True)
        msq = jnp.mean(x * x, axis=-1, keepdims=True)
        var = jnp.maximum(msq - mu * mu, 0.0)          # guard cancellation
        xn = (x - mu) * jax.lax.rsqrt(var + LN_EPS)    # affine folded into w1/b1

        def epilogue(acc_f32, b_ref):
            if bf16_epilogue:
                # bf16 VPU path (v6e/v7x): half the VALU vregs for bias+leaky.
                return _leaky_relu(acc_f32.astype(jnp.bfloat16)
                                   + b_ref[...].astype(jnp.bfloat16))
            return _leaky_relu(acc_f32 + b_ref[...]).astype(jnp.bfloat16)

        # ---- layer 1: 1280 -> 640 (LN affine pre-folded into weights) ----
        a1 = jnp.dot(xn.astype(jnp.bfloat16), w1_ref[...],
                     preferred_element_type=jnp.float32)
        h1 = epilogue(a1, b1_ref)

        # ---- layer 2: 640 -> 320 ----
        a2 = jnp.dot(h1, w2_ref[...], preferred_element_type=jnp.float32)
        h2 = epilogue(a2, b2_ref)

        # ---- fused layer 3 + read_out[0]: h2 @ (w3@ra) + pre @ rb + rb1' ----
        z = (jnp.dot(h2, w3ra_ref[...], preferred_element_type=jnp.float32)
             + jnp.dot(pre_ref[...].astype(jnp.bfloat16), rb_ref[...],
                       preferred_element_type=jnp.float32)
             + rb1_ref[...])
        z = _leaky_relu(z)                              # f32; padded lanes stay 0

        # ---- read_out[2]: 80 -> 1 as VPU multiply + lane reduction ----
        y = jnp.sum(z * r2_ref[...], axis=-1, keepdims=True) + rb2_ref[...]
        out_ref[...] = y.astype(out_ref.dtype)

    return kernel


# ----------------------------------------------------------------------------
# One-time weight preparation (hoisted out of the forward pass).
# ----------------------------------------------------------------------------
def prepare_params(params):
    (lnw, lnb, w1, b1, w2, b2, w3, b3, ra, rb, rb1, r2, rb2) = params
    f32 = jnp.float32
    hp = lambda a, b: jnp.dot(a, b, precision=jax.lax.Precision.HIGHEST)

    lnw = lnw.reshape(1, ESM_DIM).astype(f32)
    lnb = lnb.reshape(1, ESM_DIM).astype(f32)
    pad_c = RO_PAD - RO_H
    ra_p = jnp.pad(ra.astype(f32), ((0, 0), (0, pad_c)))            # (128,128)
    rb_p = jnp.pad(rb.astype(f32), ((0, 0), (0, pad_c)))            # (32,128)
    rb1_p = jnp.pad(rb1.reshape(1, RO_H).astype(f32), ((0, 0), (0, pad_c)))
    r2_row = jnp.pad(r2.reshape(1, RO_H).astype(f32), ((0, 0), (0, pad_c)))

    # LN affine folded into layer 1 (exact algebra in f32, then bf16 cast).
    w1p = (lnw.reshape(ESM_DIM, 1) * w1.astype(f32)).astype(jnp.bfloat16)
    b1p = hp(lnb, w1.astype(f32)) + b1.reshape(1, H1).astype(f32)
    w2b = w2.astype(jnp.bfloat16)
    b2p = b2.reshape(1, H2).astype(f32)
    # w3 fused with the readout h-part (no nonlinearity in between).
    w3ra = hp(w3.astype(f32), ra_p).astype(jnp.bfloat16)            # (320,128)
    rb_b = rb_p.astype(jnp.bfloat16)
    rb1p = rb1_p + hp(b3.reshape(1, H3).astype(f32), ra_p)
    rb2p = rb2.reshape(1, 1).astype(f32)
    return (w1p, b1p, w2b, b2p, w3ra, rb_b, rb1p, r2_row, rb2p)


# ----------------------------------------------------------------------------
# Forward pass
# ----------------------------------------------------------------------------
def downstream_forward(pretrained_embedding, esm2_embedding, prepared_params,
                       *, tile_b=None, config=None):
    cfg = dict(_chip_config()) if config is None else dict(config)
    if tile_b is not None:
        cfg["tile_b"] = tile_b

    B = esm2_embedding.shape[0]
    B8 = _round_up(max(B, 1), 8)

    # Stream the wide embedding in bf16 (halves the dominant DMA); pad only to
    # a multiple of 8 (<= 7 wasted rows), the grid handles any ragged tail.
    esm = esm2_embedding.astype(jnp.bfloat16)
    pre = pretrained_embedding.astype(jnp.float32)
    if B8 != B:
        esm = jnp.pad(esm, ((0, B8 - B), (0, 0)))
        pre = jnp.pad(pre, ((0, B8 - B), (0, 0)))

    # Batch tile: as big as the batch allows (fewer, fatter grid steps); on a
    # 2-TC chip make sure there are >= 2 steps so both cores get work.
    tb = max(8, min(_round_up(cfg["tile_b"], 16), B8))
    if cfg["two_tc"] and B8 >= 32 and pl.cdiv(B8, tb) < 2:
        tb = max(16, _round_up(pl.cdiv(B8, 2), 16))
    grid = (pl.cdiv(B8, tb),)

    (w1p, b1p, w2b, b2p, w3ra, rbb, rb1p, r2row, rb2p) = prepared_params
    kernel = _make_kernel(cfg["bf16_epilogue"])

    def build_and_call(single_buffer_weights):
        def const_spec(shape):
            idx = lambda i, _n=len(shape): (0,) * _n
            if single_buffer_weights and hasattr(pl, "Buffered"):
                try:
                    return pl.BlockSpec(shape, idx, pipeline_mode=pl.Buffered(1))
                except TypeError:
                    pass
            return pl.BlockSpec(shape, idx)

        grid_spec = pltpu.PrefetchScalarGridSpec(
            num_scalar_prefetch=0,
            grid=grid,
            in_specs=[
                pl.BlockSpec((tb, ESM_DIM), lambda i: (i, 0)),   # esm (bf16)
                pl.BlockSpec((tb, PRE_DIM), lambda i: (i, 0)),   # pretrained
                const_spec((ESM_DIM, H1)),                       # w1' (LN folded)
                const_spec((1, H1)),                             # b1'
                const_spec((H1, H2)),                            # w2
                const_spec((1, H2)),                             # b2
                const_spec((H2, RO_PAD)),                        # w3 @ ra_pad
                const_spec((PRE_DIM, RO_PAD)),                   # rb_pad
                const_spec((1, RO_PAD)),                         # rb1' (b3 folded)
                const_spec((1, RO_PAD)),                         # r2 as a row
                const_spec((1, 1)),                              # rb2
            ],
            out_specs=pl.BlockSpec((tb, 1), lambda i: (i, 0)),
        )
        return pl.pallas_call(
            kernel,
            out_shape=jax.ShapeDtypeStruct((B8, 1), jnp.float32),
            grid_spec=grid_spec,
            compiler_params=pltpu.CompilerParams(
                dimension_semantics=("parallel",),
                vmem_limit_bytes=cfg["vmem_limit"],
            ),
        )(esm, pre, w1p, b1p, w2b, b2p, w3ra, rbb, rb1p, r2row, rb2p)

    try:
        out = build_and_call(single_buffer_weights=True)
    except Exception:
        # Fallback if this JAX build rejects pipeline_mode=pl.Buffered(1).
        out = build_and_call(single_buffer_weights=False)

    return out[:B] if B8 != B else out


# ----------------------------------------------------------------------------
# Parameter init (PyTorch-like shapes, stored (in, out))
# ----------------------------------------------------------------------------
def init_params(key):
    ks = jax.random.split(key, 16)
    scale = lambda fan_in: 1.0 / jnp.sqrt(jnp.float32(fan_in))
    lnw = jnp.ones((1, ESM_DIM), jnp.float32)
    lnb = jnp.zeros((1, ESM_DIM), jnp.float32)
    w1 = jax.random.normal(ks[0], (ESM_DIM, H1), jnp.float32) * scale(ESM_DIM)
    b1 = jax.random.normal(ks[1], (1, H1), jnp.float32) * 0.01
    w2 = jax.random.normal(ks[2], (H1, H2), jnp.float32) * scale(H1)
    b2 = jax.random.normal(ks[3], (1, H2), jnp.float32) * 0.01
    w3 = jax.random.normal(ks[4], (H2, H3), jnp.float32) * scale(H2)
    b3 = jax.random.normal(ks[5], (1, H3), jnp.float32) * 0.01
    ra = jax.random.normal(ks[6], (H3, RO_H), jnp.float32) * scale(H3 + PRE_DIM)
    rb = jax.random.normal(ks[7], (PRE_DIM, RO_H), jnp.float32) * scale(H3 + PRE_DIM)
    rb1 = jax.random.normal(ks[8], (1, RO_H), jnp.float32) * 0.01
    r2 = jax.random.normal(ks[9], (RO_H, 1), jnp.float32) * scale(RO_H)
    rb2 = jax.random.normal(ks[10], (1, 1), jnp.float32) * 0.01
    return (lnw, lnb, w1, b1, w2, b2, w3, b3, ra, rb, rb1, r2, rb2)


# ----------------------------------------------------------------------------
# References
# ----------------------------------------------------------------------------
def reference_forward_f32(pretrained_embedding, esm2_embedding, params):
    """Pure-f32 reference following the PyTorch module exactly (semantic spec)."""
    (lnw, lnb, w1, b1, w2, b2, w3, b3, ra, rb, rb1, r2, rb2) = params
    dot = lambda a, b: jnp.dot(a, b, precision=jax.lax.Precision.HIGHEST)
    x = esm2_embedding.astype(jnp.float32)
    mu = jnp.mean(x, -1, keepdims=True)
    var = jnp.mean((x - mu) ** 2, -1, keepdims=True)
    x = (x - mu) / jnp.sqrt(var + LN_EPS) * lnw + lnb
    x = _leaky_relu(dot(x, w1) + b1)
    x = _leaky_relu(dot(x, w2) + b2)
    x = dot(x, w3) + b3
    cat = jnp.concatenate([x, pretrained_embedding.astype(jnp.float32)], axis=-1)
    wcat = jnp.concatenate([ra, rb], axis=0)
    z = _leaky_relu(dot(cat, wcat) + rb1)
    return dot(z, r2) + rb2


def emulated_reference(pretrained_embedding, esm2_embedding, prepared_params,
                       bf16_epilogue):
    """Mirrors the kernel's exact quantization points (bf16 stream, fused
    weights, bf16/f32 epilogue) so it matches the kernel tightly."""
    (w1p, b1p, w2b, b2p, w3ra, rbb, rb1p, r2row, rb2p) = prepared_params
    f32 = jnp.float32
    dot = lambda a, b: jnp.dot(a.astype(f32), b.astype(f32),
                               precision=jax.lax.Precision.HIGHEST)

    x = esm2_embedding.astype(jnp.bfloat16).astype(f32)
    mu = jnp.mean(x, -1, keepdims=True)
    msq = jnp.mean(x * x, -1, keepdims=True)
    var = jnp.maximum(msq - mu * mu, 0.0)
    xn = (x - mu) * jax.lax.rsqrt(var + LN_EPS)

    def epilogue(acc, b):
        if bf16_epilogue:
            return _leaky_relu(acc.astype(jnp.bfloat16) + b.astype(jnp.bfloat16))
        return _leaky_relu(acc + b).astype(jnp.bfloat16)

    h1 = epilogue(dot(xn.astype(jnp.bfloat16), w1p), b1p)
    h2 = epilogue(dot(h1, w2b), b2p)
    p = pretrained_embedding.astype(f32).astype(jnp.bfloat16)
    z = _leaky_relu(dot(h2, w3ra) + dot(p, rbb) + rb1p)
    return jnp.sum(z * r2row, -1, keepdims=True) + rb2p


# ----------------------------------------------------------------------------
if __name__ == "__main__":
    key = jax.random.PRNGKey(0)
    k_p, k_e, k_w = jax.random.split(key, 3)
    params = init_params(k_w)
    prepared = prepare_params(params)           # hoisted once, reused per call
    cfg = _chip_config()

    def check(B, fold, tile_b=None):
        kp = jax.random.fold_in(k_p, fold)
        ke = jax.random.fold_in(k_e, fold)
        pre = jax.random.normal(kp, (B, PRE_DIM), jnp.float32)
        esm = jax.random.normal(ke, (B, ESM_DIM), jnp.float32)
        out = jax.block_until_ready(
            downstream_forward(pre, esm, prepared, tile_b=tile_b, config=cfg))
        assert out.shape == (B, 1), out.shape
        ref_e = emulated_reference(pre, esm, prepared, cfg["bf16_epilogue"])
        ref_f = reference_forward_f32(pre, esm, params)
        assert jnp.allclose(out, ref_e, atol=5e-3, rtol=5e-3), (
            "emulated mismatch", float(jnp.max(jnp.abs(out - ref_e))))
        assert jnp.allclose(out, ref_f, atol=1e-1, rtol=1e-1), (
            "f32 semantic mismatch", float(jnp.max(jnp.abs(out - ref_f))))

    # 1) tiny batch: single grid step, tile == batch.
    check(8, fold=0)
    # 2) batch not a multiple of 8: pad-to-8 path (+ 2-TC split on v7x).
    check(20, fold=1)
    # 3) multi-step grid with a ragged last block (forced small tile).
    check(300, fold=2, tile_b=128)

    print("KERNEL_OK")
</pallas_src>

<mosaic_0001>
module attributes {stable_mosaic.version = 11 : i64} {
  func.func @kernel(%arg0: i32, %arg1: memref<8x1280xbf16, #tpu.memory_space<vmem>>, %arg2: memref<8x32xf32, #tpu.memory_space<vmem>>, %arg3: memref<1280x640xbf16, #tpu.memory_space<vmem>>, %arg4: memref<1x640xf32, #tpu.memory_space<vmem>>, %arg5: memref<640x320xbf16, #tpu.memory_space<vmem>>, %arg6: memref<1x320xf32, #tpu.memory_space<vmem>>, %arg7: memref<320x128xbf16, #tpu.memory_space<vmem>>, %arg8: memref<32x128xbf16, #tpu.memory_space<vmem>>, %arg9: memref<1x128xf32, #tpu.memory_space<vmem>>, %arg10: memref<1x128xf32, #tpu.memory_space<vmem>>, %arg11: memref<1x1xf32, #tpu.memory_space<vmem>>, %arg12: memref<8x1xf32, #tpu.memory_space<vmem>>) attributes {dimension_semantics = [#tpu.dimension_semantics<parallel>], iteration_bounds = array<i64: 1>, scalar_prefetch = 0 : i64, scratch_operands = 0 : i64, tpu.core_type = #tpu.core_type<tc>, window_params = [{transform_indices = @transform_0, window_bounds = array<i64: 8, 1280>}, {transform_indices = @transform_1, window_bounds = array<i64: 8, 32>}, {pipeline_mode = #tpu.pipeline_mode<synchronous>, transform_indices = @transform_2, window_bounds = array<i64: 1280, 640>}, {pipeline_mode = #tpu.pipeline_mode<synchronous>, transform_indices = @transform_3, window_bounds = array<i64: 1, 640>}, {pipeline_mode = #tpu.pipeline_mode<synchronous>, transform_indices = @transform_4, window_bounds = array<i64: 640, 320>}, {pipeline_mode = #tpu.pipeline_mode<synchronous>, transform_indices = @transform_5, window_bounds = array<i64: 1, 320>}, {pipeline_mode = #tpu.pipeline_mode<synchronous>, transform_indices = @transform_6, window_bounds = array<i64: 320, 128>}, {pipeline_mode = #tpu.pipeline_mode<synchronous>, transform_indices = @transform_7, window_bounds = array<i64: 32, 128>}, {pipeline_mode = #tpu.pipeline_mode<synchronous>, transform_indices = @transform_8, window_bounds = array<i64: 1, 128>}, {pipeline_mode = #tpu.pipeline_mode<synchronous>, transform_indices = @transform_9, window_bounds = array<i64: 1, 128>}, {pipeline_mode = #tpu.pipeline_mode<synchronous>, transform_indices = @transform_10, window_bounds = array<i64: 1, 1>}, {transform_indices = @transform_11, window_bounds = array<i64: 8, 1>}]} {
    %c0 = arith.constant 0 : index
    %c0_0 = arith.constant 0 : index
    %0 = vector.load %arg1[%c0, %c0_0] : memref<8x1280xbf16, #tpu.memory_space<vmem>>, vector<8x1280xbf16>
    %1 = arith.extf %0 : vector<8x1280xbf16> to vector<8x1280xf32>
    %cst = arith.constant dense<0.000000e+00> : vector<8xf32>
    %2 = vector.multi_reduction <add>, %1, %cst [1] : vector<8x1280xf32> to vector<8xf32>
    %3 = vector.shape_cast %2 : vector<8xf32> to vector<8x1xf32>
    %cst_1 = arith.constant 1.280000e+03 : f32
    %4 = vector.broadcast %cst_1 : f32 to vector<8x1xf32>
    %5 = arith.divf %3, %4 : vector<8x1xf32>
    %6 = arith.mulf %1, %1 : vector<8x1280xf32>
    %cst_2 = arith.constant dense<0.000000e+00> : vector<8xf32>
    %7 = vector.multi_reduction <add>, %6, %cst_2 [1] : vector<8x1280xf32> to vector<8xf32>
    %8 = vector.shape_cast %7 : vector<8xf32> to vector<8x1xf32>
    %cst_3 = arith.constant 1.280000e+03 : f32
    %9 = vector.broadcast %cst_3 : f32 to vector<8x1xf32>
    %10 = arith.divf %8, %9 : vector<8x1xf32>
    %11 = arith.mulf %5, %5 : vector<8x1xf32>
    %12 = arith.subf %10, %11 : vector<8x1xf32>
    %cst_4 = arith.constant 0.000000e+00 : f32
    %13 = vector.broadcast %cst_4 : f32 to vector<8x1xf32>
    %14 = arith.maximumf %12, %13 : vector<8x1xf32>
    %15 = vector.broadcast %5 : vector<8x1xf32> to vector<8x1280xf32>
    %16 = arith.subf %1, %15 : vector<8x1280xf32>
    %cst_5 = arith.constant 9.99999974E-6 : f32
    %17 = vector.broadcast %cst_5 : f32 to vector<8x1xf32>
    %18 = arith.addf %14, %17 : vector<8x1xf32>
    %19 = math.rsqrt %18 : vector<8x1xf32>
    %20 = vector.broadcast %19 : vector<8x1xf32> to vector<8x1280xf32>
    %21 = arith.mulf %16, %20 : vector<8x1280xf32>
    %22 = arith.truncf %21 : vector<8x1280xf32> to vector<8x1280xbf16>
    %c0_6 = arith.constant 0 : index
    %c0_7 = arith.constant 0 : index
    %23 = vector.load %arg3[%c0_6, %c0_7] : memref<1280x640xbf16, #tpu.memory_space<vmem>>, vector<1280x640xbf16>
    %cst_8 = arith.constant dense<0.000000e+00> : vector<8x640xf32>
    %24 = tpu.matmul %22, %23, %cst_8 {dimension_numbers = #tpu.dot_dimension_numbers<[1], [0], [0], [1], [0, 0, 1, 1], [], []>} : vector<8x1280xbf16>, vector<1280x640xbf16>, vector<8x640xf32> -> vector<8x640xf32>
    %c0_9 = arith.constant 0 : index
    %c0_10 = arith.constant 0 : index
    %25 = vector.load %arg4[%c0_9, %c0_10] : memref<1x640xf32, #tpu.memory_space<vmem>>, vector<1x640xf32>
    %26 = vector.broadcast %25 : vector<1x640xf32> to vector<8x640xf32>
    %27 = arith.addf %24, %26 : vector<8x640xf32>
    %cst_11 = arith.constant 0.000000e+00 : f32
    %28 = vector.broadcast %cst_11 : f32 to vector<8x640xf32>
    %29 = arith.cmpf ogt, %27, %28 : vector<8x640xf32>
    %cst_12 = arith.constant 0.00999999977 : f32
    %30 = vector.broadcast %cst_12 : f32 to vector<8x640xf32>
    %31 = arith.mulf %30, %27 : vector<8x640xf32>
    %32 = arith.select %29, %27, %31 : vector<8x640xi1>, vector<8x640xf32>
    %33 = arith.truncf %32 : vector<8x640xf32> to vector<8x640xbf16>
    %c0_13 = arith.constant 0 : index
    %c0_14 = arith.constant 0 : index
    %34 = vector.load %arg5[%c0_13, %c0_14] : memref<640x320xbf16, #tpu.memory_space<vmem>>, vector<640x320xbf16>
    %cst_15 = arith.constant dense<0.000000e+00> : vector<8x320xf32>
    %35 = tpu.matmul %33, %34, %cst_15 {dimension_numbers = #tpu.dot_dimension_numbers<[1], [0], [0], [1], [0, 0, 1, 1], [], []>} : vector<8x640xbf16>, vector<640x320xbf16>, vector<8x320xf32> -> vector<8x320xf32>
    %c0_16 = arith.constant 0 : index
    %c0_17 = arith.constant 0 : index
    %36 = vector.load %arg6[%c0_16, %c0_17] : memref<1x320xf32, #tpu.memory_space<vmem>>, vector<1x320xf32>
    %37 = vector.broadcast %36 : vector<1x320xf32> to vector<8x320xf32>
    %38 = arith.addf %35, %37 : vector<8x320xf32>
    %cst_18 = arith.constant 0.000000e+00 : f32
    %39 = vector.broadcast %cst_18 : f32 to vector<8x320xf32>
    %40 = arith.cmpf ogt, %38, %39 : vector<8x320xf32>
    %cst_19 = arith.constant 0.00999999977 : f32
    %41 = vector.broadcast %cst_19 : f32 to vector<8x320xf32>
    %42 = arith.mulf %41, %38 : vector<8x320xf32>
    %43 = arith.select %40, %38, %42 : vector<8x320xi1>, vector<8x320xf32>
    %44 = arith.truncf %43 : vector<8x320xf32> to vector<8x320xbf16>
    %c0_20 = arith.constant 0 : index
    %c0_21 = arith.constant 0 : index
    %45 = vector.load %arg7[%c0_20, %c0_21] : memref<320x128xbf16, #tpu.memory_space<vmem>>, vector<320x128xbf16>
    %cst_22 = arith.constant dense<0.000000e+00> : vector<8x128xf32>
    %46 = tpu.matmul %44, %45, %cst_22 {dimension_numbers = #tpu.dot_dimension_numbers<[1], [0], [0], [1], [0, 0, 1, 1], [], []>} : vector<8x320xbf16>, vector<320x128xbf16>, vector<8x128xf32> -> vector<8x128xf32>
    %c0_23 = arith.constant 0 : index
    %c0_24 = arith.constant 0 : index
    %47 = vector.load %arg2[%c0_23, %c0_24] : memref<8x32xf32, #tpu.memory_space<vmem>>, vector<8x32xf32>
    %48 = arith.truncf %47 : vector<8x32xf32> to vector<8x32xbf16>
    %c0_25 = arith.constant 0 : index
    %c0_26 = arith.constant 0 : index
    %49 = vector.load %arg8[%c0_25, %c0_26] : memref<32x128xbf16, #tpu.memory_space<vmem>>, vector<32x128xbf16>
    %cst_27 = arith.constant dense<0.000000e+00> : vector<8x128xf32>
    %50 = tpu.matmul %48, %49, %cst_27 {dimension_numbers = #tpu.dot_dimension_numbers<[1], [0], [0], [1], [0, 0, 1, 1], [], []>} : vector<8x32xbf16>, vector<32x128xbf16>, vector<8x128xf32> -> vector<8x128xf32>
    %51 = arith.addf %46, %50 : vector<8x128xf32>
    %c0_28 = arith.constant 0 : index
    %c0_29 = arith.constant 0 : index
    %52 = vector.load %arg9[%c0_28, %c0_29] : memref<1x128xf32, #tpu.memory_space<vmem>>, vector<1x128xf32>
    %53 = vector.broadcast %52 : vector<1x128xf32> to vector<8x128xf32>
    %54 = arith.addf %51, %53 : vector<8x128xf32>
    %cst_30 = arith.constant 0.000000e+00 : f32
    %55 = vector.broadcast %cst_30 : f32 to vector<8x128xf32>
    %56 = arith.cmpf ogt, %54, %55 : vector<8x128xf32>
    %cst_31 = arith.constant 0.00999999977 : f32
    %57 = vector.broadcast %cst_31 : f32 to vector<8x128xf32>
    %58 = arith.mulf %57, %54 : vector<8x128xf32>
    %59 = arith.select %56, %54, %58 : vector<8x128xi1>, vector<8x128xf32>
    %c0_32 = arith.constant 0 : index
    %c0_33 = arith.constant 0 : index
    %60 = vector.load %arg10[%c0_32, %c0_33] : memref<1x128xf32, #tpu.memory_space<vmem>>, vector<1x128xf32>
    %61 = vector.broadcast %60 : vector<1x128xf32> to vector<8x128xf32>
    %62 = arith.mulf %59, %61 : vector<8x128xf32>
    %cst_34 = arith.constant dense<0.000000e+00> : vector<8xf32>
    %63 = vector.multi_reduction <add>, %62, %cst_34 [1] : vector<8x128xf32> to vector<8xf32>
    %64 = vector.shape_cast %63 : vector<8xf32> to vector<8x1xf32>
    %c0_35 = arith.constant 0 : index
    %c0_36 = arith.constant 0 : index
    %65 = vector.load %arg11[%c0_35, %c0_36] : memref<1x1xf32, #tpu.memory_space<vmem>>, vector<1x1xf32>
    %66 = vector.broadcast %65 : vector<1x1xf32> to vector<8x1xf32>
    %67 = arith.addf %64, %66 : vector<8x1xf32>
    %c0_37 = arith.constant 0 : index
    %c0_38 = arith.constant 0 : index
    %68 = vector.load %arg12[%c0_37, %c0_38] : memref<8x1xf32, #tpu.memory_space<vmem>>, vector<8x1xf32>
    tpu.vector_store %arg12[%c0_37, %c0_38], %67 {strides = array<i32>} : memref<8x1xf32, #tpu.memory_space<vmem>>, vector<8x1xf32>,
    return
  }
  func.func @transform_0(%arg0: i32) -> (i32, i32) {
    %c0_i32 = arith.constant 0 : i32
    %c0_i32_0 = arith.constant 0 : i32
    return %arg0, %c0_i32 : i32, i32
  }
  func.func @transform_1(%arg0: i32) -> (i32, i32) {
    %c0_i32 = arith.constant 0 : i32
    %c0_i32_0 = arith.constant 0 : i32
    return %arg0, %c0_i32 : i32, i32
  }
  func.func @transform_2(%arg0: i32) -> (i32, i32) {
    %c0_i32 = arith.constant 0 : i32
    %c0_i32_0 = arith.constant 0 : i32
    %c0_i32_1 = arith.constant 0 : i32
    return %c0_i32, %c0_i32_0 : i32, i32
  }
  func.func @transform_3(%arg0: i32) -> (i32, i32) {
    %c0_i32 = arith.constant 0 : i32
    %c0_i32_0 = arith.constant 0 : i32
    %c0_i32_1 = arith.constant 0 : i32
    return %c0_i32, %c0_i32_0 : i32, i32
  }
  func.func @transform_4(%arg0: i32) -> (i32, i32) {
    %c0_i32 = arith.constant 0 : i32
    %c0_i32_0 = arith.constant 0 : i32
    %c0_i32_1 = arith.constant 0 : i32
    return %c0_i32, %c0_i32_0 : i32, i32
  }
  func.func @transform_5(%arg0: i32) -> (i32, i32) {
    %c0_i32 = arith.constant 0 : i32
    %c0_i32_0 = arith.constant 0 : i32
    %c0_i32_1 = arith.constant 0 : i32
    return %c0_i32, %c0_i32_0 : i32, i32
  }
  func.func @transform_6(%arg0: i32) -> (i32, i32) {
    %c0_i32 = arith.constant 0 : i32
    %c0_i32_0 = arith.constant 0 : i32
    %c0_i32_1 = arith.constant 0 : i32
    return %c0_i32, %c0_i32_0 : i32, i32
  }
  func.func @transform_7(%arg0: i32) -> (i32, i32) {
    %c0_i32 = arith.constant 0 : i32
    %c0_i32_0 = arith.constant 0 : i32
    %c0_i32_1 = arith.constant 0 : i32
    return %c0_i32, %c0_i32_0 : i32, i32
  }
  func.func @transform_8(%arg0: i32) -> (i32, i32) {
    %c0_i32 = arith.constant 0 : i32
    %c0_i32_0 = arith.constant 0 : i32
    %c0_i32_1 = arith.constant 0 : i32
    return %c0_i32, %c0_i32_0 : i32, i32
  }
  func.func @transform_9(%arg0: i32) -> (i32, i32) {
    %c0_i32 = arith.constant 0 : i32
    %c0_i32_0 = arith.constant 0 : i32
    %c0_i32_1 = arith.constant 0 : i32
    return %c0_i32, %c0_i32_0 : i32, i32
  }
  func.func @transform_10(%arg0: i32) -> (i32, i32) {
    %c0_i32 = arith.constant 0 : i32
    %c0_i32_0 = arith.constant 0 : i32
    %c0_i32_1 = arith.constant 0 : i32
    return %c0_i32, %c0_i32_0 : i32, i32
  }
  func.func @transform_11(%arg0: i32) -> (i32, i32) {
    %c0_i32 = arith.constant 0 : i32
    %c0_i32_0 = arith.constant 0 : i32
    return %arg0, %c0_i32 : i32, i32
  }
}

module attributes {stable_mosaic.version = 11 : i64} {
  func.func @kernel(%arg0: i32, %arg1: memref<8x1280xbf16, #tpu.memory_space<vmem>>, %arg2: memref<8x32xf32, #tpu.memory_space<vmem>>, %arg3: memref<1280x640xbf16, #tpu.memory_space<vmem>>, %arg4: memref<1x640xf32, #tpu.memory_space<vmem>>, %arg5: memref<640x320xbf16, #tpu.memory_space<vmem>>, %arg6: memref<1x320xf32, #tpu.memory_space<vmem>>, %arg7: memref<320x128xbf16, #tpu.memory_space<vmem>>, %arg8: memref<32x128xbf16, #tpu.memory_space<vmem>>, %arg9: memref<1x128xf32, #tpu.memory_space<vmem>>, %arg10: memref<1x128xf32, #tpu.memory_space<vmem>>, %arg11: memref<1x1xf32, #tpu.memory_space<vmem>>, %arg12: memref<8x1xf32, #tpu.memory_space<vmem>>) attributes {dimension_semantics = [#tpu.dimension_semantics<parallel>], iteration_bounds = array<i64: 1>, scalar_prefetch = 0 : i64, scratch_operands = 0 : i64, tpu.core_type = #tpu.core_type<tc>, window_params = [{transform_indices = @transform_0, window_bounds = array<i64: 8, 1280>}, {transform_indices = @transform_1, window_bounds = array<i64: 8, 32>}, {pipeline_mode = #tpu.pipeline_mode<synchronous>, transform_indices = @transform_2, window_bounds = array<i64: 1280, 640>}, {pipeline_mode = #tpu.pipeline_mode<synchronous>, transform_indices = @transform_3, window_bounds = array<i64: 1, 640>}, {pipeline_mode = #tpu.pipeline_mode<synchronous>, transform_indices = @transform_4, window_bounds = array<i64: 640, 320>}, {pipeline_mode = #tpu.pipeline_mode<synchronous>, transform_indices = @transform_5, window_bounds = array<i64: 1, 320>}, {pipeline_mode = #tpu.pipeline_mode<synchronous>, transform_indices = @transform_6, window_bounds = array<i64: 320, 128>}, {pipeline_mode = #tpu.pipeline_mode<synchronous>, transform_indices = @transform_7, window_bounds = array<i64: 32, 128>}, {pipeline_mode = #tpu.pipeline_mode<synchronous>, transform_indices = @transform_8, window_bounds = array<i64: 1, 128>}, {pipeline_mode = #tpu.pipeline_mode<synchronous>, transform_indices = @transform_9, window_bounds = array<i64: 1, 128>}, {pipeline_mode = #tpu.pipeline_mode<synchronous>, transform_indices = @transform_10, window_bounds = array<i64: 1, 1>}, {transform_indices = @transform_11, window_bounds = array<i64: 8, 1>}]} {
    %c0 = arith.constant 0 : index
    %c0_0 = arith.constant 0 : index
    %0 = vector.load %arg1[%c0, %c0_0] : memref<8x1280xbf16, #tpu.memory_space<vmem>>, vector<8x1280xbf16>
    %1 = arith.extf %0 : vector<8x1280xbf16> to vector<8x1280xf32>
    %cst = arith.constant dense<0.000000e+00> : vector<8xf32>
    %2 = vector.multi_reduction <add>, %1, %cst [1] : vector<8x1280xf32> to vector<8xf32>
    %3 = vector.shape_cast %2 : vector<8xf32> to vector<8x1xf32>
    %cst_1 = arith.constant 1.280000e+03 : f32
    %4 = vector.broadcast %cst_1 : f32 to vector<8x1xf32>
    %5 = arith.divf %3, %4 : vector<8x1xf32>
    %6 = arith.mulf %1, %1 : vector<8x1280xf32>
    %cst_2 = arith.constant dense<0.000000e+00> : vector<8xf32>
    %7 = vector.multi_reduction <add>, %6, %cst_2 [1] : vector<8x1280xf32> to vector<8xf32>
    %8 = vector.shape_cast %7 : vector<8xf32> to vector<8x1xf32>
    %cst_3 = arith.constant 1.280000e+03 : f32
    %9 = vector.broadcast %cst_3 : f32 to vector<8x1xf32>
    %10 = arith.divf %8, %9 : vector<8x1xf32>
    %11 = arith.mulf %5, %5 : vector<8x1xf32>
    %12 = arith.subf %10, %11 : vector<8x1xf32>
    %cst_4 = arith.constant 0.000000e+00 : f32
    %13 = vector.broadcast %cst_4 : f32 to vector<8x1xf32>
    %14 = arith.maximumf %12, %13 : vector<8x1xf32>
    %15 = vector.broadcast %5 : vector<8x1xf32> to vector<8x1280xf32>
    %16 = arith.subf %1, %15 : vector<8x1280xf32>
    %cst_5 = arith.constant 9.99999974E-6 : f32
    %17 = vector.broadcast %cst_5 : f32 to vector<8x1xf32>
    %18 = arith.addf %14, %17 : vector<8x1xf32>
    %19 = math.rsqrt %18 : vector<8x1xf32>
    %20 = vector.broadcast %19 : vector<8x1xf32> to vector<8x1280xf32>
    %21 = arith.mulf %16, %20 : vector<8x1280xf32>
    %22 = arith.truncf %21 : vector<8x1280xf32> to vector<8x1280xbf16>
    %c0_6 = arith.constant 0 : index
    %c0_7 = arith.constant 0 : index
    %23 = vector.load %arg3[%c0_6, %c0_7] : memref<1280x640xbf16, #tpu.memory_space<vmem>>, vector<1280x640xbf16>
    %cst_8 = arith.constant dense<0.000000e+00> : vector<8x640xf32>
    %24 = tpu.matmul %22, %23, %cst_8 {dimension_numbers = #tpu.dot_dimension_numbers<[1], [0], [0], [1], [0, 0, 1, 1], [], []>} : vector<8x1280xbf16>, vector<1280x640xbf16>, vector<8x640xf32> -> vector<8x640xf32>
    %c0_9 = arith.constant 0 : index
    %c0_10 = arith.constant 0 : index
    %25 = vector.load %arg4[%c0_9, %c0_10] : memref<1x640xf32, #tpu.memory_space<vmem>>, vector<1x640xf32>
    %26 = vector.broadcast %25 : vector<1x640xf32> to vector<8x640xf32>
    %27 = arith.addf %24, %26 : vector<8x640xf32>
    %cst_11 = arith.constant 0.000000e+00 : f32
    %28 = vector.broadcast %cst_11 : f32 to vector<8x640xf32>
    %29 = arith.cmpf ogt, %27, %28 : vector<8x640xf32>
    %cst_12 = arith.constant 0.00999999977 : f32
    %30 = vector.broadcast %cst_12 : f32 to vector<8x640xf32>
    %31 = arith.mulf %30, %27 : vector<8x640xf32>
    %32 = arith.select %29, %27, %31 : vector<8x640xi1>, vector<8x640xf32>
    %33 = arith.truncf %32 : vector<8x640xf32> to vector<8x640xbf16>
    %c0_13 = arith.constant 0 : index
    %c0_14 = arith.constant 0 : index
    %34 = vector.load %arg5[%c0_13, %c0_14] : memref<640x320xbf16, #tpu.memory_space<vmem>>, vector<640x320xbf16>
    %cst_15 = arith.constant dense<0.000000e+00> : vector<8x320xf32>
    %35 = tpu.matmul %33, %34, %cst_15 {dimension_numbers = #tpu.dot_dimension_numbers<[1], [0], [0], [1], [0, 0, 1, 1], [], []>} : vector<8x640xbf16>, vector<640x320xbf16>, vector<8x320xf32> -> vector<8x320xf32>
    %c0_16 = arith.constant 0 : index
    %c0_17 = arith.constant 0 : index
    %36 = vector.load %arg6[%c0_16, %c0_17] : memref<1x320xf32, #tpu.memory_space<vmem>>, vector<1x320xf32>
    %37 = vector.broadcast %36 : vector<1x320xf32> to vector<8x320xf32>
    %38 = arith.addf %35, %37 : vector<8x320xf32>
    %cst_18 = arith.constant 0.000000e+00 : f32
    %39 = vector.broadcast %cst_18 : f32 to vector<8x320xf32>
    %40 = arith.cmpf ogt, %38, %39 : vector<8x320xf32>
    %cst_19 = arith.constant 0.00999999977 : f32
    %41 = vector.broadcast %cst_19 : f32 to vector<8x320xf32>
    %42 = arith.mulf %41, %38 : vector<8x320xf32>
    %43 = arith.select %40, %38, %42 : vector<8x320xi1>, vector<8x320xf32>
    %44 = arith.truncf %43 : vector<8x320xf32> to vector<8x320xbf16>
    %c0_20 = arith.constant 0 : index
    %c0_21 = arith.constant 0 : index
    %45 = vector.load %arg7[%c0_20, %c0_21] : memref<320x128xbf16, #tpu.memory_space<vmem>>, vector<320x128xbf16>
    %cst_22 = arith.constant dense<0.000000e+00> : vector<8x128xf32>
    %46 = tpu.matmul %44, %45, %cst_22 {dimension_numbers = #tpu.dot_dimension_numbers<[1], [0], [0], [1], [0, 0, 1, 1], [], []>} : vector<8x320xbf16>, vector<320x128xbf16>, vector<8x128xf32> -> vector<8x128xf32>
    %c0_23 = arith.constant 0 : index
    %c0_24 = arith.constant 0 : index
    %47 = vector.load %arg2[%c0_23, %c0_24] : memref<8x32xf32, #tpu.memory_space<vmem>>, vector<8x32xf32>
    %48 = arith.truncf %47 : vector<8x32xf32> to vector<8x32xbf16>
    %c0_25 = arith.constant 0 : index
    %c0_26 = arith.constant 0 : index
    %49 = vector.load %arg8[%c0_25, %c0_26] : memref<32x128xbf16, #tpu.memory_space<vmem>>, vector<32x128xbf16>
    %cst_27 = arith.constant dense<0.000000e+00> : vector<8x128xf32>
    %50 = tpu.matmul %48, %49, %cst_27 {dimension_numbers = #tpu.dot_dimension_numbers<[1], [0], [0], [1], [0, 0, 1, 1], [], []>} : vector<8x32xbf16>, vector<32x128xbf16>, vector<8x128xf32> -> vector<8x128xf32>
    %51 = arith.addf %46, %50 : vector<8x128xf32>
    %c0_28 = arith.constant 0 : index
    %c0_29 = arith.constant 0 : index
    %52 = vector.load %arg9[%c0_28, %c0_29] : memref<1x128xf32, #tpu.memory_space<vmem>>, vector<1x128xf32>
    %53 = vector.broadcast %52 : vector<1x128xf32> to vector<8x128xf32>
    %54 = arith.addf %51, %53 : vector<8x128xf32>
    %cst_30 = arith.constant 0.000000e+00 : f32
    %55 = vector.broadcast %cst_30 : f32 to vector<8x128xf32>
    %56 = arith.cmpf ogt, %54, %55 : vector<8x128xf32>
    %cst_31 = arith.constant 0.00999999977 : f32
    %57 = vector.broadcast %cst_31 : f32 to vector<8x128xf32>
    %58 = arith.mulf %57, %54 : vector<8x128xf32>
    %59 = arith.select %56, %54, %58 : vector<8x128xi1>, vector<8x128xf32>
    %c0_32 = arith.constant 0 : index
    %c0_33 = arith.constant 0 : index
    %60 = vector.load %arg10[%c0_32, %c0_33] : memref<1x128xf32, #tpu.memory_space<vmem>>, vector<1x128xf32>
    %61 = vector.broadcast %60 : vector<1x128xf32> to vector<8x128xf32>
    %62 = arith.mulf %59, %61 : vector<8x128xf32>
    %cst_34 = arith.constant dense<0.000000e+00> : vector<8xf32>
    %63 = vector.multi_reduction <add>, %62, %cst_34 [1] : vector<8x128xf32> to vector<8xf32>
    %64 = vector.shape_cast %63 : vector<8xf32> to vector<8x1xf32>
    %c0_35 = arith.constant 0 : index
    %c0_36 = arith.constant 0 : index
    %65 = vector.load %arg11[%c0_35, %c0_36] : memref<1x1xf32, #tpu.memory_space<vmem>>, vector<1x1xf32>
    %66 = vector.broadcast %65 : vector<1x1xf32> to vector<8x1xf32>
    %67 = arith.addf %64, %66 : vector<8x1xf32>
    %c0_37 = arith.constant 0 : index
    %c0_38 = arith.constant 0 : index
    %68 = vector.load %arg12[%c0_37, %c0_38] : memref<8x1xf32, #tpu.memory_space<vmem>>, vector<8x1xf32>
    tpu.vector_store %arg12[%c0_37, %c0_38], %67 {strides = array<i32>} : memref<8x1xf32, #tpu.memory_space<vmem>>, vector<8x1xf32>,
    return
  }
  func.func @transform_0(%arg0: i32) -> (i32, i32) {
    %c0_i32 = arith.constant 0 : i32
    %c0_i32_0 = arith.constant 0 : i32
    return %arg0, %c0_i32 : i32, i32
  }
  func.func @transform_1(%arg0: i32) -> (i32, i32) {
    %c0_i32 = arith.constant 0 : i32
    %c0_i32_0 = arith.constant 0 : i32
    return %arg0, %c0_i32 : i32, i32
  }
  func.func @transform_2(%arg0: i32) -> (i32, i32) {
    %c0_i32 = arith.constant 0 : i32
    %c0_i32_0 = arith.constant 0 : i32
    %c0_i32_1 = arith.constant 0 : i32
    return %c0_i32, %c0_i32_0 : i32, i32
  }
  func.func @transform_3(%arg0: i32) -> (i32, i32) {
    %c0_i32 = arith.constant 0 : i32
    %c0_i32_0 = arith.constant 0 : i32
    %c0_i32_1 = arith.constant 0 : i32
    return %c0_i32, %c0_i32_0 : i32, i32
  }
  func.func @transform_4(%arg0: i32) -> (i32, i32) {
    %c0_i32 = arith.constant 0 : i32
    %c0_i32_0 = arith.constant 0 : i32
    %c0_i32_1 = arith.constant 0 : i32
    return %c0_i32, %c0_i32_0 : i32, i32
  }
  func.func @transform_5(%arg0: i32) -> (i32, i32) {
    %c0_i32 = arith.constant 0 : i32
    %c0_i32_0 = arith.constant 0 : i32
    %c0_i32_1 = arith.constant 0 : i32
    return %c0_i32, %c0_i32_0 : i32, i32
  }
  func.func @transform_6(%arg0: i32) -> (i32, i32) {
    %c0_i32 = arith.constant 0 : i32
    %c0_i32_0 = arith.constant 0 : i32
    %c0_i32_1 = arith.constant 0 : i32
    return %c0_i32, %c0_i32_0 : i32, i32
  }
  func.func @transform_7(%arg0: i32) -> (i32, i32) {
    %c0_i32 = arith.constant 0 : i32
    %c0_i32_0 = arith.constant 0 : i32
    %c0_i32_1 = arith.constant 0 : i32
    return %c0_i32, %c0_i32_0 : i32, i32
  }
  func.func @transform_8(%arg0: i32) -> (i32, i32) {
    %c0_i32 = arith.constant 0 : i32
    %c0_i32_0 = arith.constant 0 : i32
    %c0_i32_1 = arith.constant 0 : i32
    return %c0_i32, %c0_i32_0 : i32, i32
  }
  func.func @transform_9(%arg0: i32) -> (i32, i32) {
    %c0_i32 = arith.constant 0 : i32
    %c0_i32_0 = arith.constant 0 : i32
    %c0_i32_1 = arith.constant 0 : i32
    return %c0_i32, %c0_i32_0 : i32, i32
  }
  func.func @transform_10(%arg0: i32) -> (i32, i32) {
    %c0_i32 = arith.constant 0 : i32
    %c0_i32_0 = arith.constant 0 : i32
    %c0_i32_1 = arith.constant 0 : i32
    return %c0_i32, %c0_i32_0 : i32, i32
  }
  func.func @transform_11(%arg0: i32) -> (i32, i32) {
    %c0_i32 = arith.constant 0 : i32
    %c0_i32_0 = arith.constant 0 : i32
    return %arg0, %c0_i32 : i32, i32
  }
}

</mosaic_0001>

<bundles_post_ra>
// kernel: tpu_custom_call.1
= control target key start
LH: loop header
LB: loop body
LE: loop exit
PB: predicated region body
PF: predicated region fallthrough
CT: control target
= control target key end

     0   :  { %s7300_s0 = inlined_call_operand.hbm [shape: bf16[8,1280], index: 0, kind: input, shape index: {}]   ;;  %s7301_s1 = inlined_call_operand.hbm [shape: f32[8,32], index: 1, kind: input, shape index: {}]   ;;  %s7302_s2 = inlined_call_operand.hbm [shape: bf16[1280,640], index: 2, kind: input, shape index: {}]   ;;  %s7303_s3 = inlined_call_operand.hbm [shape: f32[1,640], index: 3, kind: input, shape index: {}]   ;;  %s7304_s4 = inlined_call_operand.vmem [shape: bf16[640,320], index: 4, kind: input, shape index: {}]   ;;  %s7305_s5 = inlined_call_operand.hbm [shape: f32[1,320], index: 5, kind: input, shape index: {}]   ;;  %s7306_s6 = inlined_call_operand.hbm [shape: bf16[320,128], index: 6, kind: input, shape index: {}]   ;;  %s7307_s7 = inlined_call_operand.hbm [shape: bf16[32,128], index: 7, kind: input, shape index: {}]   ;;  %s7308_s8 = inlined_call_operand.hbm [shape: f32[1,128], index: 8, kind: input, shape index: {}]   ;;  %s7309_s9 = inlined_call_operand.hbm [shape: f32[1,128], index: 9, kind: input, shape index: {}]   ;;  %s7310_s10 = inlined_call_operand.<no memory space> [shape: f32[1,1], index: 10, kind: input, shape index: {}]   ;;  %s7311_s11 = inlined_call_operand.vmem [shape: f32[8,1], index: 11, kind: output, shape index: {}]  }
   0x1   :  { %v16_v0 = vstv %s7310_s10 }
   0x2   :  { %17 = vst [vmem:[#allocation2] sm:$0x1] %v16_v0 }
   0x3   :  { %18 = vsyncpa [#allocation4], 0 }
   0x4   :  { %19 = vsyncpa [#allocation6], 0 }
   0x5   :  { %20 = vsyncpa [#allocation9], 0 }
   0x6   :  { %21 = vsyncpa [#allocation12], 0 }
   0x7   :  { %22 = vsyncpa [#allocation15], 0  ;;  %s6602_s19 = smov [#allocation5]   ;;  %s6603_s21 = smov [#allocation8]  }
   0x8   :  { %s39_s20 = sshll.u32 %s6602_s19, 4  ;;  %s61_s22 = sshll.u32 %s6603_s21, 4  ;;  %s40_s20 = int_to_ptr.vmem [resolvable:$true] %s39_s20  ;;  %s62_s22 = int_to_ptr.vmem [resolvable:$true] %s61_s22 }
   0x9   :  { %s6420_s23 = scalar_lea.vmem %s40_s20, 128  ;;  %p6425_p1 = scmp.lt.s32.totalorder %s40_s20, %s40_s20 }
   0xa   :  { %p6421_p0 = scmp.ne.s32.totalorder %s40_s20, %s6420_s23  ;;  %p6426_p2 = scmp.lt.s32.totalorder %s6420_s23, %s6420_s23 }
   0xc   :  { %p6427_p3 = por %p6426_p2, %p6425_p1 }
   0xe   :  { %p6428_p4 = pnand %p6427_p3, %p6421_p0 }
  0x10   :  { %6431 = shalt.err (!%p6428_p4)
}
  0x11   :  { %42 = dma.hbm_to_vmem [thread:$0]  %s7301_s1, 128, %s40_s20, [#allocation6]  }
  0x12   :  { %s6440_s25 = scalar_lea.vmem %s62_s22, 80  ;;  %s6444_s26 = scalar_lea.vmem %s62_s22, 96 }
  0x13   :  { %p6441_p5 = scmp.ne.s32.totalorder %s62_s22, %s6440_s25  ;;  %p6445_p6 = scmp.lt.s32.totalorder %s62_s22, %s62_s22 }
  0x14   :  { %p6446_p7 = scmp.lt.s32.totalorder %s6444_s26, %s6440_s25 }
  0x16   :  { %p6447_p8 = por %p6446_p7, %p6445_p6 }
  0x18   :  { %p6448_p9 = pnand %p6447_p8, %p6441_p5 }
  0x1a   :  { %6451 = shalt.err (!%p6448_p9)
}
  0x1b   :  { %64 = dma.hbm_to_vmem [thread:$0]  %s7303_s3, 80, %s62_s22, [#allocation9]  }
  0x1c   :  { %s6604_s29 = smov [#allocation11]  }
  0x1d   :  { %s82_s30 = sshll.u32 %s6604_s29, 4  ;;  %s83_s30 = int_to_ptr.vmem [resolvable:$true] %s82_s30 }
  0x1e   :  { %s6460_s12 = scalar_lea.vmem %s83_s30, 2560  ;;  %p6465_p11 = scmp.lt.s32.totalorder %s83_s30, %s83_s30 }
  0x1f   :  { %p6461_p10 = scmp.ne.s32.totalorder %s83_s30, %s6460_s12  ;;  %p6466_p12 = scmp.lt.s32.totalorder %s6460_s12, %s6460_s12 }
  0x21   :  { %p6467_p13 = por %p6466_p12, %p6465_p11 }
  0x23   :  { %p6468_p0 = pnand %p6467_p13, %p6461_p10 }
  0x25   :  { %6471 = shalt.err (!%p6468_p0)
}
  0x26   :  { %s6605_s1 = smov 64   ;;  %s6606_s13 = smov 4  }
  0x27   :  { %88 = dma.hbm_to_vmem [thread:$0]  %s7306_s6, 2560, %s83_s30, [#allocation12], %s6605_s1, %s6605_s1, %s6606_s13  }
  0x28   :  { %s6607_s3 = smov [#allocation14]   ;;  %s6608_s17 = smov [#allocation3]  }
  0x29   :  { %s107_s16 = sshll.u32 %s6607_s3, 4  ;;  %s29_s18 = sshll.u32 %s6608_s17, 4  ;;  %s108_s16 = int_to_ptr.vmem [resolvable:$true] %s107_s16  ;;  %s30_s18 = int_to_ptr.vmem [resolvable:$true] %s29_s18 }
  0x2a   :  { %s6480_s19 = scalar_lea.vmem %s108_s16, 16  ;;  %s6484_s20 = scalar_lea.vmem %s108_s16, 32 }
  0x2b   :  { %p6481_p1 = scmp.ne.s32.totalorder %s108_s16, %s6480_s19  ;;  %p6485_p2 = scmp.lt.s32.totalorder %s108_s16, %s108_s16 }
  0x2c   :  { %p6486_p3 = scmp.lt.s32.totalorder %s6484_s20, %s6480_s19 }
  0x2e   :  { %p6487_p4 = por %p6486_p3, %p6485_p2 }
  0x30   :  { %p6488_p5 = pnand %p6487_p4, %p6481_p1 }
  0x32   :  { %6491 = shalt.err (!%p6488_p5)
}
  0x33   :  { %110 = dma.hbm_to_vmem [thread:$0]  %s7308_s8, 16, %s108_s16, [#allocation15]  }
  0x34   :  { %s6500_s23 = scalar_lea.vmem %s30_s18, 640  ;;  %p6505_p7 = scmp.lt.s32.totalorder %s30_s18, %s30_s18 }
  0x35   :  { %p6501_p6 = scmp.ne.s32.totalorder %s30_s18, %s6500_s23  ;;  %p6506_p8 = scmp.lt.s32.totalorder %s6500_s23, %s6500_s23 }
  0x37   :  { %p6507_p9 = por %p6506_p8, %p6505_p7 }
  0x39   :  { %p6508_p10 = pnand %p6507_p9, %p6501_p6 }
  0x3b   :  { %6511 = shalt.err (!%p6508_p10)
}
  0x3c   :  { %32 = dma.hbm_to_vmem [thread:$0]  %s7300_s0, 640, %s30_s18, [#allocation4]  }
  0x3d   :  { %s6609_s24 = smov [#allocation7]  }
  0x3e   :  { %s48_s25 = sshll.u32 %s6609_s24, 4  ;;  %s49_s25 = int_to_ptr.vmem [resolvable:$true] %s48_s25 }
  0x3f   :  { %s6520_s26 = scalar_lea.vmem %s49_s25, 51200  ;;  %p6525_p12 = scmp.lt.s32.totalorder %s49_s25, %s49_s25 }
  0x40   :  { %p6521_p11 = scmp.ne.s32.totalorder %s49_s25, %s6520_s26  ;;  %p6526_p13 = scmp.lt.s32.totalorder %s6520_s26, %s6520_s26 }
  0x42   :  { %p6527_p0 = por %p6526_p13, %p6525_p12 }
  0x44   :  { %p6528_p1 = pnand %p6527_p0, %p6521_p11 }
  0x46   :  { %6531 = shalt.err (!%p6528_p1)
}
  0x47   :  { %s6610_s8 = smov 320   ;;  %s6611_s27 = smov 20  }
  0x48   :  { %54 = dma.hbm_to_vmem [thread:$0]  %s7302_s2, 51200, %s49_s25, [#allocation6], %s6610_s8, %s6610_s8, %s6611_s27  }
  0x49   :  { %s6612_s30 = smov [#allocation10]   ;;  %s6613_s14 = smov [#allocation13]  }
  0x4a   :  { %s73_s12 = sshll.u32 %s6612_s30, 4  ;;  %s94_s0 = sshll.u32 %s6613_s14, 4  ;;  %s74_s12 = int_to_ptr.vmem [resolvable:$true] %s73_s12  ;;  %s95_s0 = int_to_ptr.vmem [resolvable:$true] %s94_s0 }
  0x4b   :  { %s6540_s15 = scalar_lea.vmem %s74_s12, 48  ;;  %s6544_s3 = scalar_lea.vmem %s74_s12, 64 }
  0x4c   :  { %p6541_p2 = scmp.ne.s32.totalorder %s74_s12, %s6540_s15  ;;  %p6545_p3 = scmp.lt.s32.totalorder %s74_s12, %s74_s12 }
  0x4d   :  { %p6546_p4 = scmp.lt.s32.totalorder %s6544_s3, %s6540_s15 }
  0x4f   :  { %p6547_p5 = por %p6546_p4, %p6545_p3 }
  0x51   :  { %p6548_p6 = pnand %p6547_p5, %p6541_p2 }
  0x53   :  { %6551 = shalt.err (!%p6548_p6)
}
  0x54   :  { %76 = dma.hbm_to_vmem [thread:$0]  %s7305_s5, 48, %s74_s12, [#allocation9]  }
  0x55   :  { %s6560_s18 = scalar_lea.vmem %s95_s0, 256  ;;  %p6565_p8 = scmp.lt.s32.totalorder %s95_s0, %s95_s0 }
  0x56   :  { %p6561_p7 = scmp.ne.s32.totalorder %s95_s0, %s6560_s18  ;;  %p6566_p9 = scmp.lt.s32.totalorder %s6560_s18, %s6560_s18 }
  0x58   :  { %p6567_p10 = por %p6566_p9, %p6565_p8 }
  0x5a   :  { %p6568_p11 = pnand %p6567_p10, %p6561_p7 }
  0x5c   :  { %6571 = shalt.err (!%p6568_p11)
}
  0x5d   :  { %100 = dma.hbm_to_vmem [thread:$0]  %s7307_s7, 256, %s95_s0, [#allocation12], %s6605_s1, %s6605_s1, %s6606_s13  }
  0x5e   :  { %s6614_s20 = smov [#allocation16]  }
  0x5f   :  { %s117_s21 = sshll.u32 %s6614_s20, 4  ;;  %s118_s21 = int_to_ptr.vmem [resolvable:$true] %s117_s21 }
  0x60   :  { %s6580_s22 = scalar_lea.vmem %s118_s21, 16  ;;  %s6584_s5 = scalar_lea.vmem %s118_s21, 32 }
  0x61   :  { %p6581_p12 = scmp.ne.s32.totalorder %s118_s21, %s6580_s22  ;;  %p6585_p13 = scmp.lt.s32.totalorder %s118_s21, %s118_s21 }
  0x62   :  { %p6586_p0 = scmp.lt.s32.totalorder %s6584_s5, %s6580_s22 }
  0x64   :  { %p6587_p1 = por %p6586_p0, %p6585_p13 }
  0x66   :  { %p6588_p2 = pnand %p6587_p1, %p6581_p12 }
  0x68   :  { %6591 = shalt.err (!%p6588_p2)
}
  0x69   :  { %120 = dma.hbm_to_vmem [thread:$0]  %s7309_s9, 16, %s118_s21, [#allocation15]  }
  0x6a   :  { %6592 = dma.done.wait [#allocation4], 640  }
  0x6b   :  { %6593 = vsyncadd [#allocation4], 4294966656 }
  0x6c   :  { %6594 = dma.done.wait [#allocation6], 51328  }
  0x6d   :  { %6595 = vsyncadd [#allocation6], 4294915968 }
  0x6e   :  { %6596 = dma.done.wait [#allocation9], 128  }
  0x6f   :  { %6597 = vsyncadd [#allocation9], 4294967168 }
  0x70   :  { %6598 = dma.done.wait [#allocation12], 2816  }
  0x71   :  { %6599 = vsyncadd [#allocation12], 4294964480 }
  0x72   :  { %6600 = dma.done.wait [#allocation15], 32  }
  0x73   :  { %6601 = vsyncadd [#allocation15], 4294967264  ;;  %v151_v1 = vld [vmem:[#allocation3] sm:$0xff]  ;;  %v152_v2 = vld [vmem:[#allocation3 + $0x8] sm:$0xff]  ;;  %vm6617_vm4 = vmmov 0   ;;  %vm4583_vm6 = vcmask 261120  }
  0x74   :  { %v153_v3 = vld [vmem:[#allocation3 + $0x10] sm:$0xff]  ;;  %v6714_v4 = vunpack.c.l.bf16 %v151_v1  ;;  %v6716_v5 = vunpack.c.h.bf16 %v151_v1  ;;  %v6718_v6 = vunpack.c.l.bf16 %v152_v2  ;;  %v5667_v7 = vld [vmem:[#allocation7 + $0x11c] ss:$20 sps:$4 sm:$0xff]   ;;  %v6720_v8 = vunpack.c.h.bf16 %v152_v2  ;;  %v5671_v12 = vld [vmem:[#allocation7 + $0x118] ss:$20 sps:$4 sm:$0xff]  }
  0x75   :  { %v5669_v11 = vld [vmem:[#allocation7 + $0x39c] ss:$20 sps:$4 sm:$0xff]   ;;  %v154_v13 = vld [vmem:[#allocation3 + $0x18] sm:$0xff]  ;;  %2823 = vmatprep.subr.bf16.mxu0 %v5667_v7  ;;  %v6730_v17 = vunpack.c.l.bf16 %v153_v3  ;;  %v6735_v25 = vunpack.c.h.bf16 %v153_v3  ;;  %v5685_v40 = vld [vmem:[#allocation7 + $0xa4] ss:$20 sps:$4 sm:$0xff]   ;;  %vm4747_vm10 = vcmask 523264  }
  0x76   :  { %v166_v9 = vadd.f32 %v6716_v5, %v6714_v4  ;;  %v179_v10 = vmul.f32 %v6714_v4, %v6714_v4  ;;  %v180_v14 = vmul.f32 %v6716_v5, %v6716_v5  ;;  %v181_v15 = vmul.f32 %v6718_v6, %v6718_v6  ;;  %v5672_v16 = vld [vmem:[#allocation7 + $0x398] ss:$20 sps:$4 sm:$0xff]   ;;  %2864 = vmatprep.subr.bf16.mxu1 %v5669_v11  ;;  %v5673_v19 = vld [vmem:[#allocation7 + $0xf4] ss:$20 sps:$4 sm:$0xff]   ;;  %v5677_v23 = vld [vmem:[#allocation7 + $0xf0] ss:$20 sps:$4 sm:$0xff]  }
  0x77   :  { %v182_v20 = vmul.f32 %v6720_v8, %v6720_v8  ;;  %2824 = vmatpush1.bf16.msra.mxu0 %v5671_v12  ;;  %2865 = vmatpush1.bf16.msra.mxu1 %v5672_v16  ;;  %v5675_v22 = vld [vmem:[#allocation7 + $0x374] ss:$20 sps:$4 sm:$0xff]   ;;  %v5678_v24 = vld [vmem:[#allocation7 + $0x370] ss:$20 sps:$4 sm:$0xff]   ;;  %v5679_v27 = vld [vmem:[#allocation7 + $0xcc] ss:$20 sps:$4 sm:$0xff]   ;;  %v183_v28 = vmul.f32 %v6730_v17, %v6730_v17  ;;  %v6740_v32 = vunpack.c.l.bf16 %v154_v13  ;;  %v184_v35 = vmul.f32 %v6735_v25, %v6735_v25 }
  0x78   :  { %v167_v18 = vadd.f32 %v166_v9, %v6718_v6  ;;  %v189_v21 = vadd.f32 %v180_v14, %v179_v10  ;;  %2825 = vmatprep.subr.bf16.mxu0 %v5673_v19  ;;  %2866 = vmatprep.subr.bf16.mxu1 %v5675_v22  ;;  %v5681_v30 = vld [vmem:[#allocation7 + $0x34c] ss:$20 sps:$4 sm:$0xff]   ;;  %v155_v31 = vld [vmem:[#allocation3 + $0x20] sm:$0xff]  ;;  %v5683_v34 = vld [vmem:[#allocation7 + $0xc8] ss:$20 sps:$4 sm:$0xff]   ;;  %v6745_v38 = vunpack.c.h.bf16 %v154_v13  ;;  %vm4860_vm12 = vcmask 7168  }
  0x79   :  { %v5684_v37 = vld [vmem:[#allocation7 + $0x348] ss:$20 sps:$4 sm:$0xff]   ;;  %v5687_v41 = vld [vmem:[#allocation7 + $0x324] ss:$20 sps:$4 sm:$0xff]   ;;  %v185_v42 = vmul.f32 %v6740_v32, %v6740_v32  ;;  %v6750_v44 = vunpack.c.l.bf16 %v155_v31  ;;  %v5689_v48 = vld [vmem:[#allocation7 + $0xa0] ss:$20 sps:$4 sm:$0xff]   ;;  %v6755_v51 = vunpack.c.h.bf16 %v155_v31 }
  0x7a   :  { %v168_v26 = vadd.f32 %v167_v18, %v6720_v8  ;;  %v190_v29 = vadd.f32 %v189_v21, %v181_v15  ;;  %v186_v46 = vmul.f32 %v6745_v38, %v6745_v38  ;;  %v5690_v49 = vld [vmem:[#allocation7 + $0x320] ss:$20 sps:$4 sm:$0xff]   ;;  %v5691_v50 = vld [vmem:[#allocation7 + $0x7c] ss:$20 sps:$4 sm:$0xff]   ;;  %v5695_v57 = vld [vmem:[#allocation7 + $0x78] ss:$20 sps:$4 sm:$0xff]  }
  0x7b   :  { %2826 = vmatpush1.bf16.msra.mxu0 %v5677_v23  ;;  %2867 = vmatpush1.bf16.msra.mxu1 %v5678_v24  ;;  %v5693_v53 = vld [vmem:[#allocation7 + $0x2fc] ss:$20 sps:$4 sm:$0xff]   ;;  %v187_v54 = vmul.f32 %v6750_v44, %v6750_v44  ;;  %v188_v58 = vmul.f32 %v6755_v51, %v6755_v51  ;;  %v5696_v60 = vld [vmem:[#allocation7 + $0x2f8] ss:$20 sps:$4 sm:$0xff]   ;;  %v5697_v62 = vld [vmem:[#allocation7 + $0x54] ss:$20 sps:$4 sm:$0xff]  }
  0x7c   :  { %v169_v33 = vadd.f32 %v168_v26, %v6730_v17  ;;  %v191_v36 = vadd.f32 %v190_v29, %v182_v20  ;;  %2827 = vmatprep.subr.bf16.mxu0 %v5679_v27  ;;  %2868 = vmatprep.subr.bf16.mxu1 %v5681_v30  ;;  %v5699_v63 = vld [vmem:[#allocation7 + $0x2d4] ss:$20 sps:$4 sm:$0xff]   ;;  %v5701_v2 = vld [vmem:[#allocation7 + $0x50] ss:$20 sps:$4 sm:$0xff]   ;;  %v5703_v7 = vld [vmem:[#allocation7 + $0x2c] ss:$20 sps:$4 sm:$0xff]  }
  0x7d   :  { %v5702_v3 = vld [vmem:[#allocation7 + $0x2d0] ss:$20 sps:$4 sm:$0xff]   ;;  %v5705_v9 = vld [vmem:[#allocation7 + $0x2ac] ss:$20 sps:$4 sm:$0xff]   ;;  %v5707_v10 = vld [vmem:[#allocation7 + $0x28] ss:$20 sps:$4 sm:$0xff]  }
  0x7e   :  { %v170_v39 = vadd.f32 %v169_v33, %v6735_v25  ;;  %v192_v43 = vadd.f32 %v191_v36, %v183_v28  ;;  %v5708_v11 = vld [vmem:[#allocation7 + $0x2a8] ss:$20 sps:$4 sm:$0xff]   ;;  %v5709_v12 = vld [vmem:[#allocation7 + $0x4] ss:$20 sps:$4 sm:$0xff]   ;;  %v5713_v14 = vld [vmem:[#allocation7] ss:$20 sps:$4 sm:$0xff]  }
  0x7f   :  { %2828 = vmatpush1.bf16.msra.mxu0 %v5683_v34  ;;  %2869 = vmatpush1.bf16.msra.mxu1 %v5684_v37  ;;  %v5711_v13 = vld [vmem:[#allocation7 + $0x284] ss:$20 sps:$4 sm:$0xff]   ;;  %v5714_v15 = vld [vmem:[#allocation7 + $0x280] ss:$20 sps:$4 sm:$0xff]   ;;  %v5715_v16 = vld [vmem:[#allocation7 + $0x25c] ss:$20 sps:$4 sm:$0xff]  }
  0x80   :  { %v171_v45 = vadd.f32 %v170_v39, %v6740_v32  ;;  %v193_v47 = vadd.f32 %v192_v43, %v184_v35  ;;  %2829 = vmatprep.subr.bf16.mxu0 %v5685_v40  ;;  %2870 = vmatprep.subr.bf16.mxu1 %v5687_v41  ;;  %v5717_v18 = vld [vmem:[#allocation7 + $0x4dc] ss:$20 sps:$4 sm:$0xff]   ;;  %v5719_v19 = vld [vmem:[#allocation7 + $0x258] ss:$20 sps:$4 sm:$0xff]   ;;  %v5721_v21 = vld [vmem:[#allocation7 + $0x234] ss:$20 sps:$4 sm:$0xff]  }
  0x81   :  { %v5720_v20 = vld [vmem:[#allocation7 + $0x4d8] ss:$20 sps:$4 sm:$0xff]   ;;  %v5723_v22 = vld [vmem:[#allocation7 + $0x4b4] ss:$20 sps:$4 sm:$0xff]   ;;  %v5725_v23 = vld [vmem:[#allocation7 + $0x230] ss:$20 sps:$4 sm:$0xff]  }
  0x82   :  { %v172_v52 = vadd.f32 %v171_v45, %v6745_v38  ;;  %v194_v55 = vadd.f32 %v193_v47, %v185_v42  ;;  %v5726_v24 = vld [vmem:[#allocation7 + $0x4b0] ss:$20 sps:$4 sm:$0xff]   ;;  %v5727_v26 = vld [vmem:[#allocation7 + $0x20c] ss:$20 sps:$4 sm:$0xff]   ;;  %v5731_v28 = vld [vmem:[#allocation7 + $0x208] ss:$20 sps:$4 sm:$0xff]  }
  0x83   :  { %2830 = vmatpush1.bf16.msra.mxu0 %v5689_v48  ;;  %2871 = vmatpush1.bf16.msra.mxu1 %v5690_v49  ;;  %v5729_v27 = vld [vmem:[#allocation7 + $0x48c] ss:$20 sps:$4 sm:$0xff]   ;;  %v5732_v29 = vld [vmem:[#allocation7 + $0x488] ss:$20 sps:$4 sm:$0xff]   ;;  %v5733_v30 = vld [vmem:[#allocation7 + $0x1e4] ss:$20 sps:$4 sm:$0xff]  }
  0x84   :  { %v173_v56 = vadd.f32 %v172_v52, %v6750_v44  ;;  %v195_v59 = vadd.f32 %v194_v55, %v186_v46  ;;  %2831 = vmatprep.subr.bf16.mxu0 %v5691_v50  ;;  %2872 = vmatprep.subr.bf16.mxu1 %v5693_v53  ;;  %v5735_v31 = vld [vmem:[#allocation7 + $0x464] ss:$20 sps:$4 sm:$0xff]   ;;  %v5737_v33 = vld [vmem:[#allocation7 + $0x1e0] ss:$20 sps:$4 sm:$0xff]   ;;  %v5739_v35 = vld [vmem:[#allocation7 + $0x1bc] ss:$20 sps:$4 sm:$0xff]  }
  0x85   :  { %v5738_v34 = vld [vmem:[#allocation7 + $0x460] ss:$20 sps:$4 sm:$0xff]   ;;  %v5741_v36 = vld [vmem:[#allocation7 + $0x43c] ss:$20 sps:$4 sm:$0xff]   ;;  %v5743_v37 = vld [vmem:[#allocation7 + $0x1b8] ss:$20 sps:$4 sm:$0xff]  }
  0x86   :  { %v174_v61 = vadd.f32 %v173_v56, %v6755_v51  ;;  %v196_v0 = vadd.f32 %v195_v59, %v187_v54  ;;  %v5744_v39 = vld [vmem:[#allocation7 + $0x438] ss:$20 sps:$4 sm:$0xff]   ;;  %v5745_v40 = vld [vmem:[#allocation7 + $0x194] ss:$20 sps:$4 sm:$0xff]   ;;  %v5749_v42 = vld [vmem:[#allocation7 + $0x190] ss:$20 sps:$4 sm:$0xff]  }
  0x87   :  { %2832 = vmatpush1.bf16.msra.mxu0 %v5695_v57  ;;  %2873 = vmatpush1.bf16.msra.mxu1 %v5696_v60  ;;  %v5747_v41 = vld [vmem:[#allocation7 + $0x414] ss:$20 sps:$4 sm:$0xff]   ;;  %v5750_v43 = vld [vmem:[#allocation7 + $0x410] ss:$20 sps:$4 sm:$0xff]   ;;  %v5751_v45 = vld [vmem:[#allocation7 + $0x16c] ss:$20 sps:$4 sm:$0xff]  }
  0x88   :  { %175 = vadd.xlane.f32.xlu0 %v174_v61  ;;  %v197_v1 = vadd.f32 %v196_v0, %v188_v58  ;;  %2833 = vmatprep.subr.bf16.mxu0 %v5697_v62  ;;  %v5753_v46 = vld [vmem:[#allocation7 + $0x3ec] ss:$20 sps:$4 sm:$0xff]   ;;  %v5755_v47 = vld [vmem:[#allocation7 + $0x168] ss:$20 sps:$4 sm:$0xff]   ;;  %v5757_v49 = vld [vmem:[#allocation7 + $0x144] ss:$20 sps:$4 sm:$0xff]  }
  0x89   :  { %2874 = vmatprep.subr.bf16.mxu1 %v5699_v63  ;;  %v5756_v48 = vld [vmem:[#allocation7 + $0x3e8] ss:$20 sps:$4 sm:$0xff]   ;;  %v5759_v50 = vld [vmem:[#allocation7 + $0x3c4] ss:$20 sps:$4 sm:$0xff]   ;;  %v5761_v52 = vld [vmem:[#allocation7 + $0x140] ss:$20 sps:$4 sm:$0xff]  }
  0x8a   :  { %v5762_v53 = vld [vmem:[#allocation7 + $0x3c0] ss:$20 sps:$4 sm:$0xff]   ;;  %v5765_v54 = vld [vmem:[#allocation7 + $0x61c] ss:$20 sps:$4 sm:$0xff]  }
  0x8b   :  { %2834 = vmatpush1.bf16.msra.mxu0 %v5701_v2  ;;  %2875 = vmatpush1.bf16.msra.mxu1 %v5702_v3  ;;  %v5768_v55 = vld [vmem:[#allocation7 + $0x89c] ss:$20 sps:$4 sm:$0xff]  }
  0x8c   :  { %198 = vadd.xlane.f32.xlu0 %v197_v1  ;;  %2835 = vmatprep.subr.bf16.mxu0 %v5703_v7 }
  0x8d   :  { %2876 = vmatprep.subr.bf16.mxu1 %v5705_v9 }
  0x8f   :  { %2836 = vmatpush1.bf16.msra.mxu0 %v5707_v10  ;;  %2877 = vmatpush1.bf16.msra.mxu1 %v5708_v11 }
  0x90   :  { %2837 = vmatprep.subr.bf16.mxu0 %v5709_v12  ;;  %2878 = vmatprep.subr.bf16.mxu1 %v5711_v13 }
  0x93   :  { %2838 = vmatpush1.bf16.msra.mxu0 %v5713_v14  ;;  %2879 = vmatpush1.bf16.msra.mxu1 %v5714_v15 }
  0x94   :  { %2839 = vmatprep.subr.bf16.mxu0 %v5715_v16  ;;  %2880 = vmatprep.subr.bf16.mxu1 %v5717_v18  ;;  %v5766_v16 = vld [vmem:[#allocation7 + $0x898] ss:$20 sps:$4 sm:$0xff]  }
  0x97   :  { %2840 = vmatpush2.bf16.msra.mxu0 %v5719_v19  ;;  %2881 = vmatpush2.bf16.msra.mxu1 %v5720_v20 }
  0x98   :  { %2841 = vmatprep.subr.bf16.mxu0 %v5721_v21  ;;  %2882 = vmatprep.subr.bf16.mxu1 %v5723_v22  ;;  %v5774_v21 = vld [vmem:[#allocation7 + $0x874] ss:$20 sps:$4 sm:$0xff]  }
  0x9b   :  { %2842 = vmatpush2.bf16.msra.mxu0 %v5725_v23  ;;  %2883 = vmatpush2.bf16.msra.mxu1 %v5726_v24 }
  0x9c   :  { %2843 = vmatprep.subr.bf16.mxu0 %v5727_v26  ;;  %2884 = vmatprep.subr.bf16.mxu1 %v5729_v27  ;;  %v5769_v27 = vld [vmem:[#allocation7 + $0x5f0] ss:$20 sps:$4 sm:$0xff]  }
  0x9f   :  { %2844 = vmatpush2.bf16.msra.mxu0 %v5731_v28  ;;  %2885 = vmatpush2.bf16.msra.mxu1 %v5732_v29  ;;  %v5772_v28 = vld [vmem:[#allocation7 + $0x870] ss:$20 sps:$4 sm:$0xff]   ;;  %v5777_v29 = vld [vmem:[#allocation7 + $0x5cc] ss:$20 sps:$4 sm:$0xff]  }
  0xa0   :  { %2845 = vmatprep.subr.bf16.mxu0 %v5733_v30  ;;  %2886 = vmatprep.subr.bf16.mxu1 %v5735_v31  ;;  %v5780_v30 = vld [vmem:[#allocation7 + $0x84c] ss:$20 sps:$4 sm:$0xff]   ;;  %v5775_v31 = vld [vmem:[#allocation7 + $0x5c8] ss:$20 sps:$4 sm:$0xff]  }
  0xa3   :  { %2846 = vmatpush2.bf16.msra.mxu0 %v5737_v33  ;;  %2887 = vmatpush2.bf16.msra.mxu1 %v5738_v34  ;;  %v5778_v33 = vld [vmem:[#allocation7 + $0x848] ss:$20 sps:$4 sm:$0xff]   ;;  %v5783_v34 = vld [vmem:[#allocation7 + $0x5a4] ss:$20 sps:$4 sm:$0xff]  }
  0xa4   :  { %2847 = vmatprep.subr.bf16.mxu0 %v5739_v35  ;;  %2888 = vmatprep.subr.bf16.mxu1 %v5741_v36  ;;  %v5786_v35 = vld [vmem:[#allocation7 + $0x824] ss:$20 sps:$4 sm:$0xff]   ;;  %v5781_v36 = vld [vmem:[#allocation7 + $0x5a0] ss:$20 sps:$4 sm:$0xff]  }
  0xa7   :  { %2848 = vmatpush2.bf16.msra.mxu0 %v5743_v37  ;;  %2889 = vmatpush2.bf16.msra.mxu1 %v5744_v39  ;;  %v5784_v37 = vld [vmem:[#allocation7 + $0x820] ss:$20 sps:$4 sm:$0xff]   ;;  %v5789_v39 = vld [vmem:[#allocation7 + $0x57c] ss:$20 sps:$4 sm:$0xff]  }
  0xa8   :  { %2849 = vmatprep.subr.bf16.mxu0 %v5745_v40  ;;  %2890 = vmatprep.subr.bf16.mxu1 %v5747_v41  ;;  %v5792_v40 = vld [vmem:[#allocation7 + $0x7fc] ss:$20 sps:$4 sm:$0xff]   ;;  %v5787_v41 = vld [vmem:[#allocation7 + $0x578] ss:$20 sps:$4 sm:$0xff]  }
  0xab   :  { %2850 = vmatpush2.bf16.msra.mxu0 %v5749_v42  ;;  %2891 = vmatpush2.bf16.msra.mxu1 %v5750_v43  ;;  %v5790_v42 = vld [vmem:[#allocation7 + $0x7f8] ss:$20 sps:$4 sm:$0xff]   ;;  %v5795_v43 = vld [vmem:[#allocation7 + $0x554] ss:$20 sps:$4 sm:$0xff]  }
  0xac   :  { %2851 = vmatprep.subr.bf16.mxu0 %v5751_v45  ;;  %2892 = vmatprep.subr.bf16.mxu1 %v5753_v46  ;;  %v5798_v45 = vld [vmem:[#allocation7 + $0x7d4] ss:$20 sps:$4 sm:$0xff]   ;;  %v5793_v46 = vld [vmem:[#allocation7 + $0x550] ss:$20 sps:$4 sm:$0xff]  }
  0xaf   :  { %2852 = vmatpush2.bf16.msra.mxu0 %v5755_v47  ;;  %2893 = vmatpush2.bf16.msra.mxu1 %v5756_v48  ;;  %v5796_v47 = vld [vmem:[#allocation7 + $0x7d0] ss:$20 sps:$4 sm:$0xff]   ;;  %v5801_v48 = vld [vmem:[#allocation7 + $0x52c] ss:$20 sps:$4 sm:$0xff]  }
  0xb0   :  { %2853 = vmatprep.subr.bf16.mxu0 %v5757_v49  ;;  %2894 = vmatprep.subr.bf16.mxu1 %v5759_v50  ;;  %v5804_v49 = vld [vmem:[#allocation7 + $0x7ac] ss:$20 sps:$4 sm:$0xff]   ;;  %v5799_v50 = vld [vmem:[#allocation7 + $0x528] ss:$20 sps:$4 sm:$0xff]  }
  0xb3   :  { %2854 = vmatpush2.bf16.msra.mxu0 %v5761_v52  ;;  %2895 = vmatpush2.bf16.msra.mxu1 %v5762_v53  ;;  %v5802_v52 = vld [vmem:[#allocation7 + $0x7a8] ss:$20 sps:$4 sm:$0xff]   ;;  %v5807_v53 = vld [vmem:[#allocation7 + $0x504] ss:$20 sps:$4 sm:$0xff]  }
  0xb4   :  { %2905 = vmatprep.subr.bf16.mxu0 %v5765_v54  ;;  %2946 = vmatprep.subr.bf16.mxu1 %v5768_v55  ;;  %v5810_v54 = vld [vmem:[#allocation7 + $0x784] ss:$20 sps:$4 sm:$0xff]   ;;  %v5805_v55 = vld [vmem:[#allocation7 + $0x500] ss:$20 sps:$4 sm:$0xff]  }
 0x111   :  { %v176_v56 = vpop.xlane.xlu0 %175 }
 0x112   :  { %v178_v57 = vmul.f32 0.00078125, %v176_v56  ;;  %v5808_v56 = vld [vmem:[#allocation7 + $0x780] ss:$20 sps:$4 sm:$0xff]  }
 0x114   :  { %v201_v59 = vmul.f32 %v178_v57, %v178_v57  ;;  %v205_v0 = vsub.f32 %v6716_v5, %v178_v57  ;;  %v207_v1 = vsub.f32 %v6720_v8, %v178_v57  ;;  %v204_v2 = vsub.f32 %v6714_v4, %v178_v57  ;;  %v5763_v8 = vld [vmem:[#allocation7 + $0x618] ss:$20 sps:$4 sm:$0xff]  }
 0x115   :  { %v199_v58 = vpop.xlane.xlu0 %198  ;;  %v206_v3 = vsub.f32 %v6718_v6, %v178_v57  ;;  %v209_v7 = vsub.f32 %v6735_v25, %v178_v57  ;;  %v211_v9 = vsub.f32 %v6745_v38, %v178_v57  ;;  %v208_v11 = vsub.f32 %v6730_v17, %v178_v57 }
 0x116   :  { %v200_v60 = vmul.f32 0.00078125, %v199_v58  ;;  %v210_v12 = vsub.f32 %v6740_v32, %v178_v57  ;;  %v213_v13 = vsub.f32 %v6755_v51, %v178_v57  ;;  %v212_v14 = vsub.f32 %v6750_v44, %v178_v57  ;;  %v5771_v44 = vld [vmem:[#allocation7 + $0x5f4] ss:$20 sps:$4 sm:$0xff]   ;;  %v5813_v57 = vld [vmem:[#allocation7 + $0x75c] ss:$20 sps:$4 sm:$0xff]  }
 0x117   :  { %v5816_v58 = vld [vmem:[#allocation7 + $0x9dc] ss:$20 sps:$4 sm:$0xff]  }
 0x118   :  { %v202_v61 = vsub.f32 %v200_v60, %v201_v59  ;;  %v5811_v59 = vld [vmem:[#allocation7 + $0x758] ss:$20 sps:$4 sm:$0xff]  }
 0x119   :  { %v5814_v60 = vld [vmem:[#allocation7 + $0x9d8] ss:$20 sps:$4 sm:$0xff]  }
 0x11a   :  { %v203_v62 = vmax.f32 %v202_v61, 0.0  ;;  %v5819_v61 = vld [vmem:[#allocation7 + $0x734] ss:$20 sps:$4 sm:$0xff]  }
 0x11c   :  { %v214_v63 = vadd.f32 1e-05, %v203_v62  ;;  %v5822_v62 = vld [vmem:[#allocation7 + $0x9b4] ss:$20 sps:$4 sm:$0xff]  }
 0x11e   :  { %6409 = vrsqrt.f32 %v214_v63  ;;  %v5817_v63 = vld [vmem:[#allocation7 + $0x730] ss:$20 sps:$4 sm:$0xff]  }
 0x12b   :  { %v6410_v10 = vpop.eup %6409 }
 0x12c   :  { %v217_v5 = vmul.f32 %v6410_v10, %v205_v0  ;;  %v219_v15 = vmul.f32 %v6410_v10, %v207_v1  ;;  %v216_v4 = vmul.f32 %v6410_v10, %v204_v2  ;;  %v218_v18 = vmul.f32 %v6410_v10, %v206_v3  ;;  %v5820_v0 = vld [vmem:[#allocation7 + $0x9b0] ss:$20 sps:$4 sm:$0xff]   ;;  %v5825_v1 = vld [vmem:[#allocation7 + $0x70c] ss:$20 sps:$4 sm:$0xff]   ;;  %v5823_v3 = vld [vmem:[#allocation7 + $0x708] ss:$20 sps:$4 sm:$0xff]  }
 0x12d   :  { %v221_v6 = vmul.f32 %v6410_v10, %v209_v7  ;;  %v223_v19 = vmul.f32 %v6410_v10, %v211_v9  ;;  %v6774_v25 = vmul.f32 %v6410_v10, %v208_v11  ;;  %v6776_v38 = vmul.f32 %v6410_v10, %v210_v12  ;;  %v5828_v2 = vld [vmem:[#allocation7 + $0x98c] ss:$20 sps:$4 sm:$0xff]   ;;  %v5826_v7 = vld [vmem:[#allocation7 + $0x988] ss:$20 sps:$4 sm:$0xff]   ;;  %v5831_v9 = vld [vmem:[#allocation7 + $0x6e4] ss:$20 sps:$4 sm:$0xff]  }
 0x12e   :  { %v6778_v20 = vpack.c.bf16 %v217_v5, %v217_v5  ;;  %v6780_v17 = vpack.c.bf16 %v219_v15, %v219_v15  ;;  %v6782_v32 = vpack.c.bf16 %v216_v4, %v216_v4  ;;  %v6784_v51 = vpack.c.bf16 %v218_v18, %v218_v18  ;;  %v5829_v11 = vld [vmem:[#allocation7 + $0x6e0] ss:$20 sps:$4 sm:$0xff]   ;;  %v5835_v5 = vld [vmem:[#allocation7 + $0x6b8] ss:$20 sps:$4 sm:$0xff]   ;;  %v5841_v4 = vld [vmem:[#allocation7 + $0x690] ss:$20 sps:$4 sm:$0xff]  }
 0x12f   :  { %v6788_v22 = vmul.f32 %v6410_v10, %v213_v13  ;;  %v6790_v23 = vmul.f32 %v6410_v10, %v212_v14  ;;  %v6794_v24 = vpack.c.bf16 %v221_v6, %v221_v6  ;;  %v6796_v26 = vpack.c.bf16 %v223_v19, %v223_v19  ;;  %v5834_v10 = vld [vmem:[#allocation7 + $0x964] ss:$20 sps:$4 sm:$0xff]   ;;  %v5832_v12 = vld [vmem:[#allocation7 + $0x960] ss:$20 sps:$4 sm:$0xff]   ;;  %v5837_v13 = vld [vmem:[#allocation7 + $0x6bc] ss:$20 sps:$4 sm:$0xff]  }
 0x130   :  { %2855 = vmatprep.mubr.bf16.mxu0 %v6778_v20  ;;  %2896 = vmatprep.mubr.bf16.mxu1 %v6780_v17  ;;  %v5840_v14 = vld [vmem:[#allocation7 + $0x93c] ss:$20 sps:$4 sm:$0xff]   ;;  %v5838_v15 = vld [vmem:[#allocation7 + $0x938] ss:$20 sps:$4 sm:$0xff]  }
 0x131   :  { %2856 = vmatmul.mubr.bf16.vlgmr.msra.gmra.mxu0 %v6782_v32  ;;  %2897 = vmatmul.mubr.bf16.vlgmr.msra.gmra.mxu1 %v6784_v51  ;;  %v5844_v18 = vld [vmem:[#allocation7 + $0x910] ss:$20 sps:$4 sm:$0xff]   ;;  %v5849_v6 = vld [vmem:[#allocation7 + $0x66c] ss:$20 sps:$4 sm:$0xff]  }
 0x132   :  { %2906 = vmatpush1.bf16.msra.mxu0 %v5763_v8  ;;  %2947 = vmatpush1.bf16.msra.mxu1 %v5766_v16  ;;  %v5843_v8 = vld [vmem:[#allocation7 + $0x694] ss:$20 sps:$4 sm:$0xff]   ;;  %v5852_v19 = vld [vmem:[#allocation7 + $0x8ec] ss:$20 sps:$4 sm:$0xff]  }
 0x133   :  { %2937 = vmatprep.mubr.bf16.mxu0 %v6794_v24  ;;  %2978 = vmatprep.mubr.bf16.mxu1 %v6796_v26  ;;  %v5846_v16 = vld [vmem:[#allocation7 + $0x914] ss:$20 sps:$4 sm:$0xff]  }
 0x134   :  { %2907 = vmatprep.subr.bf16.mxu0 %v5771_v44  ;;  %2948 = vmatprep.subr.bf16.mxu1 %v5774_v21  ;;  %v5847_v44 = vld [vmem:[#allocation7 + $0x668] ss:$20 sps:$4 sm:$0xff]  }
 0x135   :  { %v5850_v21 = vld [vmem:[#allocation7 + $0x8e8] ss:$20 sps:$4 sm:$0xff]  }
 0x136   :  { %2908 = vmatpush1.bf16.msra.mxu0 %v5769_v27  ;;  %2949 = vmatpush1.bf16.msra.mxu1 %v5772_v28  ;;  %v5855_v27 = vld [vmem:[#allocation7 + $0x644] ss:$20 sps:$4 sm:$0xff]  }
 0x137   :  { %2909 = vmatprep.subr.bf16.mxu0 %v5777_v29  ;;  %2950 = vmatprep.subr.bf16.mxu1 %v5780_v30  ;;  %v5858_v28 = vld [vmem:[#allocation7 + $0x8c4] ss:$20 sps:$4 sm:$0xff]   ;;  %v5853_v29 = vld [vmem:[#allocation7 + $0x640] ss:$20 sps:$4 sm:$0xff]  }
 0x138   :  { %v5856_v30 = vld [vmem:[#allocation7 + $0x8c0] ss:$20 sps:$4 sm:$0xff]  }
 0x13a   :  { %2910 = vmatpush1.bf16.msra.mxu0 %v5775_v31  ;;  %2951 = vmatpush1.bf16.msra.mxu1 %v5778_v33  ;;  %v5861_v31 = vld [vmem:[#allocation7 + $0xb1c] ss:$20 sps:$4 sm:$0xff]   ;;  %v5864_v33 = vld [vmem:[#allocation7 + $0x124] ss:$20 sps:$4 sm:$0xff]  }
 0x13b   :  { %2911 = vmatprep.subr.bf16.mxu0 %v5783_v34  ;;  %2952 = vmatprep.subr.bf16.mxu1 %v5786_v35  ;;  %v5859_v34 = vld [vmem:[#allocation7 + $0xb18] ss:$20 sps:$4 sm:$0xff]   ;;  %v5862_v35 = vld [vmem:[#allocation7 + $0x120] ss:$20 sps:$4 sm:$0xff]  }
 0x13e   :  { %2912 = vmatpush1.bf16.msra.mxu0 %v5781_v36  ;;  %2953 = vmatpush1.bf16.msra.mxu1 %v5784_v37  ;;  %v5867_v36 = vld [vmem:[#allocation7 + $0xaf4] ss:$20 sps:$4 sm:$0xff]   ;;  %v5870_v37 = vld [vmem:[#allocation7 + $0xfc] ss:$20 sps:$4 sm:$0xff]  }
 0x13f   :  { %2913 = vmatprep.subr.bf16.mxu0 %v5789_v39  ;;  %2954 = vmatprep.subr.bf16.mxu1 %v5792_v40  ;;  %v6802_v39 = vpack.c.bf16 %v6774_v25, %v6774_v25  ;;  %v6806_v40 = vpack.c.bf16 %v6776_v38, %v6776_v38  ;;  %v5868_v25 = vld [vmem:[#allocation7 + $0xf8] ss:$20 sps:$4 sm:$0xff]  }
 0x140   :  { %v5873_v38 = vld [vmem:[#allocation7 + $0xacc] ss:$20 sps:$4 sm:$0xff]  }
 0x142   :  { %2914 = vmatpush1.bf16.msra.mxu0 %v5787_v41  ;;  %2955 = vmatpush1.bf16.msra.mxu1 %v5790_v42  ;;  %v6810_v41 = vpack.c.bf16 %v6788_v22, %v6788_v22  ;;  %v5865_v42 = vld [vmem:[#allocation7 + $0xaf0] ss:$20 sps:$4 sm:$0xff]  }
 0x143   :  { %2915 = vmatprep.subr.bf16.mxu0 %v5795_v43  ;;  %2956 = vmatprep.subr.bf16.mxu1 %v5798_v45  ;;  %v5876_v43 = vld [vmem:[#allocation7 + $0xd4] ss:$20 sps:$4 sm:$0xff]   ;;  %v5874_v22 = vld [vmem:[#allocation7 + $0xd0] ss:$20 sps:$4 sm:$0xff]  }
 0x144   :  { %v5871_v45 = vld [vmem:[#allocation7 + $0xac8] ss:$20 sps:$4 sm:$0xff]  }
 0x146   :  { %2916 = vmatpush1.bf16.msra.mxu0 %v5793_v46  ;;  %2957 = vmatpush1.bf16.msra.mxu1 %v5796_v47  ;;  %v5879_v46 = vld [vmem:[#allocation7 + $0xaa4] ss:$20 sps:$4 sm:$0xff]   ;;  %v5877_v47 = vld [vmem:[#allocation7 + $0xaa0] ss:$20 sps:$4 sm:$0xff]  }
 0x147   :  { %2917 = vmatprep.subr.bf16.mxu0 %v5801_v48  ;;  %2958 = vmatprep.subr.bf16.mxu1 %v5804_v49  ;;  %v5882_v48 = vld [vmem:[#allocation7 + $0xac] ss:$20 sps:$4 sm:$0xff]   ;;  %v5880_v49 = vld [vmem:[#allocation7 + $0xa8] ss:$20 sps:$4 sm:$0xff]  }
 0x14a   :  { %2918 = vmatpush1.bf16.msra.mxu0 %v5799_v50  ;;  %2959 = vmatpush1.bf16.msra.mxu1 %v5802_v52  ;;  %v5885_v50 = vld [vmem:[#allocation7 + $0xa7c] ss:$20 sps:$4 sm:$0xff]   ;;  %v5883_v52 = vld [vmem:[#allocation7 + $0xa78] ss:$20 sps:$4 sm:$0xff]  }
 0x14b   :  { %2919 = vmatprep.subr.bf16.mxu0 %v5807_v53  ;;  %2960 = vmatprep.subr.bf16.mxu1 %v5810_v54  ;;  %v5888_v53 = vld [vmem:[#allocation7 + $0x84] ss:$20 sps:$4 sm:$0xff]   ;;  %v5886_v54 = vld [vmem:[#allocation7 + $0x80] ss:$20 sps:$4 sm:$0xff]  }
 0x14e   :  { %2920 = vmatpush1.bf16.msra.mxu0 %v5805_v55  ;;  %2961 = vmatpush1.bf16.msra.mxu1 %v5808_v56  ;;  %v5891_v55 = vld [vmem:[#allocation7 + $0xa54] ss:$20 sps:$4 sm:$0xff]   ;;  %v5889_v56 = vld [vmem:[#allocation7 + $0xa50] ss:$20 sps:$4 sm:$0xff]  }
 0x14f   :  { %2921 = vmatprep.subr.bf16.mxu0 %v5813_v57  ;;  %2962 = vmatprep.subr.bf16.mxu1 %v5816_v58  ;;  %v5894_v57 = vld [vmem:[#allocation7 + $0x5c] ss:$20 sps:$4 sm:$0xff]   ;;  %v5892_v58 = vld [vmem:[#allocation7 + $0x58] ss:$20 sps:$4 sm:$0xff]  }
 0x152   :  { %2922 = vmatpush2.bf16.msra.mxu0 %v5811_v59  ;;  %2963 = vmatpush2.bf16.msra.mxu1 %v5814_v60  ;;  %v5897_v59 = vld [vmem:[#allocation7 + $0xa2c] ss:$20 sps:$4 sm:$0xff]   ;;  %v5895_v60 = vld [vmem:[#allocation7 + $0xa28] ss:$20 sps:$4 sm:$0xff]  }
 0x153   :  { %2923 = vmatprep.subr.bf16.mxu0 %v5819_v61  ;;  %2964 = vmatprep.subr.bf16.mxu1 %v5822_v62  ;;  %v5900_v61 = vld [vmem:[#allocation7 + $0x34] ss:$20 sps:$4 sm:$0xff]   ;;  %v5898_v62 = vld [vmem:[#allocation7 + $0x30] ss:$20 sps:$4 sm:$0xff]  }
 0x156   :  { %2924 = vmatpush2.bf16.msra.mxu0 %v5817_v63  ;;  %2965 = vmatpush2.bf16.msra.mxu1 %v5820_v0  ;;  %v5903_v63 = vld [vmem:[#allocation7 + $0xa04] ss:$20 sps:$4 sm:$0xff]   ;;  %v5901_v0 = vld [vmem:[#allocation7 + $0xa00] ss:$20 sps:$4 sm:$0xff]  }
 0x157   :  { %2925 = vmatprep.subr.bf16.mxu0 %v5825_v1  ;;  %2966 = vmatprep.subr.bf16.mxu1 %v5828_v2  ;;  %v5906_v1 = vld [vmem:[#allocation7 + $0xc] ss:$20 sps:$4 sm:$0xff]   ;;  %v5904_v2 = vld [vmem:[#allocation7 + $0x8] ss:$20 sps:$4 sm:$0xff]  }
 0x15a   :  { %2926 = vmatpush2.bf16.msra.mxu0 %v5823_v3  ;;  %2967 = vmatpush2.bf16.msra.mxu1 %v5826_v7  ;;  %v5909_v3 = vld [vmem:[#allocation7 + $0xc5c] ss:$20 sps:$4 sm:$0xff]   ;;  %v5907_v7 = vld [vmem:[#allocation7 + $0xc58] ss:$20 sps:$4 sm:$0xff]  }
 0x15b   :  { %2927 = vmatprep.subr.bf16.mxu0 %v5831_v9  ;;  %2968 = vmatprep.subr.bf16.mxu1 %v5834_v10  ;;  %v5912_v9 = vld [vmem:[#allocation7 + $0x264] ss:$20 sps:$4 sm:$0xff]   ;;  %v5910_v10 = vld [vmem:[#allocation7 + $0x260] ss:$20 sps:$4 sm:$0xff]  }
 0x15e   :  { %2928 = vmatpush2.bf16.msra.mxu0 %v5829_v11  ;;  %2969 = vmatpush2.bf16.msra.mxu1 %v5832_v12  ;;  %v5915_v11 = vld [vmem:[#allocation7 + $0xc34] ss:$20 sps:$4 sm:$0xff]   ;;  %v5913_v12 = vld [vmem:[#allocation7 + $0xc30] ss:$20 sps:$4 sm:$0xff]  }
 0x15f   :  { %2929 = vmatprep.subr.bf16.mxu0 %v5837_v13  ;;  %2970 = vmatprep.subr.bf16.mxu1 %v5840_v14  ;;  %v5918_v13 = vld [vmem:[#allocation7 + $0x23c] ss:$20 sps:$4 sm:$0xff]   ;;  %v5916_v14 = vld [vmem:[#allocation7 + $0x238] ss:$20 sps:$4 sm:$0xff]  }
 0x162   :  { %2930 = vmatpush2.bf16.msra.mxu0 %v5835_v5  ;;  %2971 = vmatpush2.bf16.msra.mxu1 %v5838_v15  ;;  %v5921_v5 = vld [vmem:[#allocation7 + $0xc0c] ss:$20 sps:$4 sm:$0xff]   ;;  %v5919_v15 = vld [vmem:[#allocation7 + $0xc08] ss:$20 sps:$4 sm:$0xff]  }
 0x163   :  { %2931 = vmatprep.subr.bf16.mxu0 %v5843_v8  ;;  %2972 = vmatprep.subr.bf16.mxu1 %v5846_v16  ;;  %v5924_v8 = vld [vmem:[#allocation7 + $0x214] ss:$20 sps:$4 sm:$0xff]   ;;  %v5922_v16 = vld [vmem:[#allocation7 + $0x210] ss:$20 sps:$4 sm:$0xff]  }
 0x166   :  { %2932 = vmatpush2.bf16.msra.mxu0 %v5841_v4  ;;  %2973 = vmatpush2.bf16.msra.mxu1 %v5844_v18  ;;  %v5927_v4 = vld [vmem:[#allocation7 + $0xbe4] ss:$20 sps:$4 sm:$0xff]   ;;  %v5925_v18 = vld [vmem:[#allocation7 + $0xbe0] ss:$20 sps:$4 sm:$0xff]  }
 0x167   :  { %2933 = vmatprep.subr.bf16.mxu0 %v5849_v6  ;;  %2974 = vmatprep.subr.bf16.mxu1 %v5852_v19  ;;  %v5930_v6 = vld [vmem:[#allocation7 + $0x1ec] ss:$20 sps:$4 sm:$0xff]   ;;  %v5928_v19 = vld [vmem:[#allocation7 + $0x1e8] ss:$20 sps:$4 sm:$0xff]  }
 0x16a   :  { %2934 = vmatpush2.bf16.msra.mxu0 %v5847_v44  ;;  %2975 = vmatpush2.bf16.msra.mxu1 %v5850_v21  ;;  %v5933_v44 = vld [vmem:[#allocation7 + $0xbbc] ss:$20 sps:$4 sm:$0xff]   ;;  %v5931_v21 = vld [vmem:[#allocation7 + $0xbb8] ss:$20 sps:$4 sm:$0xff]  }
 0x16b   :  { %2935 = vmatprep.subr.bf16.mxu0 %v5855_v27  ;;  %2976 = vmatprep.subr.bf16.mxu1 %v5858_v28  ;;  %v5936_v27 = vld [vmem:[#allocation7 + $0x1c4] ss:$20 sps:$4 sm:$0xff]   ;;  %v5934_v28 = vld [vmem:[#allocation7 + $0x1c0] ss:$20 sps:$4 sm:$0xff]  }
 0x16e   :  { %2936 = vmatpush2.bf16.msra.mxu0 %v5853_v29  ;;  %2977 = vmatpush2.bf16.msra.mxu1 %v5856_v30  ;;  %v5939_v29 = vld [vmem:[#allocation7 + $0xb94] ss:$20 sps:$4 sm:$0xff]   ;;  %v5937_v30 = vld [vmem:[#allocation7 + $0xb90] ss:$20 sps:$4 sm:$0xff]  }
 0x16f   :  { %2987 = vmatprep.subr.bf16.mxu0 %v5861_v31  ;;  %3028 = vmatprep.subr.bf16.mxu1 %v5864_v33  ;;  %v5942_v31 = vld [vmem:[#allocation7 + $0x19c] ss:$20 sps:$4 sm:$0xff]   ;;  %v5940_v33 = vld [vmem:[#allocation7 + $0x198] ss:$20 sps:$4 sm:$0xff]  }
 0x171   :  { %2938 = vmatmul.mubr.bf16.vlgmr.msra.gmra.mxu0 %v6802_v39  ;;  %2979 = vmatmul.mubr.bf16.vlgmr.msra.gmra.mxu1 %v6806_v40 }
 0x172   :  { %2988 = vmatpush1.bf16.msra.mxu0 %v5859_v34  ;;  %3019 = vmatprep.mubr.bf16.mxu0 %v6810_v41  ;;  %v5945_v34 = vld [vmem:[#allocation7 + $0xb6c] ss:$20 sps:$4 sm:$0xff]  }
 0x173   :  { %3029 = vmatpush1.bf16.msra.mxu1 %v5862_v35  ;;  %3060 = vmatprep.mubr.bf16.mxu1 %v6778_v20  ;;  %v5943_v35 = vld [vmem:[#allocation7 + $0xb68] ss:$20 sps:$4 sm:$0xff]  }
 0x174   :  { %2989 = vmatprep.subr.bf16.mxu0 %v5867_v36  ;;  %3030 = vmatprep.subr.bf16.mxu1 %v5870_v37  ;;  %v5948_v36 = vld [vmem:[#allocation7 + $0x174] ss:$20 sps:$4 sm:$0xff]   ;;  %v5946_v37 = vld [vmem:[#allocation7 + $0x170] ss:$20 sps:$4 sm:$0xff]  }
 0x176   :  { %2990 = vmatpush1.bf16.msra.mxu0 %v5865_v42  ;;  %v5951_v42 = vld [vmem:[#allocation7 + $0xb44] ss:$20 sps:$4 sm:$0xff]  }
 0x177   :  { %3031 = vmatpush1.bf16.msra.mxu1 %v5868_v25  ;;  %2991 = vmatprep.subr.bf16.mxu0 %v5873_v38  ;;  %v5949_v25 = vld [vmem:[#allocation7 + $0xb40] ss:$20 sps:$4 sm:$0xff]  }
 0x178   :  { %3032 = vmatprep.subr.bf16.mxu1 %v5876_v43  ;;  %v5954_v38 = vld [vmem:[#allocation7 + $0x14c] ss:$20 sps:$4 sm:$0xff]   ;;  %v5952_v43 = vld [vmem:[#allocation7 + $0x148] ss:$20 sps:$4 sm:$0xff]  }
 0x17a   :  { %2992 = vmatpush1.bf16.msra.mxu0 %v5871_v45  ;;  %v5957_v45 = vld [vmem:[#allocation7 + $0x3a4] ss:$20 sps:$4 sm:$0xff]  }
 0x17b   :  { %3033 = vmatpush1.bf16.msra.mxu1 %v5874_v22  ;;  %2993 = vmatprep.subr.bf16.mxu0 %v5879_v46  ;;  %v5955_v22 = vld [vmem:[#allocation7 + $0x3a0] ss:$20 sps:$4 sm:$0xff]   ;;  %v5960_v46 = vld [vmem:[#allocation7 + $0x624] ss:$20 sps:$4 sm:$0xff]  }
 0x17c   :  { %3034 = vmatprep.subr.bf16.mxu1 %v5882_v48  ;;  %v5963_v48 = vld [vmem:[#allocation7 + $0x37c] ss:$20 sps:$4 sm:$0xff]  }
 0x17e   :  { %2994 = vmatpush1.bf16.msra.mxu0 %v5877_v47  ;;  %v5958_v47 = vld [vmem:[#allocation7 + $0x620] ss:$20 sps:$4 sm:$0xff]  }
 0x17f   :  { %3035 = vmatpush1.bf16.msra.mxu1 %v5880_v49  ;;  %2995 = vmatprep.subr.bf16.mxu0 %v5885_v50  ;;  %v6818_v49 = vpack.c.bf16 %v6790_v23, %v6790_v23  ;;  %v5966_v50 = vld [vmem:[#allocation7 + $0x5fc] ss:$20 sps:$4 sm:$0xff]  }
 0x180   :  { %3036 = vmatprep.subr.bf16.mxu1 %v5888_v53  ;;  %v5964_v53 = vld [vmem:[#allocation7 + $0x5f8] ss:$20 sps:$4 sm:$0xff]   ;;  %v5967_v23 = vld [vmem:[#allocation7 + $0x350] ss:$20 sps:$4 sm:$0xff]  }
 0x182   :  { %2996 = vmatpush1.bf16.msra.mxu0 %v5883_v52  ;;  %v5961_v52 = vld [vmem:[#allocation7 + $0x378] ss:$20 sps:$4 sm:$0xff]  }
 0x183   :  { %3037 = vmatpush1.bf16.msra.mxu1 %v5886_v54  ;;  %2997 = vmatprep.subr.bf16.mxu0 %v5891_v55  ;;  %v5969_v54 = vld [vmem:[#allocation7 + $0x354] ss:$20 sps:$4 sm:$0xff]  }
 0x184   :  { %3038 = vmatprep.subr.bf16.mxu1 %v5894_v57  ;;  %v5972_v55 = vld [vmem:[#allocation7 + $0x5d4] ss:$20 sps:$4 sm:$0xff]   ;;  %v5975_v57 = vld [vmem:[#allocation7 + $0x32c] ss:$20 sps:$4 sm:$0xff]  }
 0x186   :  { %2998 = vmatpush1.bf16.msra.mxu0 %v5889_v56  ;;  %v5970_v56 = vld [vmem:[#allocation7 + $0x5d0] ss:$20 sps:$4 sm:$0xff]  }
 0x187   :  { %3039 = vmatpush1.bf16.msra.mxu1 %v5892_v58  ;;  %2999 = vmatprep.subr.bf16.mxu0 %v5897_v59  ;;  %v5978_v58 = vld [vmem:[#allocation7 + $0x5ac] ss:$20 sps:$4 sm:$0xff]   ;;  %v5973_v59 = vld [vmem:[#allocation7 + $0x328] ss:$20 sps:$4 sm:$0xff]  }
 0x188   :  { %3040 = vmatprep.subr.bf16.mxu1 %v5900_v61  ;;  %v5981_v61 = vld [vmem:[#allocation7 + $0x304] ss:$20 sps:$4 sm:$0xff]  }
 0x18a   :  { %3000 = vmatpush1.bf16.msra.mxu0 %v5895_v60  ;;  %v5976_v60 = vld [vmem:[#allocation7 + $0x5a8] ss:$20 sps:$4 sm:$0xff]  }
 0x18b   :  { %3041 = vmatpush1.bf16.msra.mxu1 %v5898_v62  ;;  %3001 = vmatprep.subr.bf16.mxu0 %v5903_v63  ;;  %v5984_v62 = vld [vmem:[#allocation7 + $0x584] ss:$20 sps:$4 sm:$0xff]   ;;  %v5979_v63 = vld [vmem:[#allocation7 + $0x300] ss:$20 sps:$4 sm:$0xff]  }
 0x18c   :  { %3042 = vmatprep.subr.bf16.mxu1 %v5906_v1  ;;  %v5987_v1 = vld [vmem:[#allocation7 + $0x2dc] ss:$20 sps:$4 sm:$0xff]  }
 0x18e   :  { %3002 = vmatpush1.bf16.msra.mxu0 %v5901_v0  ;;  %v5982_v0 = vld [vmem:[#allocation7 + $0x580] ss:$20 sps:$4 sm:$0xff]  }
 0x18f   :  { %3043 = vmatpush1.bf16.msra.mxu1 %v5904_v2  ;;  %3003 = vmatprep.subr.bf16.mxu0 %v5909_v3  ;;  %v5990_v2 = vld [vmem:[#allocation7 + $0x55c] ss:$20 sps:$4 sm:$0xff]   ;;  %v5985_v3 = vld [vmem:[#allocation7 + $0x2d8] ss:$20 sps:$4 sm:$0xff]  }
 0x190   :  { %3044 = vmatprep.subr.bf16.mxu1 %v5912_v9  ;;  %v5993_v9 = vld [vmem:[#allocation7 + $0x2b4] ss:$20 sps:$4 sm:$0xff]  }
 0x192   :  { %3004 = vmatpush2.bf16.msra.mxu0 %v5907_v7  ;;  %v5988_v7 = vld [vmem:[#allocation7 + $0x558] ss:$20 sps:$4 sm:$0xff]  }
 0x193   :  { %3045 = vmatpush2.bf16.msra.mxu1 %v5910_v10  ;;  %3005 = vmatprep.subr.bf16.mxu0 %v5915_v11  ;;  %v5996_v10 = vld [vmem:[#allocation7 + $0x534] ss:$20 sps:$4 sm:$0xff]   ;;  %v5991_v11 = vld [vmem:[#allocation7 + $0x2b0] ss:$20 sps:$4 sm:$0xff]  }
 0x194   :  { %3046 = vmatprep.subr.bf16.mxu1 %v5918_v13  ;;  %v5999_v13 = vld [vmem:[#allocation7 + $0x28c] ss:$20 sps:$4 sm:$0xff]  }
 0x196   :  { %3006 = vmatpush2.bf16.msra.mxu0 %v5913_v12  ;;  %v5994_v12 = vld [vmem:[#allocation7 + $0x530] ss:$20 sps:$4 sm:$0xff]  }
 0x197   :  { %3047 = vmatpush2.bf16.msra.mxu1 %v5916_v14  ;;  %3007 = vmatprep.subr.bf16.mxu0 %v5921_v5  ;;  %v6002_v14 = vld [vmem:[#allocation7 + $0x50c] ss:$20 sps:$4 sm:$0xff]   ;;  %v5997_v5 = vld [vmem:[#allocation7 + $0x288] ss:$20 sps:$4 sm:$0xff]  }
 0x198   :  { %3048 = vmatprep.subr.bf16.mxu1 %v5924_v8  ;;  %v6005_v8 = vld [vmem:[#allocation7 + $0x4e4] ss:$20 sps:$4 sm:$0xff]  }
 0x19a   :  { %3008 = vmatpush2.bf16.msra.mxu0 %v5919_v15  ;;  %v6000_v15 = vld [vmem:[#allocation7 + $0x508] ss:$20 sps:$4 sm:$0xff]  }
 0x19b   :  { %3049 = vmatpush2.bf16.msra.mxu1 %v5922_v16  ;;  %3009 = vmatprep.subr.bf16.mxu0 %v5927_v4  ;;  %v6008_v16 = vld [vmem:[#allocation7 + $0x764] ss:$20 sps:$4 sm:$0xff]   ;;  %v6003_v4 = vld [vmem:[#allocation7 + $0x4e0] ss:$20 sps:$4 sm:$0xff]  }
 0x19c   :  { %3050 = vmatprep.subr.bf16.mxu1 %v5930_v6  ;;  %v6011_v6 = vld [vmem:[#allocation7 + $0x4bc] ss:$20 sps:$4 sm:$0xff]  }
 0x19e   :  { %3010 = vmatpush2.bf16.msra.mxu0 %v5925_v18  ;;  %v6006_v18 = vld [vmem:[#allocation7 + $0x760] ss:$20 sps:$4 sm:$0xff]  }
 0x19f   :  { %3051 = vmatpush2.bf16.msra.mxu1 %v5928_v19  ;;  %3011 = vmatprep.subr.bf16.mxu0 %v5933_v44  ;;  %v6014_v19 = vld [vmem:[#allocation7 + $0x73c] ss:$20 sps:$4 sm:$0xff]   ;;  %v6009_v44 = vld [vmem:[#allocation7 + $0x4b8] ss:$20 sps:$4 sm:$0xff]  }
 0x1a0   :  { %3052 = vmatprep.subr.bf16.mxu1 %v5936_v27  ;;  %v6017_v27 = vld [vmem:[#allocation7 + $0x494] ss:$20 sps:$4 sm:$0xff]  }
 0x1a2   :  { %3012 = vmatpush2.bf16.msra.mxu0 %v5931_v21  ;;  %v6012_v21 = vld [vmem:[#allocation7 + $0x738] ss:$20 sps:$4 sm:$0xff]  }
 0x1a3   :  { %3053 = vmatpush2.bf16.msra.mxu1 %v5934_v28  ;;  %3013 = vmatprep.subr.bf16.mxu0 %v5939_v29  ;;  %v6020_v28 = vld [vmem:[#allocation7 + $0x714] ss:$20 sps:$4 sm:$0xff]   ;;  %v6015_v29 = vld [vmem:[#allocation7 + $0x490] ss:$20 sps:$4 sm:$0xff]  }
 0x1a4   :  { %3054 = vmatprep.subr.bf16.mxu1 %v5942_v31  ;;  %v6023_v31 = vld [vmem:[#allocation7 + $0x46c] ss:$20 sps:$4 sm:$0xff]  }
 0x1a6   :  { %3014 = vmatpush2.bf16.msra.mxu0 %v5937_v30  ;;  %v6018_v30 = vld [vmem:[#allocation7 + $0x710] ss:$20 sps:$4 sm:$0xff]  }
 0x1a7   :  { %3055 = vmatpush2.bf16.msra.mxu1 %v5940_v33  ;;  %3015 = vmatprep.subr.bf16.mxu0 %v5945_v34  ;;  %v6026_v33 = vld [vmem:[#allocation7 + $0x6ec] ss:$20 sps:$4 sm:$0xff]   ;;  %v6021_v34 = vld [vmem:[#allocation7 + $0x468] ss:$20 sps:$4 sm:$0xff]  }
 0x1a8   :  { %3056 = vmatprep.subr.bf16.mxu1 %v5948_v36  ;;  %v6029_v36 = vld [vmem:[#allocation7 + $0x444] ss:$20 sps:$4 sm:$0xff]  }
 0x1aa   :  { %3016 = vmatpush2.bf16.msra.mxu0 %v5943_v35  ;;  %v6024_v35 = vld [vmem:[#allocation7 + $0x6e8] ss:$20 sps:$4 sm:$0xff]  }
 0x1ab   :  { %3057 = vmatpush2.bf16.msra.mxu1 %v5946_v37  ;;  %3017 = vmatprep.subr.bf16.mxu0 %v5951_v42  ;;  %v6032_v37 = vld [vmem:[#allocation7 + $0x6c4] ss:$20 sps:$4 sm:$0xff]   ;;  %v6027_v42 = vld [vmem:[#allocation7 + $0x440] ss:$20 sps:$4 sm:$0xff]  }
 0x1ac   :  { %3058 = vmatprep.subr.bf16.mxu1 %v5954_v38  ;;  %v6035_v38 = vld [vmem:[#allocation7 + $0x41c] ss:$20 sps:$4 sm:$0xff]  }
 0x1ae   :  { %3018 = vmatpush2.bf16.msra.mxu0 %v5949_v25  ;;  %v6030_v25 = vld [vmem:[#allocation7 + $0x6c0] ss:$20 sps:$4 sm:$0xff]  }
 0x1af   :  { %3059 = vmatpush2.bf16.msra.mxu1 %v5952_v43  ;;  %3069 = vmatprep.subr.bf16.mxu0 %v5957_v45  ;;  %v6038_v43 = vld [vmem:[#allocation7 + $0x69c] ss:$20 sps:$4 sm:$0xff]   ;;  %v6033_v45 = vld [vmem:[#allocation7 + $0x418] ss:$20 sps:$4 sm:$0xff]  }
 0x1b0   :  { %3110 = vmatprep.subr.bf16.mxu1 %v5960_v46  ;;  %v6036_v46 = vld [vmem:[#allocation7 + $0x698] ss:$20 sps:$4 sm:$0xff]  }
 0x1b1   :  { %3020 = vmatmul.mubr.bf16.vlgmr.msra.gmra.mxu0 %v6818_v49 }
 0x1b2   :  { %3061 = vmatmul.mubr.bf16.vlgmr.msra.gmra.mxu1 %v6782_v32  ;;  %3070 = vmatpush1.bf16.msra.mxu0 %v5955_v22  ;;  %v718_v22 = vlaneseq }
 0x1b3   :  { %3101 = vmatprep.mubr.bf16.mxu0 %v6780_v17  ;;  %3111 = vmatpush1.bf16.msra.mxu1 %v5958_v47  ;;  %v6041_v47 = vld [vmem:[#allocation7 + $0x3f4] ss:$20 sps:$4 sm:$0xff]  }
 0x1b4   :  { %3142 = vmatprep.mubr.bf16.mxu1 %v6794_v24  ;;  %3071 = vmatprep.subr.bf16.mxu0 %v5963_v48  ;;  %v6044_v48 = vld [vmem:[#allocation7 + $0x674] ss:$20 sps:$4 sm:$0xff]  }
 0x1b5   :  { %3112 = vmatprep.subr.bf16.mxu1 %v5966_v50  ;;  %v6039_v50 = vld [vmem:[#allocation7 + $0x3f0] ss:$20 sps:$4 sm:$0xff]  }
 0x1b6   :  { %3072 = vmatpush1.bf16.msra.mxu0 %v5961_v52  ;;  %v6824_v52 = vshrl.u32 %v718_v22, 7  ;;  %v6087_v22 = vld [vmem:[#allocation7 + $0x7b0] ss:$20 sps:$4 sm:$0xff]  }
 0x1b7   :  { %3113 = vmatpush1.bf16.msra.mxu1 %v5964_v53  ;;  %3073 = vmatprep.subr.bf16.mxu0 %v5969_v54  ;;  %v6042_v53 = vld [vmem:[#allocation7 + $0x670] ss:$20 sps:$4 sm:$0xff]   ;;  %v6047_v54 = vld [vmem:[#allocation7 + $0x3cc] ss:$20 sps:$4 sm:$0xff]  }
 0x1b8   :  { %3114 = vmatprep.subr.bf16.mxu1 %v5972_v55  ;;  %v6050_v55 = vld [vmem:[#allocation7 + $0x64c] ss:$20 sps:$4 sm:$0xff]  }
 0x1ba   :  { %3074 = vmatpush1.bf16.msra.mxu0 %v5967_v23  ;;  %v6045_v23 = vld [vmem:[#allocation7 + $0x3c8] ss:$20 sps:$4 sm:$0xff]  }
 0x1bb   :  { %3115 = vmatpush1.bf16.msra.mxu1 %v5970_v56  ;;  %3075 = vmatprep.subr.bf16.mxu0 %v5975_v57  ;;  %v720_v56 = vsub.s32 0, %v6824_v52  ;;  %v6048_v57 = vld [vmem:[#allocation7 + $0x648] ss:$20 sps:$4 sm:$0xff]  }
 0x1bc   :  { %3116 = vmatprep.subr.bf16.mxu1 %v5978_v58  ;;  %v6053_v58 = vld [vmem:[#allocation7 + $0x8a4] ss:$20 sps:$4 sm:$0xff]  }
 0x1be   :  { %3076 = vmatpush1.bf16.msra.mxu0 %v5973_v59  ;;  %v6827_v59 = vld [vmem:[#allocation8] sm:$0x1f] }
 0x1bf   :  { %3117 = vmatpush1.bf16.msra.mxu1 %v5976_v60  ;;  %3077 = vmatprep.subr.bf16.mxu0 %v5981_v61  ;;  %v6056_v60 = vld [vmem:[#allocation7 + $0xb24] ss:$20 sps:$4 sm:$0xff]   ;;  %v724_v61 = vsub.s32 1, %v6824_v52 }
 0x1c0   :  { %3118 = vmatprep.subr.bf16.mxu1 %v5984_v62  ;;  %v6051_v62 = vld [vmem:[#allocation7 + $0x8a0] ss:$20 sps:$4 sm:$0xff]  }
 0x1c2   :  { %3078 = vmatpush1.bf16.msra.mxu0 %v5979_v63  ;;  %v721_v63 = vrot.slane %v6827_v59, %v720_v56 }
 0x1c3   :  { %3119 = vmatpush1.bf16.msra.mxu1 %v5982_v0  ;;  %3079 = vmatprep.subr.bf16.mxu0 %v5987_v1  ;;  %v6054_v0 = vld [vmem:[#allocation7 + $0xb20] ss:$20 sps:$4 sm:$0xff]   ;;  %v725_v1 = vrot.slane %v6827_v59, %v724_v61 }
 0x1c4   :  { %3120 = vmatprep.subr.bf16.mxu1 %v5990_v2  ;;  %v6059_v2 = vld [vmem:[#allocation7 + $0x87c] ss:$20 sps:$4 sm:$0xff]  }
 0x1c6   :  { %3080 = vmatpush1.bf16.msra.mxu0 %v5985_v3 }
 0x1c7   :  { %3121 = vmatpush1.bf16.msra.mxu1 %v5988_v7  ;;  %3081 = vmatprep.subr.bf16.mxu0 %v5993_v9  ;;  %v6062_v9 = vld [vmem:[#allocation7 + $0xafc] ss:$20 sps:$4 sm:$0xff]  }
 0x1c8   :  { %3122 = vmatprep.subr.bf16.mxu1 %v5996_v10 }
 0x1ca   :  { %3082 = vmatpush1.bf16.msra.mxu0 %v5991_v11  ;;  %v6057_v11 = vld [vmem:[#allocation7 + $0x878] ss:$20 sps:$4 sm:$0xff]  }
 0x1cb   :  { %3123 = vmatpush1.bf16.msra.mxu1 %v5994_v12  ;;  %3083 = vmatprep.subr.bf16.mxu0 %v5999_v13 }
 0x1cc   :  { %3124 = vmatprep.subr.bf16.mxu1 %v6002_v14  ;;  %v6060_v14 = vld [vmem:[#allocation7 + $0xaf8] ss:$20 sps:$4 sm:$0xff]  }
 0x1ce   :  { %3084 = vmatpush1.bf16.msra.mxu0 %v5997_v5  ;;  %v6065_v5 = vld [vmem:[#allocation7 + $0x854] ss:$20 sps:$4 sm:$0xff]  }
 0x1cf   :  { %3125 = vmatpush1.bf16.msra.mxu1 %v6000_v15  ;;  %3085 = vmatprep.subr.bf16.mxu0 %v6005_v8 }
 0x1d0   :  { %3126 = vmatprep.subr.bf16.mxu1 %v6008_v16  ;;  %v6068_v16 = vld [vmem:[#allocation7 + $0xad4] ss:$20 sps:$4 sm:$0xff]  }
 0x1d2   :  { %3086 = vmatpush2.bf16.msra.mxu0 %v6003_v4 }
 0x1d3   :  { %3127 = vmatpush2.bf16.msra.mxu1 %v6006_v18  ;;  %3087 = vmatprep.subr.bf16.mxu0 %v6011_v6 }
 0x1d4   :  { %3128 = vmatprep.subr.bf16.mxu1 %v6014_v19  ;;  %v6063_v19 = vld [vmem:[#allocation7 + $0x850] ss:$20 sps:$4 sm:$0xff]  }
 0x1d6   :  { %3088 = vmatpush2.bf16.msra.mxu0 %v6009_v44 }
 0x1d7   :  { %3129 = vmatpush2.bf16.msra.mxu1 %v6012_v21  ;;  %3089 = vmatprep.subr.bf16.mxu0 %v6017_v27  ;;  %v6066_v27 = vld [vmem:[#allocation7 + $0xad0] ss:$20 sps:$4 sm:$0xff]  }
 0x1d8   :  { %3130 = vmatprep.subr.bf16.mxu1 %v6020_v28  ;;  %v6071_v28 = vld [vmem:[#allocation7 + $0x82c] ss:$20 sps:$4 sm:$0xff]  }
 0x1da   :  { %3090 = vmatpush2.bf16.msra.mxu0 %v6015_v29  ;;  %v6074_v29 = vld [vmem:[#allocation7 + $0xaac] ss:$20 sps:$4 sm:$0xff]  }
 0x1db   :  { %3131 = vmatpush2.bf16.msra.mxu1 %v6018_v30  ;;  %3091 = vmatprep.subr.bf16.mxu0 %v6023_v31  ;;  %v6069_v30 = vld [vmem:[#allocation7 + $0x828] ss:$20 sps:$4 sm:$0xff]  }
 0x1dc   :  { %3132 = vmatprep.subr.bf16.mxu1 %v6026_v33  ;;  %v6072_v31 = vld [vmem:[#allocation7 + $0xaa8] ss:$20 sps:$4 sm:$0xff]   ;;  %v6077_v33 = vld [vmem:[#allocation7 + $0x804] ss:$20 sps:$4 sm:$0xff]  }
 0x1de   :  { %3092 = vmatpush2.bf16.msra.mxu0 %v6021_v34  ;;  %v6080_v34 = vld [vmem:[#allocation7 + $0xa84] ss:$20 sps:$4 sm:$0xff]  }
 0x1df   :  { %3133 = vmatpush2.bf16.msra.mxu1 %v6024_v35  ;;  %3093 = vmatprep.subr.bf16.mxu0 %v6029_v36  ;;  %v6075_v35 = vld [vmem:[#allocation7 + $0x800] ss:$20 sps:$4 sm:$0xff]  }
 0x1e0   :  { %3134 = vmatprep.subr.bf16.mxu1 %v6032_v37  ;;  %v6078_v36 = vld [vmem:[#allocation7 + $0xa80] ss:$20 sps:$4 sm:$0xff]   ;;  %v6083_v37 = vld [vmem:[#allocation7 + $0x7dc] ss:$20 sps:$4 sm:$0xff]  }
 0x1e2   :  { %3094 = vmatpush2.bf16.msra.mxu0 %v6027_v42  ;;  %v6086_v42 = vld [vmem:[#allocation7 + $0xa5c] ss:$20 sps:$4 sm:$0xff]  }
 0x1e3   :  { %3135 = vmatpush2.bf16.msra.mxu1 %v6030_v25  ;;  %3095 = vmatprep.subr.bf16.mxu0 %v6035_v38  ;;  %v6081_v25 = vld [vmem:[#allocation7 + $0x7d8] ss:$20 sps:$4 sm:$0xff]  }
 0x1e4   :  { %3136 = vmatprep.subr.bf16.mxu1 %v6038_v43  ;;  %v6084_v38 = vld [vmem:[#allocation7 + $0xa58] ss:$20 sps:$4 sm:$0xff]   ;;  %v6089_v43 = vld [vmem:[#allocation7 + $0x7b4] ss:$20 sps:$4 sm:$0xff]  }
 0x1e6   :  { %3096 = vmatpush2.bf16.msra.mxu0 %v6033_v45  ;;  %v6092_v45 = vld [vmem:[#allocation7 + $0xa34] ss:$20 sps:$4 sm:$0xff]  }
 0x1e7   :  { %3137 = vmatpush2.bf16.msra.mxu1 %v6036_v46  ;;  %3097 = vmatprep.subr.bf16.mxu0 %v6041_v47  ;;  %v6090_v46 = vld [vmem:[#allocation7 + $0xa30] ss:$20 sps:$4 sm:$0xff]   ;;  %v6095_v47 = vld [vmem:[#allocation7 + $0x78c] ss:$20 sps:$4 sm:$0xff]  }
 0x1e8   :  { %3138 = vmatprep.subr.bf16.mxu1 %v6044_v48  ;;  %v6098_v48 = vld [vmem:[#allocation7 + $0xa0c] ss:$20 sps:$4 sm:$0xff]  }
 0x1ea   :  { %3098 = vmatpush2.bf16.msra.mxu0 %v6039_v50  ;;  %v6093_v50 = vld [vmem:[#allocation7 + $0x788] ss:$20 sps:$4 sm:$0xff]  }
 0x1eb   :  { %3139 = vmatpush2.bf16.msra.mxu1 %v6042_v53  ;;  %3099 = vmatprep.subr.bf16.mxu0 %v6047_v54  ;;  %v6096_v53 = vld [vmem:[#allocation7 + $0xa08] ss:$20 sps:$4 sm:$0xff]   ;;  %v6101_v54 = vld [vmem:[#allocation7 + $0x9e4] ss:$20 sps:$4 sm:$0xff]  }
 0x1ec   :  { %3140 = vmatprep.subr.bf16.mxu1 %v6050_v55  ;;  %v6104_v55 = vld [vmem:[#allocation7 + $0xc64] ss:$20 sps:$4 sm:$0xff]  }
 0x1ee   :  { %3100 = vmatpush2.bf16.msra.mxu0 %v6045_v23  ;;  %v6099_v23 = vld [vmem:[#allocation7 + $0x9e0] ss:$20 sps:$4 sm:$0xff]  }
 0x1ef   :  { %3141 = vmatpush2.bf16.msra.mxu1 %v6048_v57  ;;  %3151 = vmatprep.subr.bf16.mxu0 %v6053_v58  ;;  %v6102_v57 = vld [vmem:[#allocation7 + $0xc60] ss:$20 sps:$4 sm:$0xff]   ;;  %v6107_v58 = vld [vmem:[#allocation7 + $0x9bc] ss:$20 sps:$4 sm:$0xff]  }
 0x1f0   :  { %3192 = vmatprep.subr.bf16.mxu1 %v6056_v60  ;;  %v6110_v60 = vld [vmem:[#allocation7 + $0xc3c] ss:$20 sps:$4 sm:$0xff]  }
 0x1f1   :  { %3102 = vmatmul.mubr.bf16.vlgmr.msra.gmra.mxu0 %v6784_v51  ;;  %v2857_v3 = vpop.f32.mrf.mxu0  ;;  %v2898_v7 = vpop.f32.mrf.mxu1 }
 0x1f2   :  { %3143 = vmatmul.mubr.bf16.vlgmr.msra.gmra.mxu1 %v6802_v39  ;;  %v2858_v10 = vadd.f32 %v2857_v3, %v721_v63  ;;  %3152 = vmatpush1.bf16.msra.mxu0 %v6051_v62  ;;  %v6105_v62 = vld [vmem:[#allocation7 + $0x9b8] ss:$20 sps:$4 sm:$0xff]   ;;  %v6114_v3 = vld [vmem:[#allocation7 + $0xc10] ss:$20 sps:$4 sm:$0xff]  }
 0x1f3   :  { %3183 = vmatprep.mubr.bf16.mxu0 %v6796_v26  ;;  %3193 = vmatpush1.bf16.msra.mxu1 %v6054_v0  ;;  %v2859_v12 = vpop.f32.mrf.mxu0  ;;  %v2900_v13 = vpop.f32.mrf.mxu1  ;;  %v6108_v63 = vld [vmem:[#allocation7 + $0xc38] ss:$20 sps:$4 sm:$0xff]   ;;  %v6113_v0 = vld [vmem:[#allocation7 + $0x994] ss:$20 sps:$4 sm:$0xff]  }
 0x1f4   :  { %v6839_v15 = vadd.f32 %v2898_v7, %v2858_v10  ;;  %3224 = vmatprep.mubr.bf16.mxu1 %v6810_v41  ;;  %v2860_v8 = vadd.f32 %v2859_v12, %v725_v1  ;;  %3153 = vmatprep.subr.bf16.mxu0 %v6059_v2  ;;  %v6116_v1 = vld [vmem:[#allocation7 + $0xc14] ss:$20 sps:$4 sm:$0xff]   ;;  %v6111_v2 = vld [vmem:[#allocation7 + $0x990] ss:$20 sps:$4 sm:$0xff]   ;;  %v6119_v7 = vld [vmem:[#allocation7 + $0x96c] ss:$20 sps:$4 sm:$0xff]  }
 0x1f5   :  { %3194 = vmatprep.subr.bf16.mxu1 %v6062_v9  ;;  %v2861_v4 = vpop.f32.mrf.mxu0  ;;  %v2902_v18 = vpop.f32.mrf.mxu1  ;;  %v6122_v9 = vld [vmem:[#allocation7 + $0xbec] ss:$20 sps:$4 sm:$0xff]   ;;  %v6117_v10 = vld [vmem:[#allocation7 + $0x968] ss:$20 sps:$4 sm:$0xff]   ;;  %v6125_v12 = vld [vmem:[#allocation7 + $0x944] ss:$20 sps:$4 sm:$0xff]  }
 0x1f6   :  { %v6842_v6 = vadd.f32 %v2900_v13, %v2860_v8  ;;  %3154 = vmatpush1.bf16.msra.mxu0 %v6057_v11  ;;  %v6120_v11 = vld [vmem:[#allocation7 + $0xbe8] ss:$20 sps:$4 sm:$0xff]   ;;  %v6128_v13 = vld [vmem:[#allocation7 + $0xbc4] ss:$20 sps:$4 sm:$0xff]  }
 0x1f7   :  { %3195 = vmatpush1.bf16.msra.mxu1 %v6060_v14  ;;  %v2862_v44 = vpop.f32.mrf.mxu0  ;;  %v2903_v21 = vpop.f32.mrf.mxu1  ;;  %3155 = vmatprep.subr.bf16.mxu0 %v6065_v5  ;;  %v6123_v14 = vld [vmem:[#allocation7 + $0x940] ss:$20 sps:$4 sm:$0xff]   ;;  %v6131_v8 = vld [vmem:[#allocation7 + $0x91c] ss:$20 sps:$4 sm:$0xff]   ;;  %v6129_v4 = vld [vmem:[#allocation7 + $0x918] ss:$20 sps:$4 sm:$0xff]  }
 0x1f8   :  { %3196 = vmatprep.subr.bf16.mxu1 %v6068_v16  ;;  %v6126_v5 = vld [vmem:[#allocation7 + $0xbc0] ss:$20 sps:$4 sm:$0xff]   ;;  %v6134_v16 = vld [vmem:[#allocation7 + $0xb9c] ss:$20 sps:$4 sm:$0xff]   ;;  %v6132_v18 = vld [vmem:[#allocation7 + $0xb98] ss:$20 sps:$4 sm:$0xff]  }
 0x1f9   :  { %v6140_v44 = vld [vmem:[#allocation7 + $0xb74] ss:$20 sps:$4 sm:$0xff]   ;;  %v6135_v21 = vld [vmem:[#allocation7 + $0x8f0] ss:$20 sps:$4 sm:$0xff]  }
 0x1fa   :  { %3156 = vmatpush1.bf16.msra.mxu0 %v6063_v19  ;;  %v6137_v19 = vld [vmem:[#allocation7 + $0x8f4] ss:$20 sps:$4 sm:$0xff]  }
 0x1fb   :  { %3197 = vmatpush1.bf16.msra.mxu1 %v6066_v27  ;;  %3157 = vmatprep.subr.bf16.mxu0 %v6071_v28  ;;  %v6138_v27 = vld [vmem:[#allocation7 + $0xb70] ss:$20 sps:$4 sm:$0xff]   ;;  %v6143_v28 = vld [vmem:[#allocation7 + $0x8cc] ss:$20 sps:$4 sm:$0xff]  }
 0x1fc   :  { %3198 = vmatprep.subr.bf16.mxu1 %v6074_v29  ;;  %v6146_v29 = vld [vmem:[#allocation7 + $0xb4c] ss:$20 sps:$4 sm:$0xff]  }
 0x1fe   :  { %3158 = vmatpush1.bf16.msra.mxu0 %v6069_v30  ;;  %v6141_v30 = vld [vmem:[#allocation7 + $0x8c8] ss:$20 sps:$4 sm:$0xff]  }
 0x1ff   :  { %3199 = vmatpush1.bf16.msra.mxu1 %v6072_v31  ;;  %3159 = vmatprep.subr.bf16.mxu0 %v6077_v33  ;;  %v6144_v31 = vld [vmem:[#allocation7 + $0xb48] ss:$20 sps:$4 sm:$0xff]  }
 0x200   :  { %3200 = vmatprep.subr.bf16.mxu1 %v6080_v34  ;;  %v6147_v33 = vld [vmem:[#allocation7 + $0x268] ss:$20 sps:$4 sm:$0xff]  }
 0x201   :  { %v6148_v34 = vld [vmem:[#allocation7 + $0x4e8] ss:$20 sps:$4 sm:$0xff]  }
 0x202   :  { %3160 = vmatpush1.bf16.msra.mxu0 %v6075_v35  ;;  %v6149_v35 = vld [vmem:[#allocation7 + $0x128] ss:$20 sps:$4 sm:$0xff]  }
 0x203   :  { %3201 = vmatpush1.bf16.msra.mxu1 %v6078_v36  ;;  %3161 = vmatprep.subr.bf16.mxu0 %v6083_v37  ;;  %v6150_v36 = vld [vmem:[#allocation7 + $0x3a8] ss:$20 sps:$4 sm:$0xff]   ;;  %v6151_v37 = vld [vmem:[#allocation7 + $0x240] ss:$20 sps:$4 sm:$0xff]  }
 0x204   :  { %3202 = vmatprep.subr.bf16.mxu1 %v6086_v42 }
 0x206   :  { %3162 = vmatpush1.bf16.msra.mxu0 %v6081_v25 }
 0x207   :  { %3203 = vmatpush1.bf16.msra.mxu1 %v6084_v38  ;;  %3163 = vmatprep.subr.bf16.mxu0 %v6089_v43  ;;  %v6152_v38 = vld [vmem:[#allocation7 + $0x4c0] ss:$20 sps:$4 sm:$0xff]  }
 0x208   :  { %3204 = vmatprep.subr.bf16.mxu1 %v6092_v45  ;;  %v6153_v45 = vld [vmem:[#allocation7 + $0x100] ss:$20 sps:$4 sm:$0xff]  }
 0x20a   :  { %3164 = vmatpush1.bf16.msra.mxu0 %v6087_v22 }
 0x20b   :  { %3205 = vmatpush1.bf16.msra.mxu1 %v6090_v46  ;;  %3165 = vmatprep.subr.bf16.mxu0 %v6095_v47  ;;  %v6154_v47 = vld [vmem:[#allocation7 + $0x380] ss:$20 sps:$4 sm:$0xff]  }
 0x20c   :  { %3206 = vmatprep.subr.bf16.mxu1 %v6098_v48  ;;  %v6155_v48 = vld [vmem:[#allocation7 + $0x218] ss:$20 sps:$4 sm:$0xff]  }
 0x20e   :  { %3166 = vmatpush1.bf16.msra.mxu0 %v6093_v50 }
 0x20f   :  { %3207 = vmatpush1.bf16.msra.mxu1 %v6096_v53  ;;  %3167 = vmatprep.subr.bf16.mxu0 %v6101_v54  ;;  %v6156_v53 = vld [vmem:[#allocation7 + $0x498] ss:$20 sps:$4 sm:$0xff]  }
 0x210   :  { %3208 = vmatprep.subr.bf16.mxu1 %v6104_v55  ;;  %v6157_v55 = vld [vmem:[#allocation7 + $0xd8] ss:$20 sps:$4 sm:$0xff]  }
 0x212   :  { %3168 = vmatpush2.bf16.msra.mxu0 %v6099_v23 }
 0x213   :  { %3209 = vmatpush2.bf16.msra.mxu1 %v6102_v57  ;;  %3169 = vmatprep.subr.bf16.mxu0 %v6107_v58  ;;  %v6158_v57 = vld [vmem:[#allocation7 + $0x358] ss:$20 sps:$4 sm:$0xff]   ;;  %v6159_v58 = vld [vmem:[#allocation7 + $0x1f0] ss:$20 sps:$4 sm:$0xff]  }
 0x214   :  { %3210 = vmatprep.subr.bf16.mxu1 %v6110_v60  ;;  %v6160_v60 = vld [vmem:[#allocation7 + $0x470] ss:$20 sps:$4 sm:$0xff]  }
 0x216   :  { %3170 = vmatpush2.bf16.msra.mxu0 %v6105_v62  ;;  %v6161_v62 = vld [vmem:[#allocation7 + $0xb0] ss:$20 sps:$4 sm:$0xff]  }
 0x217   :  { %3211 = vmatpush2.bf16.msra.mxu1 %v6108_v63  ;;  %3171 = vmatprep.subr.bf16.mxu0 %v6113_v0  ;;  %v6163_v63 = vld [vmem:[#allocation7 + $0x1c8] ss:$20 sps:$4 sm:$0xff]  }
 0x218   :  { %3212 = vmatprep.subr.bf16.mxu1 %v6116_v1  ;;  %v6164_v0 = vld [vmem:[#allocation7 + $0x448] ss:$20 sps:$4 sm:$0xff]  }
 0x219   :  { %v6165_v1 = vld [vmem:[#allocation7 + $0x88] ss:$20 sps:$4 sm:$0xff]  }
 0x21a   :  { %3172 = vmatpush2.bf16.msra.mxu0 %v6111_v2  ;;  %v6166_v2 = vld [vmem:[#allocation7 + $0x308] ss:$20 sps:$4 sm:$0xff]  }
 0x21b   :  { %3213 = vmatpush2.bf16.msra.mxu1 %v6114_v3  ;;  %3173 = vmatprep.subr.bf16.mxu0 %v6119_v7  ;;  %v6167_v3 = vld [vmem:[#allocation7 + $0x1a0] ss:$20 sps:$4 sm:$0xff]  }
 0x21c   :  { %3214 = vmatprep.subr.bf16.mxu1 %v6122_v9  ;;  %v6168_v7 = vld [vmem:[#allocation7 + $0x420] ss:$20 sps:$4 sm:$0xff]  }
 0x21d   :  { %v6169_v9 = vld [vmem:[#allocation7 + $0x60] ss:$20 sps:$4 sm:$0xff]  }
 0x21e   :  { %3174 = vmatpush2.bf16.msra.mxu0 %v6117_v10  ;;  %v6170_v10 = vld [vmem:[#allocation7 + $0x2e0] ss:$20 sps:$4 sm:$0xff]  }
 0x21f   :  { %3215 = vmatpush2.bf16.msra.mxu1 %v6120_v11  ;;  %3175 = vmatprep.subr.bf16.mxu0 %v6125_v12  ;;  %v6171_v11 = vld [vmem:[#allocation7 + $0x178] ss:$20 sps:$4 sm:$0xff]  }
 0x220   :  { %3216 = vmatprep.subr.bf16.mxu1 %v6128_v13  ;;  %v6172_v12 = vld [vmem:[#allocation7 + $0x3f8] ss:$20 sps:$4 sm:$0xff]  }
 0x221   :  { %v6173_v13 = vld [vmem:[#allocation7 + $0x38] ss:$20 sps:$4 sm:$0xff]  }
 0x222   :  { %3176 = vmatpush2.bf16.msra.mxu0 %v6123_v14  ;;  %v6174_v14 = vld [vmem:[#allocation7 + $0x2b8] ss:$20 sps:$4 sm:$0xff]  }
 0x223   :  { %3217 = vmatpush2.bf16.msra.mxu1 %v6126_v5  ;;  %3177 = vmatprep.subr.bf16.mxu0 %v6131_v8  ;;  %v6175_v5 = vld [vmem:[#allocation7 + $0x150] ss:$20 sps:$4 sm:$0xff]  }
 0x224   :  { %3218 = vmatprep.subr.bf16.mxu1 %v6134_v16  ;;  %v6176_v8 = vld [vmem:[#allocation7 + $0x3d0] ss:$20 sps:$4 sm:$0xff]  }
 0x225   :  { %v6177_v16 = vld [vmem:[#allocation7 + $0x10] ss:$20 sps:$4 sm:$0xff]  }
 0x226   :  { %3178 = vmatpush2.bf16.msra.mxu0 %v6129_v4  ;;  %v6178_v4 = vld [vmem:[#allocation7 + $0x290] ss:$20 sps:$4 sm:$0xff]  }
 0x227   :  { %3219 = vmatpush2.bf16.msra.mxu1 %v6132_v18  ;;  %3179 = vmatprep.subr.bf16.mxu0 %v6137_v19  ;;  %v6179_v18 = vld [vmem:[#allocation7 + $0x768] ss:$20 sps:$4 sm:$0xff]  }
 0x228   :  { %3220 = vmatprep.subr.bf16.mxu1 %v6140_v44  ;;  %v6180_v19 = vld [vmem:[#allocation7 + $0x9e8] ss:$20 sps:$4 sm:$0xff]  }
 0x229   :  { %v6181_v44 = vld [vmem:[#allocation7 + $0x628] ss:$20 sps:$4 sm:$0xff]  }
 0x22a   :  { %3180 = vmatpush2.bf16.msra.mxu0 %v6135_v21  ;;  %v6182_v21 = vld [vmem:[#allocation7 + $0x8a8] ss:$20 sps:$4 sm:$0xff]  }
 0x22b   :  { %3221 = vmatpush2.bf16.msra.mxu1 %v6138_v27  ;;  %3181 = vmatprep.subr.bf16.mxu0 %v6143_v28  ;;  %v6183_v27 = vld [vmem:[#allocation7 + $0x740] ss:$20 sps:$4 sm:$0xff]  }
 0x22c   :  { %3222 = vmatprep.subr.bf16.mxu1 %v6146_v29  ;;  %v6184_v28 = vld [vmem:[#allocation7 + $0x9c0] ss:$20 sps:$4 sm:$0xff]  }
 0x22d   :  { %v6185_v29 = vld [vmem:[#allocation7 + $0x600] ss:$20 sps:$4 sm:$0xff]  }
 0x22e   :  { %3182 = vmatpush2.bf16.msra.mxu0 %v6141_v30  ;;  %v6186_v30 = vld [vmem:[#allocation7 + $0x880] ss:$20 sps:$4 sm:$0xff]  }
 0x22f   :  { %3223 = vmatpush2.bf16.msra.mxu1 %v6144_v31  ;;  %5418 = vmatprep.subr.bf16.mxu0 %v6147_v33  ;;  %v6187_v31 = vld [vmem:[#allocation7 + $0x718] ss:$20 sps:$4 sm:$0xff]  }
 0x230   :  { %5440 = vmatprep.subr.bf16.mxu1 %v6148_v34  ;;  %v6188_v33 = vld [vmem:[#allocation7 + $0x998] ss:$20 sps:$4 sm:$0xff]  }
 0x231   :  { %v2939_v42 = vpop.f32.mrf.mxu0  ;;  %v2980_v25 = vpop.f32.mrf.mxu1  ;;  %3184 = vmatmul.mubr.bf16.vlgmr.msra.gmra.mxu0 %v6806_v40  ;;  %v6189_v34 = vld [vmem:[#allocation7 + $0x5d8] ss:$20 sps:$4 sm:$0xff]  }
 0x232   :  { %v2940_v43 = vadd.f32 %v2939_v42, %v6839_v15  ;;  %3225 = vmatmul.mubr.bf16.vlgmr.msra.gmra.mxu1 %v6818_v49  ;;  %5419 = vmatpush3.bf16.msra.mxu0 %v6149_v35  ;;  %v6191_v35 = vld [vmem:[#allocation7 + $0x6f0] ss:$20 sps:$4 sm:$0xff]   ;;  %v6196_v42 = vld [vmem:[#allocation7 + $0x948] ss:$20 sps:$4 sm:$0xff]  }
 0x233   :  { %3265 = vmatprep.mubr.bf16.mxu0 %v6778_v20  ;;  %5441 = vmatpush3.bf16.msra.mxu1 %v6150_v36  ;;  %v6848_v22 = vpop.f32.mrf.mxu0  ;;  %v6850_v46 = vpop.f32.mrf.mxu1  ;;  %v6193_v36 = vld [vmem:[#allocation7 + $0x5b0] ss:$20 sps:$4 sm:$0xff]  }
 0x234   :  { %v6852_v50 = vadd.f32 %v2980_v25, %v2940_v43  ;;  %3305 = vmatprep.mubr.bf16.mxu1 %v6780_v17  ;;  %5420 = vmatprep.subr.bf16.mxu0 %v6151_v37  ;;  %v6162_v17 = vld [vmem:[#allocation7 + $0x330] ss:$20 sps:$4 sm:$0xff]   ;;  %v6195_v37 = vld [vmem:[#allocation7 + $0x6c8] ss:$20 sps:$4 sm:$0xff]   ;;  %v6200_v43 = vld [vmem:[#allocation7 + $0x920] ss:$20 sps:$4 sm:$0xff]  }
 0x235   :  { %v2943_v15 = vpop.f32.mrf.mxu0  ;;  %v2984_v54 = vpop.f32.mrf.mxu1  ;;  %5442 = vmatprep.subr.bf16.mxu1 %v6152_v38  ;;  %v6198_v25 = vld [vmem:[#allocation7 + $0x808] ss:$20 sps:$4 sm:$0xff]   ;;  %v6199_v38 = vld [vmem:[#allocation7 + $0x6a0] ss:$20 sps:$4 sm:$0xff]  }
 0x236   :  { %5421 = vmatpush3.bf16.msra.mxu0 %v6153_v45  ;;  %v6201_v45 = vld [vmem:[#allocation7 + $0x560] ss:$20 sps:$4 sm:$0xff]   ;;  %v6205_v15 = vld [vmem:[#allocation7 + $0x538] ss:$20 sps:$4 sm:$0xff]  }
 0x237   :  { %5443 = vmatpush3.bf16.msra.mxu1 %v6154_v47  ;;  %v2944_v20 = vpop.f32.mrf.mxu0  ;;  %v2985_v23 = vpop.f32.mrf.mxu1  ;;  %5422 = vmatprep.subr.bf16.mxu0 %v6155_v48  ;;  %v6202_v47 = vld [vmem:[#allocation7 + $0x7e0] ss:$20 sps:$4 sm:$0xff]   ;;  %v6203_v48 = vld [vmem:[#allocation7 + $0x678] ss:$20 sps:$4 sm:$0xff]  }
 0x238   :  { %5444 = vmatprep.subr.bf16.mxu1 %v6156_v53  ;;  %v6204_v53 = vld [vmem:[#allocation7 + $0x8f8] ss:$20 sps:$4 sm:$0xff]   ;;  %v6208_v20 = vld [vmem:[#allocation7 + $0x8d0] ss:$20 sps:$4 sm:$0xff]  }
 0x239   :  { %v6206_v54 = vld [vmem:[#allocation7 + $0x7b8] ss:$20 sps:$4 sm:$0xff]   ;;  %v6209_v23 = vld [vmem:[#allocation7 + $0x510] ss:$20 sps:$4 sm:$0xff]  }
 0x23a   :  { %5423 = vmatpush3.bf16.msra.mxu0 %v6157_v55  ;;  %v6207_v55 = vld [vmem:[#allocation7 + $0x650] ss:$20 sps:$4 sm:$0xff]  }
 0x23b   :  { %5445 = vmatpush3.bf16.msra.mxu1 %v6158_v57  ;;  %5424 = vmatprep.subr.bf16.mxu0 %v6159_v58  ;;  %v6210_v57 = vld [vmem:[#allocation7 + $0x790] ss:$20 sps:$4 sm:$0xff]   ;;  %v6211_v58 = vld [vmem:[#allocation7 + $0xc68] ss:$20 sps:$4 sm:$0xff]  }
 0x23c   :  { %5446 = vmatprep.subr.bf16.mxu1 %v6160_v60  ;;  %v6214_v60 = vld [vmem:[%s7304_s4 + $0xac] ss:$12 sps:$4 sm:$0xff]  }
 0x23e   :  { %5425 = vmatpush3.bf16.msra.mxu0 %v6161_v62  ;;  %v2942_v62 = vadd.f32 %v6848_v22, %v6842_v6 }
 0x23f   :  { %5447 = vmatpush3.bf16.msra.mxu1 %v6162_v17  ;;  %5426 = vmatprep.subr.bf16.mxu0 %v6163_v63  ;;  %v6215_v17 = vld [vmem:[#allocation7 + $0xb28] ss:$20 sps:$4 sm:$0xff]   ;;  %v6212_v63 = vld [vmem:[%s7304_s4 + $0xa8] ss:$12 sps:$4 sm:$0xff]  }
 0x240   :  { %5448 = vmatprep.subr.bf16.mxu1 %v6164_v0  ;;  %v6216_v0 = vld [vmem:[#allocation7 + $0xc40] ss:$20 sps:$4 sm:$0xff]   ;;  %v2983_v6 = vadd.f32 %v6850_v46, %v2942_v62  ;;  %v6260_v62 = vld [vmem:[%s7304_s4 + $0x120] ss:$12 sps:$4 sm:$0xff]  }
 0x242   :  { %5427 = vmatpush3.bf16.msra.mxu0 %v6165_v1  ;;  %v6219_v1 = vld [vmem:[%s7304_s4 + $0x94] ss:$12 sps:$4 sm:$0xff]  }
 0x243   :  { %5449 = vmatpush3.bf16.msra.mxu1 %v6166_v2  ;;  %5428 = vmatprep.subr.bf16.mxu0 %v6167_v3  ;;  %v6220_v3 = vld [vmem:[#allocation7 + $0xb00] ss:$20 sps:$4 sm:$0xff]  }
 0x244   :  { %5450 = vmatprep.subr.bf16.mxu1 %v6168_v7 }
 0x246   :  { %5429 = vmatpush3.bf16.msra.mxu0 %v6169_v9  ;;  %v6217_v9 = vld [vmem:[%s7304_s4 + $0x90] ss:$12 sps:$4 sm:$0xff]  }
 0x247   :  { %5451 = vmatpush3.bf16.msra.mxu1 %v6170_v10  ;;  %5430 = vmatprep.subr.bf16.mxu0 %v6171_v11  ;;  %v6221_v10 = vld [vmem:[#allocation7 + $0xc18] ss:$20 sps:$4 sm:$0xff]  }
 0x248   :  { %5452 = vmatprep.subr.bf16.mxu1 %v6172_v12 }
 0x24a   :  { %5431 = vmatpush3.bf16.msra.mxu0 %v6173_v13  ;;  %v6225_v13 = vld [vmem:[#allocation7 + $0xad8] ss:$20 sps:$4 sm:$0xff]  }
 0x24b   :  { %5453 = vmatpush3.bf16.msra.mxu1 %v6174_v14  ;;  %5432 = vmatprep.subr.bf16.mxu0 %v6175_v5  ;;  %v6222_v5 = vld [vmem:[%s7304_s4 + $0x78] ss:$12 sps:$4 sm:$0xff]  }
 0x24c   :  { %5454 = vmatprep.subr.bf16.mxu1 %v6176_v8 }
 0x24e   :  { %5433 = vmatpush3.bf16.msra.mxu0 %v6177_v16 }
 0x24f   :  { %5455 = vmatpush3.bf16.msra.mxu1 %v6178_v4  ;;  %5462 = vmatprep.subr.bf16.mxu0 %v6179_v18  ;;  %v6226_v4 = vld [vmem:[#allocation7 + $0xbf0] ss:$20 sps:$4 sm:$0xff]  }
 0x250   :  { %5484 = vmatprep.subr.bf16.mxu1 %v6180_v19  ;;  %v6229_v18 = vld [vmem:[%s7304_s4 + $0x64] ss:$12 sps:$4 sm:$0xff]  }
 0x251   :  { %3266 = vmatmul.mubr.bf16.vlgmr.msra.gmra.mxu0 %v6782_v32  ;;  %v6190_v32 = vld [vmem:[#allocation7 + $0x858] ss:$20 sps:$4 sm:$0xff]  }
 0x252   :  { %3306 = vmatmul.mubr.bf16.vlgmr.msra.gmra.mxu1 %v6784_v51  ;;  %5463 = vmatpush3.bf16.msra.mxu0 %v6181_v44  ;;  %v6192_v51 = vld [vmem:[#allocation7 + $0x970] ss:$20 sps:$4 sm:$0xff]  }
 0x253   :  { %3345 = vmatprep.mubr.bf16.mxu0 %v6794_v24  ;;  %5485 = vmatpush3.bf16.msra.mxu1 %v6182_v21  ;;  %v6194_v24 = vld [vmem:[#allocation7 + $0x830] ss:$20 sps:$4 sm:$0xff]  }
 0x254   :  { %3385 = vmatprep.mubr.bf16.mxu1 %v6796_v26  ;;  %5464 = vmatprep.subr.bf16.mxu0 %v6183_v27  ;;  %v6197_v26 = vld [vmem:[#allocation7 + $0x588] ss:$20 sps:$4 sm:$0xff]   ;;  %v6230_v44 = vld [vmem:[#allocation7 + $0xab0] ss:$20 sps:$4 sm:$0xff]  }
 0x255   :  { %5486 = vmatprep.subr.bf16.mxu1 %v6184_v28  ;;  %v6227_v21 = vld [vmem:[%s7304_s4 + $0x60] ss:$12 sps:$4 sm:$0xff]  }
 0x256   :  { %5465 = vmatpush3.bf16.msra.mxu0 %v6185_v29  ;;  %v6231_v27 = vld [vmem:[#allocation7 + $0xbc8] ss:$20 sps:$4 sm:$0xff]  }
 0x257   :  { %5487 = vmatpush3.bf16.msra.mxu1 %v6186_v30  ;;  %5466 = vmatprep.subr.bf16.mxu0 %v6187_v31  ;;  %v6234_v28 = vld [vmem:[%s7304_s4 + $0x4c] ss:$12 sps:$4 sm:$0xff]   ;;  %v6232_v30 = vld [vmem:[%s7304_s4 + $0x48] ss:$12 sps:$4 sm:$0xff]  }
 0x258   :  { %5488 = vmatprep.subr.bf16.mxu1 %v6188_v33  ;;  %v6235_v29 = vld [vmem:[#allocation7 + $0xa88] ss:$20 sps:$4 sm:$0xff]   ;;  %v6236_v31 = vld [vmem:[#allocation7 + $0xba0] ss:$20 sps:$4 sm:$0xff]  }
 0x259   :  { %v6239_v33 = vld [vmem:[%s7304_s4 + $0x34] ss:$12 sps:$4 sm:$0xff]  }
 0x25a   :  { %5467 = vmatpush3.bf16.msra.mxu0 %v6189_v34  ;;  %v6240_v34 = vld [vmem:[#allocation7 + $0xa60] ss:$20 sps:$4 sm:$0xff]  }
 0x25b   :  { %5489 = vmatpush3.bf16.msra.mxu1 %v6190_v32  ;;  %5468 = vmatprep.subr.bf16.mxu0 %v6191_v35  ;;  %v6237_v32 = vld [vmem:[%s7304_s4 + $0x30] ss:$12 sps:$4 sm:$0xff]  }
 0x25c   :  { %5490 = vmatprep.subr.bf16.mxu1 %v6192_v51  ;;  %v6241_v35 = vld [vmem:[#allocation7 + $0xb78] ss:$20 sps:$4 sm:$0xff]  }
 0x25d   :  { %v6244_v51 = vld [vmem:[%s7304_s4 + $0x1c] ss:$12 sps:$4 sm:$0xff]  }
 0x25e   :  { %5469 = vmatpush3.bf16.msra.mxu0 %v6193_v36  ;;  %v6245_v36 = vld [vmem:[#allocation7 + $0xa38] ss:$20 sps:$4 sm:$0xff]  }
 0x25f   :  { %5491 = vmatpush3.bf16.msra.mxu1 %v6194_v24  ;;  %5470 = vmatprep.subr.bf16.mxu0 %v6195_v37  ;;  %v6242_v24 = vld [vmem:[%s7304_s4 + $0x18] ss:$12 sps:$4 sm:$0xff]  }
 0x260   :  { %5492 = vmatprep.subr.bf16.mxu1 %v6196_v42  ;;  %v6246_v37 = vld [vmem:[#allocation7 + $0xb50] ss:$20 sps:$4 sm:$0xff]  }
 0x261   :  { %v6249_v42 = vld [vmem:[%s7304_s4 + $0x4] ss:$12 sps:$4 sm:$0xff]  }
 0x262   :  { %5471 = vmatpush3.bf16.msra.mxu0 %v6197_v26  ;;  %v6250_v26 = vld [vmem:[#allocation7 + $0xa10] ss:$20 sps:$4 sm:$0xff]  }
 0x263   :  { %5493 = vmatpush3.bf16.msra.mxu1 %v6198_v25  ;;  %5472 = vmatprep.subr.bf16.mxu0 %v6199_v38  ;;  %v6247_v25 = vld [vmem:[%s7304_s4] ss:$12 sps:$4 sm:$0xff]  }
 0x264   :  { %5494 = vmatprep.subr.bf16.mxu1 %v6200_v43  ;;  %v6277_v38 = vld [vmem:[%s7304_s4 + $0x22c] ss:$12 sps:$4 sm:$0xff]  }
 0x265   :  { %v6253_v43 = vld [vmem:[%s7304_s4 + $0x16c] ss:$12 sps:$4 sm:$0xff]  }
 0x266   :  { %5473 = vmatpush3.bf16.msra.mxu0 %v6201_v45  ;;  %v6275_v45 = vld [vmem:[%s7304_s4 + $0x228] ss:$12 sps:$4 sm:$0xff]  }
 0x267   :  { %5495 = vmatpush3.bf16.msra.mxu1 %v6202_v47  ;;  %5474 = vmatprep.subr.bf16.mxu0 %v6203_v48  ;;  %v6251_v47 = vld [vmem:[%s7304_s4 + $0x168] ss:$12 sps:$4 sm:$0xff]  }
 0x268   :  { %5496 = vmatprep.subr.bf16.mxu1 %v6204_v53  ;;  %v6280_v48 = vld [vmem:[%s7304_s4 + $0x214] ss:$12 sps:$4 sm:$0xff]  }
 0x269   :  { %v6256_v53 = vld [vmem:[%s7304_s4 + $0x154] ss:$12 sps:$4 sm:$0xff]  }
 0x26a   :  { %5475 = vmatpush3.bf16.msra.mxu0 %v6205_v15  ;;  %v6278_v15 = vld [vmem:[%s7304_s4 + $0x210] ss:$12 sps:$4 sm:$0xff]  }
 0x26b   :  { %5497 = vmatpush3.bf16.msra.mxu1 %v6206_v54  ;;  %5476 = vmatprep.subr.bf16.mxu0 %v6207_v55  ;;  %v6254_v54 = vld [vmem:[%s7304_s4 + $0x150] ss:$12 sps:$4 sm:$0xff]  }
 0x26c   :  { %5498 = vmatprep.subr.bf16.mxu1 %v6208_v20  ;;  %v6283_v55 = vld [vmem:[%s7304_s4 + $0x1fc] ss:$12 sps:$4 sm:$0xff]   ;;  %v6281_v20 = vld [vmem:[%s7304_s4 + $0x1f8] ss:$12 sps:$4 sm:$0xff]  }
 0x26e   :  { %5477 = vmatpush3.bf16.msra.mxu0 %v6209_v23  ;;  %v6257_v23 = vld [vmem:[%s7304_s4 + $0x138] ss:$12 sps:$4 sm:$0xff]  }
 0x26f   :  { %5499 = vmatpush3.bf16.msra.mxu1 %v6210_v57  ;;  %5506 = vmatprep.subr.bf16.mxu0 %v6211_v58  ;;  %v6286_v57 = vld [vmem:[%s7304_s4 + $0x1e4] ss:$12 sps:$4 sm:$0xff]  }
 0x270   :  { %4270 = vmatprep.subr.bf16.mxu1 %v6214_v60  ;;  %v6262_v58 = vld [vmem:[%s7304_s4 + $0x124] ss:$12 sps:$4 sm:$0xff]   ;;  %v6284_v60 = vld [vmem:[%s7304_s4 + $0x1e0] ss:$12 sps:$4 sm:$0xff]  }
 0x271   :  { %v6870_v2 = vpop.f32.mrf.mxu0  ;;  %3346 = vmatmul.mubr.bf16.vlgmr.msra.gmra.mxu0 %v6802_v39  ;;  %v6224_v39 = vld [vmem:[%s7304_s4 + $0x7c] ss:$12 sps:$4 sm:$0xff]  }
 0x272   :  { %v6874_v22 = vpop.f32.mrf.mxu1  ;;  %3386 = vmatmul.mubr.bf16.vlgmr.msra.gmra.mxu1 %v6806_v40  ;;  %5507 = vmatpush3.bf16.msra.mxu0 %v6215_v17  ;;  %v6289_v17 = vld [vmem:[%s7304_s4 + $0x1cc] ss:$12 sps:$4 sm:$0xff]  }
 0x273   :  { %3425 = vmatprep.mubr.bf16.mxu0 %v6810_v41  ;;  %4271 = vmatpush1.bf16.msra.mxu1 %v6212_v63  ;;  %v3023_v7 = vpop.f32.mrf.mxu0  ;;  %v6265_v63 = vld [vmem:[%s7304_s4 + $0x10c] ss:$12 sps:$4 sm:$0xff]  }
 0x274   :  { %v3024_v11 = vadd.f32 %v3023_v7, %v2983_v6  ;;  %v6881_v12 = vpop.f32.mrf.mxu1  ;;  %5508 = vmatprep.subr.bf16.mxu0 %v6216_v0  ;;  %4272 = vmatprep.subr.bf16.mxu1 %v6219_v1  ;;  %v6287_v0 = vld [vmem:[%s7304_s4 + $0x1c8] ss:$12 sps:$4 sm:$0xff]   ;;  %v6290_v7 = vld [vmem:[%s7304_s4 + $0x1b0] ss:$12 sps:$4 sm:$0xff]  }
 0x275   :  { %v3025_v40 = vpop.f32.mrf.mxu0  ;;  %v6263_v1 = vld [vmem:[%s7304_s4 + $0x108] ss:$12 sps:$4 sm:$0xff]  }
 0x276   :  { %vm3434_vm0 = vcmp.gt.f32.partialorder %v3024_v11, 0.0  ;;  %v3439_v46 = vmul.f32 0.01, %v3024_v11  ;;  %v3066_v41 = vpop.f32.mrf.mxu1  ;;  %5509 = vmatpush3.bf16.msra.mxu0 %v6220_v3  ;;  %v6292_v6 = vld [vmem:[%s7304_s4 + $0x1b4] ss:$12 sps:$4 sm:$0xff]  }
 0x277   :  { %4273 = vmatpush1.bf16.msra.mxu1 %v6217_v9  ;;  %v3026_v14 = vpop.f32.mrf.mxu0  ;;  %5510 = vmatprep.subr.bf16.mxu0 %v6221_v10  ;;  %v6268_v3 = vld [vmem:[%s7304_s4 + $0xf4] ss:$12 sps:$4 sm:$0xff]   ;;  %v6266_v9 = vld [vmem:[%s7304_s4 + $0xf0] ss:$12 sps:$4 sm:$0xff]   ;;  %v6293_v40 = vld [vmem:[%s7304_s4 + $0x198] ss:$12 sps:$4 sm:$0xff]  }
 0x278   :  { %v3067_v8 = vpop.f32.mrf.mxu1  ;;  %4274 = vmatprep.subr.bf16.mxu1 %v6224_v39  ;;  %v3444_v16 = vsel %vm3434_vm0, %v3024_v11, %v3439_v46  ;;  %v6295_v10 = vld [vmem:[%s7304_s4 + $0x19c] ss:$12 sps:$4 sm:$0xff]   ;;  %v3022_v39 = vadd.f32 %v6870_v2, %v6852_v50  ;;  %v6269_v46 = vld [vmem:[%s7304_s4 + $0xd8] ss:$12 sps:$4 sm:$0xff]   ;;  %v6296_v14 = vld [vmem:[%s7304_s4 + $0x180] ss:$12 sps:$4 sm:$0xff]  }
 0x279   :  { %v6892_v19 = vpack.c.bf16 %v3444_v16, %v3444_v16  ;;  %v6271_v11 = vld [vmem:[%s7304_s4 + $0xdc] ss:$12 sps:$4 sm:$0xff]   ;;  %v6298_v41 = vld [vmem:[%s7304_s4 + $0x184] ss:$12 sps:$4 sm:$0xff]   ;;  %v6301_v8 = vld [vmem:[%s7304_s4 + $0x2ec] ss:$12 sps:$4 sm:$0xff]  }
 0x27a   :  { %5511 = vmatpush3.bf16.msra.mxu0 %v6225_v13  ;;  %v728_v13 = vsub.s32 2, %v6824_v52  ;;  %v6274_v50 = vld [vmem:[%s7304_s4 + $0xc4] ss:$12 sps:$4 sm:$0xff]   ;;  %v3438_v2 = vmul.f32 0.01, %v3022_v39  ;;  %vm3433_vm1 = vcmp.gt.f32.partialorder %v3022_v39, 0.0 }
 0x27b   :  { %4275 = vmatpush1.bf16.msra.mxu1 %v6222_v5  ;;  %4302 = vmatprep.mubr.bf16.mxu1 %v6892_v19  ;;  %v6272_v5 = vld [vmem:[%s7304_s4 + $0xc0] ss:$12 sps:$4 sm:$0xff]  }
 0x27c   :  { %5512 = vmatprep.subr.bf16.mxu0 %v6226_v4  ;;  %4276 = vmatprep.subr.bf16.mxu1 %v6229_v18  ;;  %v729_v16 = vrot.slane %v6827_v59, %v728_v13  ;;  %v3443_v4 = vsel %vm3433_vm1, %v3022_v39, %v3438_v2  ;;  %v6299_v18 = vld [vmem:[%s7304_s4 + $0x2e8] ss:$12 sps:$4 sm:$0xff]  }
 0x27d   :  { %v7138_v39 = vld [vmem:[#allocation8] sm:$0x1f] }
 0x27e   :  { %5513 = vmatpush3.bf16.msra.mxu0 %v6230_v44  ;;  %v6304_v44 = vld [vmem:[%s7304_s4 + $0x2d4] ss:$12 sps:$4 sm:$0xff]  }
 0x27f   :  { %4277 = vmatpush1.bf16.msra.mxu1 %v6227_v21  ;;  %5514 = vmatprep.subr.bf16.mxu0 %v6231_v27  ;;  %v7034_v21 = vpack.c.bf16 %v3443_v4, %v3443_v4  ;;  %v3063_v27 = vadd.f32 %v6874_v22, %v729_v16 }
 0x280   :  { %4278 = vmatprep.subr.bf16.mxu1 %v6234_v28 }
 0x282   :  { %5515 = vmatpush3.bf16.msra.mxu0 %v6235_v29 }
 0x283   :  { %4279 = vmatpush1.bf16.msra.mxu1 %v6232_v30  ;;  %5516 = vmatprep.subr.bf16.mxu0 %v6236_v31  ;;  %v6302_v30 = vld [vmem:[%s7304_s4 + $0x2d0] ss:$12 sps:$4 sm:$0xff]  }
 0x284   :  { %4280 = vmatprep.subr.bf16.mxu1 %v6239_v33  ;;  %v6307_v33 = vld [vmem:[%s7304_s4 + $0x2bc] ss:$12 sps:$4 sm:$0xff]  }
 0x286   :  { %5517 = vmatpush3.bf16.msra.mxu0 %v6240_v34 }
 0x287   :  { %4281 = vmatpush1.bf16.msra.mxu1 %v6237_v32  ;;  %5518 = vmatprep.subr.bf16.mxu0 %v6241_v35 }
 0x288   :  { %4282 = vmatprep.subr.bf16.mxu1 %v6244_v51  ;;  %v6305_v51 = vld [vmem:[%s7304_s4 + $0x2b8] ss:$12 sps:$4 sm:$0xff]  }
 0x28a   :  { %5519 = vmatpush3.bf16.msra.mxu0 %v6245_v36 }
 0x28b   :  { %4283 = vmatpush1.bf16.msra.mxu1 %v6242_v24  ;;  %5520 = vmatprep.subr.bf16.mxu0 %v6246_v37  ;;  %v6310_v24 = vld [vmem:[%s7304_s4 + $0x2a4] ss:$12 sps:$4 sm:$0xff]  }
 0x28c   :  { %4284 = vmatprep.subr.bf16.mxu1 %v6249_v42  ;;  %v6339_v42 = vld [vmem:[%s7304_s4 + $0x3a8] ss:$12 sps:$4 sm:$0xff]  }
 0x28e   :  { %5521 = vmatpush3.bf16.msra.mxu0 %v6250_v26  ;;  %v6341_v26 = vld [vmem:[%s7304_s4 + $0x3ac] ss:$12 sps:$4 sm:$0xff]  }
 0x28f   :  { %4285 = vmatpush1.bf16.msra.mxu1 %v6247_v25  ;;  %4311 = vmatprep.subr.bf16.mxu0 %v6277_v38  ;;  %v6345_v25 = vld [vmem:[%s7304_s4 + $0x394] ss:$12 sps:$4 sm:$0xff]  }
 0x290   :  { %4286 = vmatprep.subr.bf16.mxu1 %v6253_v43  ;;  %v6308_v38 = vld [vmem:[%s7304_s4 + $0x2a0] ss:$12 sps:$4 sm:$0xff]  }
 0x291   :  { %3426 = vmatmul.mubr.bf16.vlgmr.msra.gmra.mxu0 %v6818_v49  ;;  %v6259_v49 = vld [vmem:[%s7304_s4 + $0x13c] ss:$12 sps:$4 sm:$0xff]   ;;  %v6313_v43 = vld [vmem:[%s7304_s4 + $0x28c] ss:$12 sps:$4 sm:$0xff]  }
 0x292   :  { %4312 = vmatpush1.bf16.msra.mxu0 %v6275_v45  ;;  %v6343_v45 = vld [vmem:[%s7304_s4 + $0x390] ss:$12 sps:$4 sm:$0xff]  }
 0x293   :  { %4287 = vmatpush2.bf16.msra.mxu1 %v6251_v47  ;;  %4313 = vmatprep.subr.bf16.mxu0 %v6280_v48  ;;  %v6349_v47 = vld [vmem:[%s7304_s4 + $0x37c] ss:$12 sps:$4 sm:$0xff]  }
 0x294   :  { %4288 = vmatprep.subr.bf16.mxu1 %v6256_v53  ;;  %v6311_v48 = vld [vmem:[%s7304_s4 + $0x288] ss:$12 sps:$4 sm:$0xff]  }
 0x295   :  { %v6316_v53 = vld [vmem:[%s7304_s4 + $0x274] ss:$12 sps:$4 sm:$0xff]  }
 0x296   :  { %4314 = vmatpush1.bf16.msra.mxu0 %v6278_v15  ;;  %v6347_v15 = vld [vmem:[%s7304_s4 + $0x378] ss:$12 sps:$4 sm:$0xff]  }
 0x297   :  { %4289 = vmatpush2.bf16.msra.mxu1 %v6254_v54  ;;  %4315 = vmatprep.subr.bf16.mxu0 %v6283_v55  ;;  %v6353_v54 = vld [vmem:[%s7304_s4 + $0x364] ss:$12 sps:$4 sm:$0xff]  }
 0x298   :  { %4290 = vmatprep.subr.bf16.mxu1 %v6259_v49  ;;  %v6314_v55 = vld [vmem:[%s7304_s4 + $0x270] ss:$12 sps:$4 sm:$0xff]  }
 0x299   :  { %v6319_v49 = vld [vmem:[%s7304_s4 + $0x25c] ss:$12 sps:$4 sm:$0xff]  }
 0x29a   :  { %4316 = vmatpush1.bf16.msra.mxu0 %v6281_v20  ;;  %v6351_v20 = vld [vmem:[%s7304_s4 + $0x360] ss:$12 sps:$4 sm:$0xff]  }
 0x29b   :  { %4291 = vmatpush2.bf16.msra.mxu1 %v6257_v23  ;;  %4317 = vmatprep.subr.bf16.mxu0 %v6286_v57  ;;  %v6357_v23 = vld [vmem:[%s7304_s4 + $0x34c] ss:$12 sps:$4 sm:$0xff]  }
 0x29c   :  { %4292 = vmatprep.subr.bf16.mxu1 %v6262_v58  ;;  %v6317_v57 = vld [vmem:[%s7304_s4 + $0x258] ss:$12 sps:$4 sm:$0xff]  }
 0x29d   :  { %v6322_v58 = vld [vmem:[%s7304_s4 + $0x244] ss:$12 sps:$4 sm:$0xff]  }
 0x29e   :  { %4318 = vmatpush1.bf16.msra.mxu0 %v6284_v60  ;;  %v6355_v60 = vld [vmem:[%s7304_s4 + $0x348] ss:$12 sps:$4 sm:$0xff]  }
 0x29f   :  { %4293 = vmatpush2.bf16.msra.mxu1 %v6260_v62  ;;  %4319 = vmatprep.subr.bf16.mxu0 %v6289_v17  ;;  %v6361_v62 = vld [vmem:[%s7304_s4 + $0x334] ss:$12 sps:$4 sm:$0xff]  }
 0x2a0   :  { %4294 = vmatprep.subr.bf16.mxu1 %v6265_v63  ;;  %v6320_v17 = vld [vmem:[%s7304_s4 + $0x240] ss:$12 sps:$4 sm:$0xff]   ;;  %v6323_v63 = vld [vmem:[%s7304_s4 + $0x170] ss:$12 sps:$4 sm:$0xff]  }
 0x2a2   :  { %4320 = vmatpush1.bf16.msra.mxu0 %v6287_v0  ;;  %v6359_v0 = vld [vmem:[%s7304_s4 + $0x330] ss:$12 sps:$4 sm:$0xff]  }
 0x2a3   :  { %4295 = vmatpush2.bf16.msra.mxu1 %v6263_v1  ;;  %4321 = vmatprep.subr.bf16.mxu0 %v6292_v6  ;;  %v6365_v1 = vld [vmem:[%s7304_s4 + $0x31c] ss:$12 sps:$4 sm:$0xff]   ;;  %v6363_v6 = vld [vmem:[%s7304_s4 + $0x318] ss:$12 sps:$4 sm:$0xff]  }
 0x2a4   :  { %4296 = vmatprep.subr.bf16.mxu1 %v6268_v3  ;;  %v6369_v3 = vld [vmem:[%s7304_s4 + $0x304] ss:$12 sps:$4 sm:$0xff]  }
 0x2a6   :  { %4322 = vmatpush1.bf16.msra.mxu0 %v6290_v7  ;;  %v6367_v7 = vld [vmem:[%s7304_s4 + $0x300] ss:$12 sps:$4 sm:$0xff]  }
 0x2a7   :  { %4297 = vmatpush2.bf16.msra.mxu1 %v6266_v9  ;;  %4323 = vmatprep.subr.bf16.mxu0 %v6295_v10  ;;  %v6371_v9 = vld [vmem:[%s7304_s4 + $0x2f0] ss:$12 sps:$4 sm:$0xff]   ;;  %v6615_v10 = vmov 0  }
 0x2a8   :  { %4298 = vmatprep.subr.bf16.mxu1 %v6271_v11  ;;  %v732_v11 = vsub.s32 3, %v6824_v52 }
 0x2aa   :  { %4324 = vmatpush1.bf16.msra.mxu0 %v6293_v40  ;;  %v733_v40 = vrot.slane %v7138_v39, %v732_v11 }
 0x2ab   :  { %4299 = vmatpush2.bf16.msra.mxu1 %v6269_v46  ;;  %4325 = vmatprep.subr.bf16.mxu0 %v6298_v41 }
 0x2ac   :  { %4300 = vmatprep.subr.bf16.mxu1 %v6274_v50  ;;  %v3065_v46 = vadd.f32 %v6881_v12, %v733_v40 }
 0x2ae   :  { %4326 = vmatpush1.bf16.msra.mxu0 %v6296_v14 }
 0x2af   :  { %4301 = vmatpush2.bf16.msra.mxu1 %v6272_v5  ;;  %4327 = vmatprep.subr.bf16.mxu0 %v6301_v8 }
 0x2b0   :  { %4352 = vmatprep.subr.bf16.mxu1 %v6341_v26  ;;  %v6332_v26 = vld [vmem:[%s7304_s4 + $0x50] ss:$12 sps:$4 sm:$0xff]  }
 0x2b1   :  { %v3103_v28 = vpop.f32.mrf.mxu0 }
 0x2b2   :  { %v3104_v29 = vadd.f32 %v3103_v28, %v3063_v27  ;;  %v3144_v59 = vpop.f32.mrf.mxu1  ;;  %4303 = vmatmul.mubr.bf16.vlgmr.msra.gmra.mxu1 %v7034_v21  ;;  %4328 = vmatpush2.bf16.msra.mxu0 %v6299_v18 }
 0x2b3   :  { %v7041_v31 = vpop.f32.mrf.mxu0  ;;  %4329 = vmatprep.subr.bf16.mxu0 %v6304_v44  ;;  %4353 = vmatpush1.bf16.msra.mxu1 %v6339_v42  ;;  %v6331_v42 = vld [vmem:[%s7304_s4 + $0x110] ss:$12 sps:$4 sm:$0xff]  }
 0x2b4   :  { %v7046_v34 = vadd.f32 %v3144_v59, %v3104_v29  ;;  %v7048_v22 = vpop.f32.mrf.mxu1  ;;  %4354 = vmatprep.subr.bf16.mxu1 %v6345_v25  ;;  %4384 = vmatprep.mubr.bf16.mxu1 %v6615_v10  ;;  %v3106_v41 = vadd.f32 %v7041_v31, %v3065_v46  ;;  %v6333_v25 = vld [vmem:[%s7304_s4 + $0xf8] ss:$12 sps:$4 sm:$0xff]   ;;  %v6370_v46 = vld [vmem:[%s7304_s4 + $0x308] ss:$12 sps:$4 sm:$0xff]  }
 0x2b5   :  { %v3107_v32 = vpop.f32.mrf.mxu0 }
 0x2b6   :  { %v3148_v35 = vpop.f32.mrf.mxu1  ;;  %4330 = vmatpush2.bf16.msra.mxu0 %v6302_v30  ;;  %v3147_v2 = vadd.f32 %v7048_v22, %v3106_v41 }
 0x2b7   :  { %v3108_v36 = vpop.f32.mrf.mxu0  ;;  %4331 = vmatprep.subr.bf16.mxu0 %v6307_v33  ;;  %4355 = vmatpush1.bf16.msra.mxu1 %v6343_v45  ;;  %v6325_v35 = vld [vmem:[%s7304_s4 + $0x158] ss:$12 sps:$4 sm:$0xff]  }
 0x2b8   :  { %v3149_v37 = vpop.f32.mrf.mxu1  ;;  %4356 = vmatprep.subr.bf16.mxu1 %v6349_v47  ;;  %v6327_v36 = vld [vmem:[%s7304_s4 + $0x140] ss:$12 sps:$4 sm:$0xff]  }
 0x2b9   :  { %v6329_v37 = vld [vmem:[%s7304_s4 + $0x128] ss:$12 sps:$4 sm:$0xff]  }
 0x2ba   :  { %4332 = vmatpush2.bf16.msra.mxu0 %v6305_v51  ;;  %v6326_v51 = vld [vmem:[%s7304_s4 + $0x98] ss:$12 sps:$4 sm:$0xff]  }
 0x2bb   :  { %4333 = vmatprep.subr.bf16.mxu0 %v6310_v24  ;;  %4357 = vmatpush1.bf16.msra.mxu1 %v6347_v15  ;;  %v6328_v24 = vld [vmem:[%s7304_s4 + $0x80] ss:$12 sps:$4 sm:$0xff]  }
 0x2bc   :  { %4358 = vmatprep.subr.bf16.mxu1 %v6353_v54  ;;  %v6337_v54 = vld [vmem:[%s7304_s4 + $0xc8] ss:$12 sps:$4 sm:$0xff]  }
 0x2be   :  { %4334 = vmatpush2.bf16.msra.mxu0 %v6308_v38  ;;  %v6334_v38 = vld [vmem:[%s7304_s4 + $0x38] ss:$12 sps:$4 sm:$0xff]  }
 0x2bf   :  { %4335 = vmatprep.subr.bf16.mxu0 %v6313_v43  ;;  %4359 = vmatpush1.bf16.msra.mxu1 %v6351_v20  ;;  %v6335_v43 = vld [vmem:[%s7304_s4 + $0xe0] ss:$12 sps:$4 sm:$0xff]  }
 0x2c0   :  { %4360 = vmatprep.subr.bf16.mxu1 %v6357_v23  ;;  %v6338_v23 = vld [vmem:[%s7304_s4 + $0x8] ss:$12 sps:$4 sm:$0xff]  }
 0x2c2   :  { %4336 = vmatpush2.bf16.msra.mxu0 %v6311_v48 }
 0x2c3   :  { %4337 = vmatprep.subr.bf16.mxu0 %v6316_v53  ;;  %4361 = vmatpush1.bf16.msra.mxu1 %v6355_v60  ;;  %v6336_v53 = vld [vmem:[%s7304_s4 + $0x20] ss:$12 sps:$4 sm:$0xff]   ;;  %v6616_v60 = vmov 0.0  }
 0x2c4   :  { %4362 = vmatprep.subr.bf16.mxu1 %v6361_v62  ;;  %v6346_v62 = vld [vmem:[%s7304_s4 + $0x398] ss:$12 sps:$4 sm:$0xff]  }
 0x2c6   :  { %4338 = vmatpush2.bf16.msra.mxu0 %v6314_v55 }
 0x2c7   :  { %4339 = vmatprep.subr.bf16.mxu0 %v6319_v49  ;;  %4363 = vmatpush1.bf16.msra.mxu1 %v6359_v0  ;;  %v6362_v0 = vld [vmem:[%s7304_s4 + $0x338] ss:$12 sps:$4 sm:$0xff]  }
 0x2c8   :  { %4364 = vmatprep.subr.bf16.mxu1 %v6365_v1 }
 0x2ca   :  { %4340 = vmatpush2.bf16.msra.mxu0 %v6317_v57 }
 0x2cb   :  { %4341 = vmatprep.subr.bf16.mxu0 %v6322_v58  ;;  %4365 = vmatpush1.bf16.msra.mxu1 %v6363_v6  ;;  %v6342_v58 = vld [vmem:[%s7304_s4 + $0x3b0] ss:$12 sps:$4 sm:$0xff]  }
 0x2cc   :  { %4366 = vmatprep.subr.bf16.mxu1 %v6369_v3 }
 0x2ce   :  { %4342 = vmatpush2.bf16.msra.mxu0 %v6320_v17  ;;  %v6350_v17 = vld [vmem:[%s7304_s4 + $0x380] ss:$12 sps:$4 sm:$0xff]  }
 0x2cf   :  { %5528 = vmatprep.subr.bf16.mxu0 %v6323_v63  ;;  %4367 = vmatpush1.bf16.msra.mxu1 %v6367_v7  ;;  %v6358_v63 = vld [vmem:[%s7304_s4 + $0x350] ss:$12 sps:$4 sm:$0xff]   ;;  %v6366_v7 = vld [vmem:[%s7304_s4 + $0x320] ss:$12 sps:$4 sm:$0xff]  }
 0x2d0   :  { %5550 = vmatprep.subr.bf16.mxu1 %v6371_v9 }
 0x2f1   :  { %v3185_v50 = vpop.f32.mrf.mxu0 }
 0x2f2   :  { %v3186_v14 = vadd.f32 %v3185_v50, %v7046_v34  ;;  %v3226_v5 = vpop.f32.mrf.mxu1  ;;  %v6324_v34 = vld [vmem:[%s7304_s4 + $0xb0] ss:$12 sps:$4 sm:$0xff]   ;;  %v736_v50 = vsub.s32 4, %v6824_v52 }
 0x2f3   :  { %v3187_v8 = vpop.f32.mrf.mxu0 }
 0x2f4   :  { %v3227_v16 = vadd.f32 %v3226_v5, %v3186_v14  ;;  %v3188_v4 = vadd.f32 %v3187_v8, %v3147_v2  ;;  %v3228_v18 = vpop.f32.mrf.mxu1  ;;  %v737_v2 = vrot.slane %v7138_v39, %v736_v50  ;;  %v6372_v39 = vld [vmem:[%s7304_s4 + $0x230] ss:$12 sps:$4 sm:$0xff]   ;;  %v3613_v50 = vld [vmem:[#allocation10] sm:$0x7] }
 0x2f5   :  { %v3189_v44 = vpop.f32.mrf.mxu0 }
 0x2f6   :  { %vm3435_vm2 = vcmp.gt.f32.partialorder %v3227_v16, 0.0  ;;  %v3440_v27 = vmul.f32 0.01, %v3227_v16  ;;  %v3229_v28 = vadd.f32 %v3228_v18, %v3188_v4  ;;  %v3230_v29 = vpop.f32.mrf.mxu1 }
 0x2f7   :  { %v3190_v59 = vpop.f32.mrf.mxu0 }
 0x2f8   :  { %vm3436_vm3 = vcmp.gt.f32.partialorder %v3229_v28, 0.0  ;;  %v3441_v12 = vmul.f32 0.01, %v3229_v28  ;;  %v3231_v30 = vpop.f32.mrf.mxu1  ;;  %v3445_v31 = vsel %vm3435_vm2, %v3227_v16, %v3440_v27 }
 0x2f9   :  { %v7150_v22 = vpack.c.bf16 %v3445_v31, %v3445_v31 }
 0x2fa   :  { %v3446_v33 = vsel %vm3436_vm3, %v3229_v28, %v3441_v12 }
 0x2fb   :  { %v7145_v32 = vpack.c.bf16 %v3446_v33, %v3446_v33 }
 0x2fd   :  { %4343 = vmatprep.mubr.bf16.mxu0 %v7145_v32 }
 0x2fe   :  { %4344 = vmatmul.mubr.bf16.vlgmr.msra.gmra.mxu0 %v7150_v22 }
 0x2ff   :  { %5529 = vmatpush3.bf16.msra.mxu0 %v6324_v34  ;;  %4425 = vmatprep.mubr.bf16.mxu0 %v6892_v19  ;;  %v6330_v19 = vld [vmem:[%s7304_s4 + $0x68] ss:$12 sps:$4 sm:$0xff]  }
 0x300   :  { %5530 = vmatprep.subr.bf16.mxu0 %v6325_v35 }
 0x303   :  { %5531 = vmatpush3.bf16.msra.mxu0 %v6326_v51  ;;  %v6373_v51 = vld [vmem:[%s7304_s4 + $0x2d8] ss:$12 sps:$4 sm:$0xff]  }
 0x304   :  { %5532 = vmatprep.subr.bf16.mxu0 %v6327_v36  ;;  %v6374_v36 = vld [vmem:[%s7304_s4 + $0x218] ss:$12 sps:$4 sm:$0xff]  }
 0x307   :  { %5533 = vmatpush3.bf16.msra.mxu0 %v6328_v24  ;;  %v6375_v24 = vld [vmem:[%s7304_s4 + $0x2c0] ss:$12 sps:$4 sm:$0xff]  }
 0x308   :  { %5534 = vmatprep.subr.bf16.mxu0 %v6329_v37  ;;  %v6376_v37 = vld [vmem:[%s7304_s4 + $0x200] ss:$12 sps:$4 sm:$0xff]  }
 0x30b   :  { %5535 = vmatpush3.bf16.msra.mxu0 %v6330_v19  ;;  %v6378_v19 = vld [vmem:[%s7304_s4 + $0x1e8] ss:$12 sps:$4 sm:$0xff]  }
 0x30c   :  { %5536 = vmatprep.subr.bf16.mxu0 %v6331_v42  ;;  %v6379_v42 = vld [vmem:[%s7304_s4 + $0x290] ss:$12 sps:$4 sm:$0xff]  }
 0x30f   :  { %5537 = vmatpush3.bf16.msra.mxu0 %v6332_v26  ;;  %v6380_v26 = vld [vmem:[%s7304_s4 + $0x1d0] ss:$12 sps:$4 sm:$0xff]  }
 0x310   :  { %5538 = vmatprep.subr.bf16.mxu0 %v6333_v25  ;;  %v6381_v25 = vld [vmem:[%s7304_s4 + $0x278] ss:$12 sps:$4 sm:$0xff]  }
 0x311   :  { %v5434_v45 = vpop.f32.mrf.mxu0 }
 0x312   :  { %v5456_v47 = vpop.f32.mrf.mxu1 }
 0x313   :  { %5539 = vmatpush3.bf16.msra.mxu0 %v6334_v38  ;;  %v5435_v48 = vpop.f32.mrf.mxu0  ;;  %v6382_v38 = vld [vmem:[%s7304_s4 + $0x1b8] ss:$12 sps:$4 sm:$0xff]  }
 0x314   :  { %v5457_v15 = vpop.f32.mrf.mxu1  ;;  %5540 = vmatprep.subr.bf16.mxu0 %v6335_v43  ;;  %v5436_v14 = vadd.f32 %v5435_v48, %v5434_v45  ;;  %v6383_v43 = vld [vmem:[%s7304_s4 + $0x260] ss:$12 sps:$4 sm:$0xff]   ;;  %v6385_v48 = vld [vmem:[%s7304_s4 + $0x248] ss:$12 sps:$4 sm:$0xff]  }
 0x315   :  { %v5437_v55 = vpop.f32.mrf.mxu0  ;;  %v5458_v8 = vadd.f32 %v5457_v15, %v5456_v47  ;;  %v6384_v47 = vld [vmem:[%s7304_s4 + $0x1a0] ss:$12 sps:$4 sm:$0xff]  }
 0x316   :  { %v5459_v49 = vpop.f32.mrf.mxu1  ;;  %v3268_v5 = vadd.f32 %v5436_v14, %v737_v2  ;;  %v3618_v2 = vrot.slane %v3613_v50, %v720_v56  ;;  %v3622_v14 = vrot.slane %v3613_v50, %v724_v61  ;;  %v6408_v56 = vld [vmem:[#allocation11 + $0x80] sm:$0xff]  }
 0x317   :  { %5541 = vmatpush3.bf16.msra.mxu0 %v6336_v53  ;;  %v5438_v20 = vpop.f32.mrf.mxu0  ;;  %v6387_v49 = vld [vmem:[#allocation13 + $0x8] sm:$0xff]  }
 0x318   :  { %v5460_v57 = vpop.f32.mrf.mxu1  ;;  %5542 = vmatprep.subr.bf16.mxu0 %v6337_v54  ;;  %v3308_v4 = vadd.f32 %v5458_v8, %v3268_v5  ;;  %v6386_v54 = vld [vmem:[%s7304_s4 + $0x188] ss:$12 sps:$4 sm:$0xff]   ;;  %v6388_v20 = vld [vmem:[#allocation13] sm:$0xff]  }
 0x319   :  { %v6389_v57 = vld [vmem:[#allocation11 + $0x78] sm:$0xff]  }
 0x31b   :  { %5543 = vmatpush3.bf16.msra.mxu0 %v6338_v23  ;;  %v4565_v23 = vld [vmem:[#allocation5] sm:$0xff] }
 0x31c   :  { %5611 = vmatprep.subr.bf16.mxu0 %v6616_v60 }
 0x31e   :  { %4426 = vmatmul.mubr.bf16.vlgmr.msra.gmra.mxu0 %v7034_v21  ;;  %v6354_v21 = vld [vmem:[%s7304_s4 + $0x368] ss:$12 sps:$4 sm:$0xff]  }
 0x31f   :  { %5612 = vmatpush3.bf16.msra.mxu0 %v6342_v58  ;;  %5627 = vmatprep.mubr.msk.bf16.mxu0 %vm6617_vm4, %v6616_v60  ;;  %v4566_v58 = vpack.c.bf16 %v4565_v23, %v4565_v23 }
 0x320   :  { %5613 = vmatprep.subr.bf16.mxu0 %v6616_v60 }
 0x323   :  { %5614 = vmatpush3.bf16.msra.mxu0 %v6346_v62  ;;  %v6390_v62 = vld [vmem:[#allocation11 + $0x38] sm:$0xff]  }
 0x324   :  { %5615 = vmatprep.subr.bf16.mxu0 %v6616_v60 }
 0x327   :  { %5616 = vmatpush3.bf16.msra.mxu0 %v6350_v17  ;;  %v6391_v17 = vld [vmem:[#allocation11 + $0x70] sm:$0xff]  }
 0x328   :  { %5617 = vmatprep.subr.bf16.mxu0 %v6616_v60 }
 0x32b   :  { %5618 = vmatpush3.bf16.msra.mxu0 %v6354_v21  ;;  %v6392_v21 = vld [vmem:[#allocation11 + $0x30] sm:$0xff]  }
 0x32c   :  { %5619 = vmatprep.subr.bf16.mxu0 %v6616_v60 }
 0x32f   :  { %5620 = vmatpush3.bf16.msra.mxu0 %v6358_v63  ;;  %v6394_v63 = vld [vmem:[#allocation11 + $0x28] sm:$0xff]  }
 0x330   :  { %5621 = vmatprep.subr.bf16.mxu0 %v6616_v60 }
 0x331   :  { %v5478_v1 = vpop.f32.mrf.mxu0 }
 0x332   :  { %v5500_v6 = vpop.f32.mrf.mxu1 }
 0x333   :  { %v5479_v3 = vpop.f32.mrf.mxu0  ;;  %5622 = vmatpush3.bf16.msra.mxu0 %v6362_v0  ;;  %v6395_v0 = vld [vmem:[#allocation11 + $0x60] sm:$0xff]  }
 0x334   :  { %v5501_v9 = vpop.f32.mrf.mxu1  ;;  %5623 = vmatprep.subr.bf16.mxu0 %v6616_v60  ;;  %v5480_v16 = vadd.f32 %v5479_v3, %v5478_v1  ;;  %v6396_v1 = vld [vmem:[#allocation11 + $0x20] sm:$0xff]   ;;  %v6398_v3 = vld [vmem:[#allocation11 + $0x18] sm:$0xff]  }
 0x335   :  { %v5481_v10 = vpop.f32.mrf.mxu0  ;;  %v5502_v27 = vadd.f32 %v5501_v9, %v5500_v6  ;;  %v6397_v6 = vld [vmem:[#allocation11 + $0x58] sm:$0xff]   ;;  %v6400_v9 = vld [vmem:[#allocation11 + $0x10] sm:$0xff]  }
 0x336   :  { %v5503_v11 = vpop.f32.mrf.mxu1  ;;  %v3348_v18 = vadd.f32 %v5480_v16, %v3308_v4  ;;  %v6401_v10 = vld [vmem:[#allocation11 + $0x48] sm:$0xff]  }
 0x337   :  { %v5482_v40 = vpop.f32.mrf.mxu0  ;;  %5624 = vmatpush3.bf16.msra.mxu0 %v6366_v7  ;;  %v6399_v7 = vld [vmem:[#allocation11 + $0x50] sm:$0xff]   ;;  %v6402_v11 = vld [vmem:[#allocation11 + $0x8] sm:$0xff]  }
 0x338   :  { %v5504_v41 = vpop.f32.mrf.mxu1  ;;  %5625 = vmatprep.subr.bf16.mxu0 %v6616_v60  ;;  %v3388_v29 = vadd.f32 %v5502_v27, %v3348_v18  ;;  %v6403_v40 = vld [vmem:[#allocation11 + $0x40] sm:$0xff]  }
 0x339   :  { %v6405_v41 = vld [vmem:[#allocation11 + $0x98] sm:$0xff]  }
 0x33b   :  { %5626 = vmatpush3.bf16.msra.mxu0 %v6370_v46  ;;  %v6404_v46 = vld [vmem:[#allocation11] sm:$0xff]  }
 0x33c   :  { %5639 = vmatprep.subr.bf16.mxu0 %v6616_v60 }
 0x351   :  { %v5522_v44 = vpop.f32.mrf.mxu0 }
 0x353   :  { %v5523_v28 = vpop.f32.mrf.mxu0 }
 0x354   :  { %v5524_v59 = vadd.f32 %v5523_v28, %v5522_v44  ;;  %v6406_v44 = vld [vmem:[#allocation11 + $0x90] sm:$0xff]  }
 0x355   :  { %v5525_v12 = vpop.f32.mrf.mxu0 }
 0x356   :  { %v3428_v30 = vadd.f32 %v5524_v59, %v3388_v29  ;;  %v6407_v59 = vld [vmem:[#allocation11 + $0x88] sm:$0xff]  }
 0x357   :  { %v5526_v31 = vpop.f32.mrf.mxu0 }
 0x358   :  { %vm3437_vm5 = vcmp.gt.f32.partialorder %v3428_v30, 0.0  ;;  %v3442_v33 = vmul.f32 0.01, %v3428_v30 }
 0x35a   :  { %v3447_v34 = vsel %vm3437_vm5, %v3428_v30, %v3442_v33 }
 0x35b   :  { %v3452_v35 = vpack.c.bf16 %v3447_v34, %v3447_v34 }
 0x35d   :  { %4385 = vmatmul.mubr.bf16.vlgmr.msra.gmra.mxu1 %v3452_v35  ;;  %5628 = vmatmul.mubr.bf16.vlgmr.msra.gmra.mxu0 %v3452_v35 }
 0x35e   :  { %5551 = vmatpush3.bf16.msra.mxu1 %v6372_v39  ;;  %4465 = vmatprep.mubr.bf16.mxu1 %v7145_v32  ;;  %v6377_v32 = vld [vmem:[%s7304_s4 + $0x2a8] ss:$12 sps:$4 sm:$0xff]  }
 0x35f   :  { %5552 = vmatprep.subr.bf16.mxu1 %v6373_v51  ;;  %5647 = vmatprep.mubr.msk.bf16.mxu0 %vm6617_vm4, %v6616_v60 }
 0x360   :  { %5640 = vmatpush3.bf16.msra.mxu0 %v6405_v41 }
 0x361   :  { %5641 = vmatprep.subr.bf16.mxu0 %v6616_v60 }
 0x362   :  { %5553 = vmatpush3.bf16.msra.mxu1 %v6374_v36 }
 0x363   :  { %5554 = vmatprep.subr.bf16.mxu1 %v6375_v24 }
 0x364   :  { %5642 = vmatpush3.bf16.msra.mxu0 %v6406_v44 }
 0x365   :  { %5643 = vmatprep.subr.bf16.mxu0 %v6616_v60 }
 0x366   :  { %5555 = vmatpush3.bf16.msra.mxu1 %v6376_v37 }
 0x367   :  { %5556 = vmatprep.subr.bf16.mxu1 %v6377_v32 }
 0x368   :  { %5644 = vmatpush3.bf16.msra.mxu0 %v6407_v59 }
 0x369   :  { %5645 = vmatprep.subr.bf16.mxu0 %v6616_v60 }
 0x36a   :  { %5557 = vmatpush3.bf16.msra.mxu1 %v6378_v19 }
 0x36b   :  { %5558 = vmatprep.subr.bf16.mxu1 %v6379_v42 }
 0x36c   :  { %5646 = vmatpush3.bf16.msra.mxu0 %v6408_v56 }
 0x36e   :  { %5559 = vmatpush3.bf16.msra.mxu1 %v6380_v26 }
 0x36f   :  { %5560 = vmatprep.subr.bf16.mxu1 %v6381_v25 }
 0x372   :  { %v4304_v45 = vpop.f32.mrf.mxu1  ;;  %5561 = vmatpush3.bf16.msra.mxu1 %v6382_v38 }
 0x373   :  { %5562 = vmatprep.subr.bf16.mxu1 %v6383_v43  ;;  %v4305_v5 = vadd.f32 %v4304_v45, %v3618_v2 }
 0x374   :  { %v4306_v53 = vpop.f32.mrf.mxu1 }
 0x375   :  { %v4307_v16 = vadd.f32 %v4306_v53, %v3622_v14 }
 0x376   :  { %v4308_v15 = vpop.f32.mrf.mxu1  ;;  %5563 = vmatpush3.bf16.msra.mxu1 %v6384_v47  ;;  %v3626_v47 = vrot.slane %v3613_v50, %v728_v13  ;;  %v5416_v50 = vld [vmem:[#allocation16] ss:$0 sm:$0xff] }
 0x377   :  { %5564 = vmatprep.subr.bf16.mxu1 %v6385_v48 }
 0x378   :  { %v4309_v55 = vpop.f32.mrf.mxu1 }
 0x37a   :  { %5565 = vmatpush3.bf16.msra.mxu1 %v6386_v54 }
 0x37b   :  { %5631 = vmatprep.subr.bf16.mxu1 %v6616_v60 }
 0x37d   :  { %4466 = vmatmul.mubr.bf16.vlgmr.msra.gmra.mxu1 %v7150_v22  ;;  %v6393_v22 = vld [vmem:[#allocation11 + $0x68] sm:$0xff]  }
 0x37e   :  { %5632 = vmatpush3.bf16.msra.mxu1 %v6387_v49  ;;  %5635 = vmatprep.mubr.msk.bf16.mxu1 %vm6617_vm4, %v6616_v60 }
 0x37f   :  { %5633 = vmatprep.subr.bf16.mxu1 %v6616_v60 }
 0x382   :  { %5634 = vmatpush3.bf16.msra.mxu1 %v6388_v20 }
 0x383   :  { %5584 = vmatprep.subr.bf16.mxu1 %v6389_v57 }
 0x385   :  { %5636 = vmatmul.mubr.msk.bf16.vlgmr.msra.gmra.mxu1 %vm4583_vm6, %v4566_v58 }
 0x386   :  { %5585 = vmatpush3.bf16.msra.mxu1 %v6390_v62 }
 0x387   :  { %5586 = vmatprep.subr.bf16.mxu1 %v6391_v17 }
 0x38a   :  { %5587 = vmatpush3.bf16.msra.mxu1 %v6392_v21 }
 0x38b   :  { %5588 = vmatprep.subr.bf16.mxu1 %v6393_v22 }
 0x38e   :  { %5589 = vmatpush3.bf16.msra.mxu1 %v6394_v63 }
 0x38f   :  { %5590 = vmatprep.subr.bf16.mxu1 %v6395_v0 }
 0x392   :  { %5591 = vmatpush3.bf16.msra.mxu1 %v6396_v1 }
 0x393   :  { %5592 = vmatprep.subr.bf16.mxu1 %v6397_v6 }
 0x396   :  { %5593 = vmatpush3.bf16.msra.mxu1 %v6398_v3 }
 0x397   :  { %5594 = vmatprep.subr.bf16.mxu1 %v6399_v7 }
 0x39a   :  { %5595 = vmatpush3.bf16.msra.mxu1 %v6400_v9  ;;  %v5415_v9 = vld [vmem:[#allocation14] ss:$0 sm:$0xff] }
 0x39b   :  { %5596 = vmatprep.subr.bf16.mxu1 %v6401_v10 }
 0x39e   :  { %5597 = vmatpush3.bf16.msra.mxu1 %v6402_v11 }
 0x39f   :  { %5598 = vmatprep.subr.bf16.mxu1 %v6403_v40 }
 0x3a2   :  { %5599 = vmatpush3.bf16.msra.mxu1 %v6404_v46 }
 0x3be   :  { %v4345_v8 = vpop.f32.mrf.mxu0 }
 0x3bf   :  { %v4346_v4 = vadd.f32 %v4345_v8, %v4305_v5  ;;  %v5417_v8 = vld [vmem:[#allocation2] ss:$0 sm:$0xff] }
 0x3c0   :  { %v4347_v18 = vpop.f32.mrf.mxu0 }
 0x3c1   :  { %v4348_v27 = vadd.f32 %v4347_v18, %v4307_v16 }
 0x3c2   :  { %v4349_v28 = vpop.f32.mrf.mxu0 }
 0x3c4   :  { %v4350_v29 = vpop.f32.mrf.mxu0 }
 0x3de   :  { %v5544_v12 = vpop.f32.mrf.mxu0 }
 0x3e0   :  { %v5545_v61 = vpop.f32.mrf.mxu0 }
 0x3e1   :  { %v5546_v30 = vadd.f32 %v5545_v61, %v5544_v12 }
 0x3e2   :  { %v5547_v31 = vpop.f32.mrf.mxu0 }
 0x3e3   :  { %v4428_v15 = vadd.f32 %v5546_v30, %v3626_v47 }
 0x3e4   :  { %v5548_v33 = vpop.f32.mrf.mxu0 }
 0x41d   :  { %v4386_v34 = vpop.f32.mrf.mxu1  ;;  %v4507_v39 = vpop.f32.mrf.mxu0 }
 0x41e   :  { %v4387_v35 = vadd.f32 %v4386_v34, %v4346_v4 }
 0x41f   :  { %v4388_v51 = vpop.f32.mrf.mxu1  ;;  %v5629_v36 = vpop.f32.mrf.mxu0 }
 0x420   :  { %vm4513_vm7 = vcmp.gt.f32.partialorder %v4387_v35, 0.0  ;;  %v4516_v24 = vmul.f32 0.01, %v4387_v35  ;;  %v4389_v37 = vadd.f32 %v4388_v51, %v4348_v27 }
 0x421   :  { %v4390_v32 = vpop.f32.mrf.mxu1  ;;  %v4510_v19 = vpop.f32.mrf.mxu0 }
 0x422   :  { %vm4514_vm8 = vcmp.gt.f32.partialorder %v4389_v37, 0.0  ;;  %v4517_v42 = vmul.f32 0.01, %v4389_v37  ;;  %v4519_v60 = vsel %vm4513_vm7, %v4387_v35, %v4516_v24 }
 0x423   :  { %v4391_v26 = vpop.f32.mrf.mxu1  ;;  %v5630_v25 = vpop.f32.mrf.mxu0  ;;  %v4522_v45 = vpack.c.bf16 %v4519_v60, %v4519_v60 }
 0x424   :  { %v4520_v38 = vsel %vm4514_vm8, %v4389_v37, %v4517_v42 }
 0x425   :  { %v4523_v43 = vpack.c.bf16 %v4520_v38, %v4520_v38 }
 0x427   :  { %4783 = vmatprep.mubr.bf16.mxu1 %v4523_v43 }
 0x428   :  { %4784 = vmatmul.mubr.bf16.vlgmr.msra.gmra.mxu1 %v4522_v45 }
 0x43d   :  { %v5566_v48 = vpop.f32.mrf.mxu1 }
 0x43f   :  { %v5567_v53 = vpop.f32.mrf.mxu1 }
 0x440   :  { %v5568_v54 = vadd.f32 %v5567_v53, %v5566_v48 }
 0x441   :  { %v5569_v55 = vpop.f32.mrf.mxu1 }
 0x442   :  { %v4468_v49 = vadd.f32 %v5568_v54, %v4428_v15 }
 0x443   :  { %v5570_v20 = vpop.f32.mrf.mxu1 }
 0x444   :  { %v4508_v23 = vadd.f32 %v4507_v39, %v4468_v49 }
 0x445   :  { %v4621_v57 = vpop.f32.mrf.mxu1 }
 0x446   :  { %vm4515_vm9 = vcmp.gt.f32.partialorder %v4508_v23, 0.0  ;;  %v4518_v58 = vmul.f32 0.01, %v4508_v23 }
 0x447   :  { %v5637_v62 = vpop.f32.mrf.mxu1 }
 0x448   :  { %v4521_v17 = vsel %vm4515_vm9, %v4508_v23, %v4518_v58 }
 0x449   :  { %v4524_v21 = vpack.c.bf16 %v4521_v17, %v4521_v17  ;;  %v4624_v22 = vpop.f32.mrf.mxu1 }
 0x44b   :  { %5648 = vmatmul.mubr.msk.bf16.vlgmr.msra.gmra.mxu0 %vm4747_vm10, %v4524_v21  ;;  %v5638_v63 = vpop.f32.mrf.mxu1 }
 0x4e8   :  { %v5600_v52 = vpop.f32.mrf.mxu1 }
 0x4ea   :  { %v5601_v13 = vpop.f32.mrf.mxu1 }
 0x4eb   :  { %v5602_v6 = vadd.f32 %v5601_v13, %v5600_v52 }
 0x4ec   :  { %v5603_v0 = vpop.f32.mrf.mxu1 }
 0x4ed   :  { %v4786_v3 = vadd.f32 %v5602_v6, %v4621_v57 }
 0x4ee   :  { %v5604_v1 = vpop.f32.mrf.mxu1 }
 0x50b   :  { %v4825_v7 = vpop.f32.mrf.mxu0 }
 0x50c   :  { %v4826_v10 = vadd.f32 %v4825_v7, %v4786_v3 }
 0x50d   :  { %v5649_v11 = vpop.f32.mrf.mxu0 }
 0x50e   :  { %v4838_v40 = vadd.f32 %v5415_v9, %v4826_v10 }
 0x50f   :  { %v4828_v46 = vpop.f32.mrf.mxu0 }
 0x510   :  { %vm4839_vm11 = vcmp.gt.f32.partialorder %v4838_v40, 0.0  ;;  %v4840_v41 = vmul.f32 0.01, %v4838_v40 }
 0x511   :  { %v5650_v2 = vpop.f32.mrf.mxu0 }
 0x512   :  { %v4841_v14 = vsel %vm4839_vm11, %v4838_v40, %v4840_v41 }
 0x513   :  { %v4849_v5 = vmul.f32 %v5416_v50, %v4841_v14 }
 0x515   :  { %4850 = vadd.xlane.f32.xlu1 %v4849_v5 }
 0x59e   :  { %v4851_v16 = vpop.xlane.xlu1 %4850 }
 0x59f   :  { %v4859_v4 = vadd.f32 %v5417_v8, %v4851_v16 }
 0x5a1   :  { %4861 = vst.msk [vmem:[%s7311_s11] sm:$0xff] %vm4860_vm12, %v4859_v4 }
 0x5a2   :  { %4866 = vsyncpa [#allocation4], 1 }
 0x5a3   :  { %4867 = vsyncpa [#allocation6], 1 }
 0x5a4   :  { %4868 = vsyncpa [#allocation9], 1 }
 0x5a5   :  { %4869 = vsyncpa [#allocation12], 1 }
 0x5a6   :  { %4870 = vsyncpa [#allocation15], 1 }

// kernel: tpu_custom_call.1
= control target key start
LH: loop header
LB: loop body
LE: loop exit
PB: predicated region body
PF: predicated region fallthrough
CT: control target
= control target key end

     0   :  { %s7300_s0 = inlined_call_operand.hbm [shape: bf16[8,1280], index: 0, kind: input, shape index: {}]   ;;  %s7301_s1 = inlined_call_operand.hbm [shape: f32[8,32], index: 1, kind: input, shape index: {}]   ;;  %s7302_s2 = inlined_call_operand.hbm [shape: bf16[1280,640], index: 2, kind: input, shape index: {}]   ;;  %s7303_s3 = inlined_call_operand.hbm [shape: f32[1,640], index: 3, kind: input, shape index: {}]   ;;  %s7304_s4 = inlined_call_operand.vmem [shape: bf16[640,320], index: 4, kind: input, shape index: {}]   ;;  %s7305_s5 = inlined_call_operand.hbm [shape: f32[1,320], index: 5, kind: input, shape index: {}]   ;;  %s7306_s6 = inlined_call_operand.hbm [shape: bf16[320,128], index: 6, kind: input, shape index: {}]   ;;  %s7307_s7 = inlined_call_operand.hbm [shape: bf16[32,128], index: 7, kind: input, shape index: {}]   ;;  %s7308_s8 = inlined_call_operand.hbm [shape: f32[1,128], index: 8, kind: input, shape index: {}]   ;;  %s7309_s9 = inlined_call_operand.hbm [shape: f32[1,128], index: 9, kind: input, shape index: {}]   ;;  %s7310_s10 = inlined_call_operand.<no memory space> [shape: f32[1,1], index: 10, kind: input, shape index: {}]   ;;  %s7311_s11 = inlined_call_operand.vmem [shape: f32[8,1], index: 11, kind: output, shape index: {}]  }
   0x1   :  { %v16_v0 = vstv %s7310_s10 }
   0x2   :  { %17 = vst [vmem:[#allocation2] sm:$0x1] %v16_v0 }
   0x3   :  { %18 = vsyncpa [#allocation4], 0 }
   0x4   :  { %19 = vsyncpa [#allocation6], 0 }
   0x5   :  { %20 = vsyncpa [#allocation9], 0 }
   0x6   :  { %21 = vsyncpa [#allocation12], 0 }
   0x7   :  { %22 = vsyncpa [#allocation15], 0  ;;  %s6602_s19 = smov [#allocation5]   ;;  %s6603_s21 = smov [#allocation8]  }
   0x8   :  { %s39_s20 = sshll.u32 %s6602_s19, 4  ;;  %s61_s22 = sshll.u32 %s6603_s21, 4  ;;  %s40_s20 = int_to_ptr.vmem [resolvable:$true] %s39_s20  ;;  %s62_s22 = int_to_ptr.vmem [resolvable:$true] %s61_s22 }
   0x9   :  { %s6420_s23 = scalar_lea.vmem %s40_s20, 128  ;;  %p6425_p1 = scmp.lt.s32.totalorder %s40_s20, %s40_s20 }
   0xa   :  { %p6421_p0 = scmp.ne.s32.totalorder %s40_s20, %s6420_s23  ;;  %p6426_p2 = scmp.lt.s32.totalorder %s6420_s23, %s6420_s23 }
   0xc   :  { %p6427_p3 = por %p6426_p2, %p6425_p1 }
   0xe   :  { %p6428_p4 = pnand %p6427_p3, %p6421_p0 }
  0x10   :  { %6431 = shalt.err (!%p6428_p4)
}
  0x11   :  { %42 = dma.hbm_to_vmem [thread:$0]  %s7301_s1, 128, %s40_s20, [#allocation6]  }
  0x12   :  { %s6440_s25 = scalar_lea.vmem %s62_s22, 80  ;;  %s6444_s26 = scalar_lea.vmem %s62_s22, 96 }
  0x13   :  { %p6441_p5 = scmp.ne.s32.totalorder %s62_s22, %s6440_s25  ;;  %p6445_p6 = scmp.lt.s32.totalorder %s62_s22, %s62_s22 }
  0x14   :  { %p6446_p7 = scmp.lt.s32.totalorder %s6444_s26, %s6440_s25 }
  0x16   :  { %p6447_p8 = por %p6446_p7, %p6445_p6 }
  0x18   :  { %p6448_p9 = pnand %p6447_p8, %p6441_p5 }
  0x1a   :  { %6451 = shalt.err (!%p6448_p9)
}
  0x1b   :  { %64 = dma.hbm_to_vmem [thread:$0]  %s7303_s3, 80, %s62_s22, [#allocation9]  }
  0x1c   :  { %s6604_s29 = smov [#allocation11]  }
  0x1d   :  { %s82_s30 = sshll.u32 %s6604_s29, 4  ;;  %s83_s30 = int_to_ptr.vmem [resolvable:$true] %s82_s30 }
  0x1e   :  { %s6460_s12 = scalar_lea.vmem %s83_s30, 2560  ;;  %p6465_p11 = scmp.lt.s32.totalorder %s83_s30, %s83_s30 }
  0x1f   :  { %p6461_p10 = scmp.ne.s32.totalorder %s83_s30, %s6460_s12  ;;  %p6466_p12 = scmp.lt.s32.totalorder %s6460_s12, %s6460_s12 }
  0x21   :  { %p6467_p13 = por %p6466_p12, %p6465_p11 }
  0x23   :  { %p6468_p0 = pnand %p6467_p13, %p6461_p10 }
  0x25   :  { %6471 = shalt.err (!%p6468_p0)
}
  0x26   :  { %s6605_s1 = smov 64   ;;  %s6606_s13 = smov 4  }
  0x27   :  { %88 = dma.hbm_to_vmem [thread:$0]  %s7306_s6, 2560, %s83_s30, [#allocation12], %s6605_s1, %s6605_s1, %s6606_s13  }
  0x28   :  { %s6607_s3 = smov [#allocation14]   ;;  %s6608_s17 = smov [#allocation3]  }
  0x29   :  { %s107_s16 = sshll.u32 %s6607_s3, 4  ;;  %s29_s18 = sshll.u32 %s6608_s17, 4  ;;  %s108_s16 = int_to_ptr.vmem [resolvable:$true] %s107_s16  ;;  %s30_s18 = int_to_ptr.vmem [resolvable:$true] %s29_s18 }
  0x2a   :  { %s6480_s19 = scalar_lea.vmem %s108_s16, 16  ;;  %s6484_s20 = scalar_lea.vmem %s108_s16, 32 }
  0x2b   :  { %p6481_p1 = scmp.ne.s32.totalorder %s108_s16, %s6480_s19  ;;  %p6485_p2 = scmp.lt.s32.totalorder %s108_s16, %s108_s16 }
  0x2c   :  { %p6486_p3 = scmp.lt.s32.totalorder %s6484_s20, %s6480_s19 }
  0x2e   :  { %p6487_p4 = por %p6486_p3, %p6485_p2 }
  0x30   :  { %p6488_p5 = pnand %p6487_p4, %p6481_p1 }
  0x32   :  { %6491 = shalt.err (!%p6488_p5)
}
  0x33   :  { %110 = dma.hbm_to_vmem [thread:$0]  %s7308_s8, 16, %s108_s16, [#allocation15]  }
  0x34   :  { %s6500_s23 = scalar_lea.vmem %s30_s18, 640  ;;  %p6505_p7 = scmp.lt.s32.totalorder %s30_s18, %s30_s18 }
  0x35   :  { %p6501_p6 = scmp.ne.s32.totalorder %s30_s18, %s6500_s23  ;;  %p6506_p8 = scmp.lt.s32.totalorder %s6500_s23, %s6500_s23 }
  0x37   :  { %p6507_p9 = por %p6506_p8, %p6505_p7 }
  0x39   :  { %p6508_p10 = pnand %p6507_p9, %p6501_p6 }
  0x3b   :  { %6511 = shalt.err (!%p6508_p10)
}
  0x3c   :  { %32 = dma.hbm_to_vmem [thread:$0]  %s7300_s0, 640, %s30_s18, [#allocation4]  }
  0x3d   :  { %s6609_s24 = smov [#allocation7]  }
  0x3e   :  { %s48_s25 = sshll.u32 %s6609_s24, 4  ;;  %s49_s25 = int_to_ptr.vmem [resolvable:$true] %s48_s25 }
  0x3f   :  { %s6520_s26 = scalar_lea.vmem %s49_s25, 51200  ;;  %p6525_p12 = scmp.lt.s32.totalorder %s49_s25, %s49_s25 }
  0x40   :  { %p6521_p11 = scmp.ne.s32.totalorder %s49_s25, %s6520_s26  ;;  %p6526_p13 = scmp.lt.s32.totalorder %s6520_s26, %s6520_s26 }
  0x42   :  { %p6527_p0 = por %p6526_p13, %p6525_p12 }
  0x44   :  { %p6528_p1 = pnand %p6527_p0, %p6521_p11 }
  0x46   :  { %6531 = shalt.err (!%p6528_p1)
}
  0x47   :  { %s6610_s8 = smov 320   ;;  %s6611_s27 = smov 20  }
  0x48   :  { %54 = dma.hbm_to_vmem [thread:$0]  %s7302_s2, 51200, %s49_s25, [#allocation6], %s6610_s8, %s6610_s8, %s6611_s27  }
  0x49   :  { %s6612_s30 = smov [#allocation10]   ;;  %s6613_s14 = smov [#allocation13]  }
  0x4a   :  { %s73_s12 = sshll.u32 %s6612_s30, 4  ;;  %s94_s0 = sshll.u32 %s6613_s14, 4  ;;  %s74_s12 = int_to_ptr.vmem [resolvable:$true] %s73_s12  ;;  %s95_s0 = int_to_ptr.vmem [resolvable:$true] %s94_s0 }
  0x4b   :  { %s6540_s15 = scalar_lea.vmem %s74_s12, 48  ;;  %s6544_s3 = scalar_lea.vmem %s74_s12, 64 }
  0x4c   :  { %p6541_p2 = scmp.ne.s32.totalorder %s74_s12, %s6540_s15  ;;  %p6545_p3 = scmp.lt.s32.totalorder %s74_s12, %s74_s12 }
  0x4d   :  { %p6546_p4 = scmp.lt.s32.totalorder %s6544_s3, %s6540_s15 }
  0x4f   :  { %p6547_p5 = por %p6546_p4, %p6545_p3 }
  0x51   :  { %p6548_p6 = pnand %p6547_p5, %p6541_p2 }
  0x53   :  { %6551 = shalt.err (!%p6548_p6)
}
  0x54   :  { %76 = dma.hbm_to_vmem [thread:$0]  %s7305_s5, 48, %s74_s12, [#allocation9]  }
  0x55   :  { %s6560_s18 = scalar_lea.vmem %s95_s0, 256  ;;  %p6565_p8 = scmp.lt.s32.totalorder %s95_s0, %s95_s0 }
  0x56   :  { %p6561_p7 = scmp.ne.s32.totalorder %s95_s0, %s6560_s18  ;;  %p6566_p9 = scmp.lt.s32.totalorder %s6560_s18, %s6560_s18 }
  0x58   :  { %p6567_p10 = por %p6566_p9, %p6565_p8 }
  0x5a   :  { %p6568_p11 = pnand %p6567_p10, %p6561_p7 }
  0x5c   :  { %6571 = shalt.err (!%p6568_p11)
}
  0x5d   :  { %100 = dma.hbm_to_vmem [thread:$0]  %s7307_s7, 256, %s95_s0, [#allocation12], %s6605_s1, %s6605_s1, %s6606_s13  }
  0x5e   :  { %s6614_s20 = smov [#allocation16]  }
  0x5f   :  { %s117_s21 = sshll.u32 %s6614_s20, 4  ;;  %s118_s21 = int_to_ptr.vmem [resolvable:$true] %s117_s21 }
  0x60   :  { %s6580_s22 = scalar_lea.vmem %s118_s21, 16  ;;  %s6584_s5 = scalar_lea.vmem %s118_s21, 32 }
  0x61   :  { %p6581_p12 = scmp.ne.s32.totalorder %s118_s21, %s6580_s22  ;;  %p6585_p13 = scmp.lt.s32.totalorder %s118_s21, %s118_s21 }
  0x62   :  { %p6586_p0 = scmp.lt.s32.totalorder %s6584_s5, %s6580_s22 }
  0x64   :  { %p6587_p1 = por %p6586_p0, %p6585_p13 }
  0x66   :  { %p6588_p2 = pnand %p6587_p1, %p6581_p12 }
  0x68   :  { %6591 = shalt.err (!%p6588_p2)
}
  0x69   :  { %120 = dma.hbm_to_vmem [thread:$0]  %s7309_s9, 16, %s118_s21, [#allocation15]  }
  0x6a   :  { %6592 = dma.done.wait [#allocation4], 640  }
  0x6b   :  { %6593 = vsyncadd [#allocation4], 4294966656 }
  0x6c   :  { %6594 = dma.done.wait [#allocation6], 51328  }
  0x6d   :  { %6595 = vsyncadd [#allocation6], 4294915968 }
  0x6e   :  { %6596 = dma.done.wait [#allocation9], 128  }
  0x6f   :  { %6597 = vsyncadd [#allocation9], 4294967168 }
  0x70   :  { %6598 = dma.done.wait [#allocation12], 2816  }
  0x71   :  { %6599 = vsyncadd [#allocation12], 4294964480 }
  0x72   :  { %6600 = dma.done.wait [#allocation15], 32  }
  0x73   :  { %6601 = vsyncadd [#allocation15], 4294967264  ;;  %v151_v1 = vld [vmem:[#allocation3] sm:$0xff]  ;;  %v152_v2 = vld [vmem:[#allocation3 + $0x8] sm:$0xff]  ;;  %vm6617_vm4 = vmmov 0   ;;  %vm4583_vm6 = vcmask 261120  }
  0x74   :  { %v153_v3 = vld [vmem:[#allocation3 + $0x10] sm:$0xff]  ;;  %v6714_v4 = vunpack.c.l.bf16 %v151_v1  ;;  %v6716_v5 = vunpack.c.h.bf16 %v151_v1  ;;  %v6718_v6 = vunpack.c.l.bf16 %v152_v2  ;;  %v5667_v7 = vld [vmem:[#allocation7 + $0x11c] ss:$20 sps:$4 sm:$0xff]   ;;  %v6720_v8 = vunpack.c.h.bf16 %v152_v2  ;;  %v5671_v12 = vld [vmem:[#allocation7 + $0x118] ss:$20 sps:$4 sm:$0xff]  }
  0x75   :  { %v5669_v11 = vld [vmem:[#allocation7 + $0x39c] ss:$20 sps:$4 sm:$0xff]   ;;  %v154_v13 = vld [vmem:[#allocation3 + $0x18] sm:$0xff]  ;;  %2823 = vmatprep.subr.bf16.mxu0 %v5667_v7  ;;  %v6730_v17 = vunpack.c.l.bf16 %v153_v3  ;;  %v6735_v25 = vunpack.c.h.bf16 %v153_v3  ;;  %v5685_v40 = vld [vmem:[#allocation7 + $0xa4] ss:$20 sps:$4 sm:$0xff]   ;;  %vm4747_vm10 = vcmask 523264  }
  0x76   :  { %v166_v9 = vadd.f32 %v6716_v5, %v6714_v4  ;;  %v179_v10 = vmul.f32 %v6714_v4, %v6714_v4  ;;  %v180_v14 = vmul.f32 %v6716_v5, %v6716_v5  ;;  %v181_v15 = vmul.f32 %v6718_v6, %v6718_v6  ;;  %v5672_v16 = vld [vmem:[#allocation7 + $0x398] ss:$20 sps:$4 sm:$0xff]   ;;  %2864 = vmatprep.subr.bf16.mxu1 %v5669_v11  ;;  %v5673_v19 = vld [vmem:[#allocation7 + $0xf4] ss:$20 sps:$4 sm:$0xff]   ;;  %v5677_v23 = vld [vmem:[#allocation7 + $0xf0] ss:$20 sps:$4 sm:$0xff]  }
  0x77   :  { %v182_v20 = vmul.f32 %v6720_v8, %v6720_v8  ;;  %2824 = vmatpush1.bf16.msra.mxu0 %v5671_v12  ;;  %2865 = vmatpush1.bf16.msra.mxu1 %v5672_v16  ;;  %v5675_v22 = vld [vmem:[#allocation7 + $0x374] ss:$20 sps:$4 sm:$0xff]   ;;  %v5678_v24 = vld [vmem:[#allocation7 + $0x370] ss:$20 sps:$4 sm:$0xff]   ;;  %v5679_v27 = vld [vmem:[#allocation7 + $0xcc] ss:$20 sps:$4 sm:$0xff]   ;;  %v183_v28 = vmul.f32 %v6730_v17, %v6730_v17  ;;  %v6740_v32 = vunpack.c.l.bf16 %v154_v13  ;;  %v184_v35 = vmul.f32 %v6735_v25, %v6735_v25 }
  0x78   :  { %v167_v18 = vadd.f32 %v166_v9, %v6718_v6  ;;  %v189_v21 = vadd.f32 %v180_v14, %v179_v10  ;;  %2825 = vmatprep.subr.bf16.mxu0 %v5673_v19  ;;  %2866 = vmatprep.subr.bf16.mxu1 %v5675_v22  ;;  %v5681_v30 = vld [vmem:[#allocation7 + $0x34c] ss:$20 sps:$4 sm:$0xff]   ;;  %v155_v31 = vld [vmem:[#allocation3 + $0x20] sm:$0xff]  ;;  %v5683_v34 = vld [vmem:[#allocation7 + $0xc8] ss:$20 sps:$4 sm:$0xff]   ;;  %v6745_v38 = vunpack.c.h.bf16 %v154_v13  ;;  %vm4860_vm12 = vcmask 7168  }
  0x79   :  { %v5684_v37 = vld [vmem:[#allocation7 + $0x348] ss:$20 sps:$4 sm:$0xff]   ;;  %v5687_v41 = vld [vmem:[#allocation7 + $0x324] ss:$20 sps:$4 sm:$0xff]   ;;  %v185_v42 = vmul.f32 %v6740_v32, %v6740_v32  ;;  %v6750_v44 = vunpack.c.l.bf16 %v155_v31  ;;  %v5689_v48 = vld [vmem:[#allocation7 + $0xa0] ss:$20 sps:$4 sm:$0xff]   ;;  %v6755_v51 = vunpack.c.h.bf16 %v155_v31 }
  0x7a   :  { %v168_v26 = vadd.f32 %v167_v18, %v6720_v8  ;;  %v190_v29 = vadd.f32 %v189_v21, %v181_v15  ;;  %v186_v46 = vmul.f32 %v6745_v38, %v6745_v38  ;;  %v5690_v49 = vld [vmem:[#allocation7 + $0x320] ss:$20 sps:$4 sm:$0xff]   ;;  %v5691_v50 = vld [vmem:[#allocation7 + $0x7c] ss:$20 sps:$4 sm:$0xff]   ;;  %v5695_v57 = vld [vmem:[#allocation7 + $0x78] ss:$20 sps:$4 sm:$0xff]  }
  0x7b   :  { %2826 = vmatpush1.bf16.msra.mxu0 %v5677_v23  ;;  %2867 = vmatpush1.bf16.msra.mxu1 %v5678_v24  ;;  %v5693_v53 = vld [vmem:[#allocation7 + $0x2fc] ss:$20 sps:$4 sm:$0xff]   ;;  %v187_v54 = vmul.f32 %v6750_v44, %v6750_v44  ;;  %v188_v58 = vmul.f32 %v6755_v51, %v6755_v51  ;;  %v5696_v60 = vld [vmem:[#allocation7 + $0x2f8] ss:$20 sps:$4 sm:$0xff]   ;;  %v5697_v62 = vld [vmem:[#allocation7 + $0x54] ss:$20 sps:$4 sm:$0xff]  }
  0x7c   :  { %v169_v33 = vadd.f32 %v168_v26, %v6730_v17  ;;  %v191_v36 = vadd.f32 %v190_v29, %v182_v20  ;;  %2827 = vmatprep.subr.bf16.mxu0 %v5679_v27  ;;  %2868 = vmatprep.subr.bf16.mxu1 %v5681_v30  ;;  %v5699_v63 = vld [vmem:[#allocation7 + $0x2d4] ss:$20 sps:$4 sm:$0xff]   ;;  %v5701_v2 = vld [vmem:[#allocation7 + $0x50] ss:$20 sps:$4 sm:$0xff]   ;;  %v5703_v7 = vld [vmem:[#allocation7 + $0x2c] ss:$20 sps:$4 sm:$0xff]  }
  0x7d   :  { %v5702_v3 = vld [vmem:[#allocation7 + $0x2d0] ss:$20 sps:$4 sm:$0xff]   ;;  %v5705_v9 = vld [vmem:[#allocation7 + $0x2ac] ss:$20 sps:$4 sm:$0xff]   ;;  %v5707_v10 = vld [vmem:[#allocation7 + $0x28] ss:$20 sps:$4 sm:$0xff]  }
  0x7e   :  { %v170_v39 = vadd.f32 %v169_v33, %v6735_v25  ;;  %v192_v43 = vadd.f32 %v191_v36, %v183_v28  ;;  %v5708_v11 = vld [vmem:[#allocation7 + $0x2a8] ss:$20 sps:$4 sm:$0xff]   ;;  %v5709_v12 = vld [vmem:[#allocation7 + $0x4] ss:$20 sps:$4 sm:$0xff]   ;;  %v5713_v14 = vld [vmem:[#allocation7] ss:$20 sps:$4 sm:$0xff]  }
  0x7f   :  { %2828 = vmatpush1.bf16.msra.mxu0 %v5683_v34  ;;  %2869 = vmatpush1.bf16.msra.mxu1 %v5684_v37  ;;  %v5711_v13 = vld [vmem:[#allocation7 + $0x284] ss:$20 sps:$4 sm:$0xff]   ;;  %v5714_v15 = vld [vmem:[#allocation7 + $0x280] ss:$20 sps:$4 sm:$0xff]   ;;  %v5715_v16 = vld [vmem:[#allocation7 + $0x25c] ss:$20 sps:$4 sm:$0xff]  }
  0x80   :  { %v171_v45 = vadd.f32 %v170_v39, %v6740_v32  ;;  %v193_v47 = vadd.f32 %v192_v43, %v184_v35  ;;  %2829 = vmatprep.subr.bf16.mxu0 %v5685_v40  ;;  %2870 = vmatprep.subr.bf16.mxu1 %v5687_v41  ;;  %v5717_v18 = vld [vmem:[#allocation7 + $0x4dc] ss:$20 sps:$4 sm:$0xff]   ;;  %v5719_v19 = vld [vmem:[#allocation7 + $0x258] ss:$20 sps:$4 sm:$0xff]   ;;  %v5721_v21 = vld [vmem:[#allocation7 + $0x234] ss:$20 sps:$4 sm:$0xff]  }
  0x81   :  { %v5720_v20 = vld [vmem:[#allocation7 + $0x4d8] ss:$20 sps:$4 sm:$0xff]   ;;  %v5723_v22 = vld [vmem:[#allocation7 + $0x4b4] ss:$20 sps:$4 sm:$0xff]   ;;  %v5725_v23 = vld [vmem:[#allocation7 + $0x230] ss:$20 sps:$4 sm:$0xff]  }
  0x82   :  { %v172_v52 = vadd.f32 %v171_v45, %v6745_v38  ;;  %v194_v55 = vadd.f32 %v193_v47, %v185_v42  ;;  %v5726_v24 = vld [vmem:[#allocation7 + $0x4b0] ss:$20 sps:$4 sm:$0xff]   ;;  %v5727_v26 = vld [vmem:[#allocation7 + $0x20c] ss:$20 sps:$4 sm:$0xff]   ;;  %v5731_v28 = vld [vmem:[#allocation7 + $0x208] ss:$20 sps:$4 sm:$0xff]  }
  0x83   :  { %2830 = vmatpush1.bf16.msra.mxu0 %v5689_v48  ;;  %2871 = vmatpush1.bf16.msra.mxu1 %v5690_v49  ;;  %v5729_v27 = vld [vmem:[#allocation7 + $0x48c] ss:$20 sps:$4 sm:$0xff]   ;;  %v5732_v29 = vld [vmem:[#allocation7 + $0x488] ss:$20 sps:$4 sm:$0xff]   ;;  %v5733_v30 = vld [vmem:[#allocation7 + $0x1e4] ss:$20 sps:$4 sm:$0xff]  }
  0x84   :  { %v173_v56 = vadd.f32 %v172_v52, %v6750_v44  ;;  %v195_v59 = vadd.f32 %v194_v55, %v186_v46  ;;  %2831 = vmatprep.subr.bf16.mxu0 %v5691_v50  ;;  %2872 = vmatprep.subr.bf16.mxu1 %v5693_v53  ;;  %v5735_v31 = vld [vmem:[#allocation7 + $0x464] ss:$20 sps:$4 sm:$0xff]   ;;  %v5737_v33 = vld [vmem:[#allocation7 + $0x1e0] ss:$20 sps:$4 sm:$0xff]   ;;  %v5739_v35 = vld [vmem:[#allocation7 + $0x1bc] ss:$20 sps:$4 sm:$0xff]  }
  0x85   :  { %v5738_v34 = vld [vmem:[#allocation7 + $0x460] ss:$20 sps:$4 sm:$0xff]   ;;  %v5741_v36 = vld [vmem:[#allocation7 + $0x43c] ss:$20 sps:$4 sm:$0xff]   ;;  %v5743_v37 = vld [vmem:[#allocation7 + $0x1b8] ss:$20 sps:$4 sm:$0xff]  }
  0x86   :  { %v174_v61 = vadd.f32 %v173_v56, %v6755_v51  ;;  %v196_v0 = vadd.f32 %v195_v59, %v187_v54  ;;  %v5744_v39 = vld [vmem:[#allocation7 + $0x438] ss:$20 sps:$4 sm:$0xff]   ;;  %v5745_v40 = vld [vmem:[#allocation7 + $0x194] ss:$20 sps:$4 sm:$0xff]   ;;  %v5749_v42 = vld [vmem:[#allocation7 + $0x190] ss:$20 sps:$4 sm:$0xff]  }
  0x87   :  { %2832 = vmatpush1.bf16.msra.mxu0 %v5695_v57  ;;  %2873 = vmatpush1.bf16.msra.mxu1 %v5696_v60  ;;  %v5747_v41 = vld [vmem:[#allocation7 + $0x414] ss:$20 sps:$4 sm:$0xff]   ;;  %v5750_v43 = vld [vmem:[#allocation7 + $0x410] ss:$20 sps:$4 sm:$0xff]   ;;  %v5751_v45 = vld [vmem:[#allocation7 + $0x16c] ss:$20 sps:$4 sm:$0xff]  }
  0x88   :  { %175 = vadd.xlane.f32.xlu0 %v174_v61  ;;  %v197_v1 = vadd.f32 %v196_v0, %v188_v58  ;;  %2833 = vmatprep.subr.bf16.mxu0 %v5697_v62  ;;  %v5753_v46 = vld [vmem:[#allocation7 + $0x3ec] ss:$20 sps:$4 sm:$0xff]   ;;  %v5755_v47 = vld [vmem:[#allocation7 + $0x168] ss:$20 sps:$4 sm:$0xff]   ;;  %v5757_v49 = vld [vmem:[#allocation7 + $0x144] ss:$20 sps:$4 sm:$0xff]  }
  0x89   :  { %2874 = vmatprep.subr.bf16.mxu1 %v5699_v63  ;;  %v5756_v48 = vld [vmem:[#allocation7 + $0x3e8] ss:$20 sps:$4 sm:$0xff]   ;;  %v5759_v50 = vld [vmem:[#allocation7 + $0x3c4] ss:$20 sps:$4 sm:$0xff]   ;;  %v5761_v52 = vld [vmem:[#allocation7 + $0x140] ss:$20 sps:$4 sm:$0xff]  }
  0x8a   :  { %v5762_v53 = vld [vmem:[#allocation7 + $0x3c0] ss:$20 sps:$4 sm:$0xff]   ;;  %v5765_v54 = vld [vmem:[#allocation7 + $0x61c] ss:$20 sps:$4 sm:$0xff]  }
  0x8b   :  { %2834 = vmatpush1.bf16.msra.mxu0 %v5701_v2  ;;  %2875 = vmatpush1.bf16.msra.mxu1 %v5702_v3  ;;  %v5768_v55 = vld [vmem:[#allocation7 + $0x89c] ss:$20 sps:$4 sm:$0xff]  }
  0x8c   :  { %198 = vadd.xlane.f32.xlu0 %v197_v1  ;;  %2835 = vmatprep.subr.bf16.mxu0 %v5703_v7 }
  0x8d   :  { %2876 = vmatprep.subr.bf16.mxu1 %v5705_v9 }
  0x8f   :  { %2836 = vmatpush1.bf16.msra.mxu0 %v5707_v10  ;;  %2877 = vmatpush1.bf16.msra.mxu1 %v5708_v11 }
  0x90   :  { %2837 = vmatprep.subr.bf16.mxu0 %v5709_v12  ;;  %2878 = vmatprep.subr.bf16.mxu1 %v5711_v13 }
  0x93   :  { %2838 = vmatpush1.bf16.msra.mxu0 %v5713_v14  ;;  %2879 = vmatpush1.bf16.msra.mxu1 %v5714_v15 }
  0x94   :  { %2839 = vmatprep.subr.bf16.mxu0 %v5715_v16  ;;  %2880 = vmatprep.subr.bf16.mxu1 %v5717_v18  ;;  %v5766_v16 = vld [vmem:[#allocation7 + $0x898] ss:$20 sps:$4 sm:$0xff]  }
  0x97   :  { %2840 = vmatpush2.bf16.msra.mxu0 %v5719_v19  ;;  %2881 = vmatpush2.bf16.msra.mxu1 %v5720_v20 }
  0x98   :  { %2841 = vmatprep.subr.bf16.mxu0 %v5721_v21  ;;  %2882 = vmatprep.subr.bf16.mxu1 %v5723_v22  ;;  %v5774_v21 = vld [vmem:[#allocation7 + $0x874] ss:$20 sps:$4 sm:$0xff]  }
  0x9b   :  { %2842 = vmatpush2.bf16.msra.mxu0 %v5725_v23  ;;  %2883 = vmatpush2.bf16.msra.mxu1 %v5726_v24 }
  0x9c   :  { %2843 = vmatprep.subr.bf16.mxu0 %v5727_v26  ;;  %2884 = vmatprep.subr.bf16.mxu1 %v5729_v27  ;;  %v5769_v27 = vld [vmem:[#allocation7 + $0x5f0] ss:$20 sps:$4 sm:$0xff]  }
  0x9f   :  { %2844 = vmatpush2.bf16.msra.mxu0 %v5731_v28  ;;  %2885 = vmatpush2.bf16.msra.mxu1 %v5732_v29  ;;  %v5772_v28 = vld [vmem:[#allocation7 + $0x870] ss:$20 sps:$4 sm:$0xff]   ;;  %v5777_v29 = vld [vmem:[#allocation7 + $0x5cc] ss:$20 sps:$4 sm:$0xff]  }
  0xa0   :  { %2845 = vmatprep.subr.bf16.mxu0 %v5733_v30  ;;  %2886 = vmatprep.subr.bf16.mxu1 %v5735_v31  ;;  %v5780_v30 = vld [vmem:[#allocation7 + $0x84c] ss:$20 sps:$4 sm:$0xff]   ;;  %v5775_v31 = vld [vmem:[#allocation7 + $0x5c8] ss:$20 sps:$4 sm:$0xff]  }
  0xa3   :  { %2846 = vmatpush2.bf16.msra.mxu0 %v5737_v33  ;;  %2887 = vmatpush2.bf16.msra.mxu1 %v5738_v34  ;;  %v5778_v33 = vld [vmem:[#allocation7 + $0x848] ss:$20 sps:$4 sm:$0xff]   ;;  %v5783_v34 = vld [vmem:[#allocation7 + $0x5a4] ss:$20 sps:$4 sm:$0xff]  }
  0xa4   :  { %2847 = vmatprep.subr.bf16.mxu0 %v5739_v35  ;;  %2888 = vmatprep.subr.bf16.mxu1 %v5741_v36  ;;  %v5786_v35 = vld [vmem:[#allocation7 + $0x824] ss:$20 sps:$4 sm:$0xff]   ;;  %v5781_v36 = vld [vmem:[#allocation7 + $0x5a0] ss:$20 sps:$4 sm:$0xff]  }
  0xa7   :  { %2848 = vmatpush2.bf16.msra.mxu0 %v5743_v37  ;;  %2889 = vmatpush2.bf16.msra.mxu1 %v5744_v39  ;;  %v5784_v37 = vld [vmem:[#allocation7 + $0x820] ss:$20 sps:$4 sm:$0xff]   ;;  %v5789_v39 = vld [vmem:[#allocation7 + $0x57c] ss:$20 sps:$4 sm:$0xff]  }
  0xa8   :  { %2849 = vmatprep.subr.bf16.mxu0 %v5745_v40  ;;  %2890 = vmatprep.subr.bf16.mxu1 %v5747_v41  ;;  %v5792_v40 = vld [vmem:[#allocation7 + $0x7fc] ss:$20 sps:$4 sm:$0xff]   ;;  %v5787_v41 = vld [vmem:[#allocation7 + $0x578] ss:$20 sps:$4 sm:$0xff]  }
  0xab   :  { %2850 = vmatpush2.bf16.msra.mxu0 %v5749_v42  ;;  %2891 = vmatpush2.bf16.msra.mxu1 %v5750_v43  ;;  %v5790_v42 = vld [vmem:[#allocation7 + $0x7f8] ss:$20 sps:$4 sm:$0xff]   ;;  %v5795_v43 = vld [vmem:[#allocation7 + $0x554] ss:$20 sps:$4 sm:$0xff]  }
  0xac   :  { %2851 = vmatprep.subr.bf16.mxu0 %v5751_v45  ;;  %2892 = vmatprep.subr.bf16.mxu1 %v5753_v46  ;;  %v5798_v45 = vld [vmem:[#allocation7 + $0x7d4] ss:$20 sps:$4 sm:$0xff]   ;;  %v5793_v46 = vld [vmem:[#allocation7 + $0x550] ss:$20 sps:$4 sm:$0xff]  }
  0xaf   :  { %2852 = vmatpush2.bf16.msra.mxu0 %v5755_v47  ;;  %2893 = vmatpush2.bf16.msra.mxu1 %v5756_v48  ;;  %v5796_v47 = vld [vmem:[#allocation7 + $0x7d0] ss:$20 sps:$4 sm:$0xff]   ;;  %v5801_v48 = vld [vmem:[#allocation7 + $0x52c] ss:$20 sps:$4 sm:$0xff]  }
  0xb0   :  { %2853 = vmatprep.subr.bf16.mxu0 %v5757_v49  ;;  %2894 = vmatprep.subr.bf16.mxu1 %v5759_v50  ;;  %v5804_v49 = vld [vmem:[#allocation7 + $0x7ac] ss:$20 sps:$4 sm:$0xff]   ;;  %v5799_v50 = vld [vmem:[#allocation7 + $0x528] ss:$20 sps:$4 sm:$0xff]  }
  0xb3   :  { %2854 = vmatpush2.bf16.msra.mxu0 %v5761_v52  ;;  %2895 = vmatpush2.bf16.msra.mxu1 %v5762_v53  ;;  %v5802_v52 = vld [vmem:[#allocation7 + $0x7a8] ss:$20 sps:$4 sm:$0xff]   ;;  %v5807_v53 = vld [vmem:[#allocation7 + $0x504] ss:$20 sps:$4 sm:$0xff]  }
  0xb4   :  { %2905 = vmatprep.subr.bf16.mxu0 %v5765_v54  ;;  %2946 = vmatprep.subr.bf16.mxu1 %v5768_v55  ;;  %v5810_v54 = vld [vmem:[#allocation7 + $0x784] ss:$20 sps:$4 sm:$0xff]   ;;  %v5805_v55 = vld [vmem:[#allocation7 + $0x500] ss:$20 sps:$4 sm:$0xff]  }
 0x111   :  { %v176_v56 = vpop.xlane.xlu0 %175 }
 0x112   :  { %v178_v57 = vmul.f32 0.00078125, %v176_v56  ;;  %v5808_v56 = vld [vmem:[#allocation7 + $0x780] ss:$20 sps:$4 sm:$0xff]  }
 0x114   :  { %v201_v59 = vmul.f32 %v178_v57, %v178_v57  ;;  %v205_v0 = vsub.f32 %v6716_v5, %v178_v57  ;;  %v207_v1 = vsub.f32 %v6720_v8, %v178_v57  ;;  %v204_v2 = vsub.f32 %v6714_v4, %v178_v57  ;;  %v5763_v8 = vld [vmem:[#allocation7 + $0x618] ss:$20 sps:$4 sm:$0xff]  }
 0x115   :  { %v199_v58 = vpop.xlane.xlu0 %198  ;;  %v206_v3 = vsub.f32 %v6718_v6, %v178_v57  ;;  %v209_v7 = vsub.f32 %v6735_v25, %v178_v57  ;;  %v211_v9 = vsub.f32 %v6745_v38, %v178_v57  ;;  %v208_v11 = vsub.f32 %v6730_v17, %v178_v57 }
 0x116   :  { %v200_v60 = vmul.f32 0.00078125, %v199_v58  ;;  %v210_v12 = vsub.f32 %v6740_v32, %v178_v57  ;;  %v213_v13 = vsub.f32 %v6755_v51, %v178_v57  ;;  %v212_v14 = vsub.f32 %v6750_v44, %v178_v57  ;;  %v5771_v44 = vld [vmem:[#allocation7 + $0x5f4] ss:$20 sps:$4 sm:$0xff]   ;;  %v5813_v57 = vld [vmem:[#allocation7 + $0x75c] ss:$20 sps:$4 sm:$0xff]  }
 0x117   :  { %v5816_v58 = vld [vmem:[#allocation7 + $0x9dc] ss:$20 sps:$4 sm:$0xff]  }
 0x118   :  { %v202_v61 = vsub.f32 %v200_v60, %v201_v59  ;;  %v5811_v59 = vld [vmem:[#allocation7 + $0x758] ss:$20 sps:$4 sm:$0xff]  }
 0x119   :  { %v5814_v60 = vld [vmem:[#allocation7 + $0x9d8] ss:$20 sps:$4 sm:$0xff]  }
 0x11a   :  { %v203_v62 = vmax.f32 %v202_v61, 0.0  ;;  %v5819_v61 = vld [vmem:[#allocation7 + $0x734] ss:$20 sps:$4 sm:$0xff]  }
 0x11c   :  { %v214_v63 = vadd.f32 1e-05, %v203_v62  ;;  %v5822_v62 = vld [vmem:[#allocation7 + $0x9b4] ss:$20 sps:$4 sm:$0xff]  }
 0x11e   :  { %6409 = vrsqrt.f32 %v214_v63  ;;  %v5817_v63 = vld [vmem:[#allocation7 + $0x730] ss:$20 sps:$4 sm:$0xff]  }
 0x12b   :  { %v6410_v10 = vpop.eup %6409 }
 0x12c   :  { %v217_v5 = vmul.f32 %v6410_v10, %v205_v0  ;;  %v219_v15 = vmul.f32 %v6410_v10, %v207_v1  ;;  %v216_v4 = vmul.f32 %v6410_v10, %v204_v2  ;;  %v218_v18 = vmul.f32 %v6410_v10, %v206_v3  ;;  %v5820_v0 = vld [vmem:[#allocation7 + $0x9b0] ss:$20 sps:$4 sm:$0xff]   ;;  %v5825_v1 = vld [vmem:[#allocation7 + $0x70c] ss:$20 sps:$4 sm:$0xff]   ;;  %v5823_v3 = vld [vmem:[#allocation7 + $0x708] ss:$20 sps:$4 sm:$0xff]  }
 0x12d   :  { %v221_v6 = vmul.f32 %v6410_v10, %v209_v7  ;;  %v223_v19 = vmul.f32 %v6410_v10, %v211_v9  ;;  %v6774_v25 = vmul.f32 %v6410_v10, %v208_v11  ;;  %v6776_v38 = vmul.f32 %v6410_v10, %v210_v12  ;;  %v5828_v2 = vld [vmem:[#allocation7 + $0x98c] ss:$20 sps:$4 sm:$0xff]   ;;  %v5826_v7 = vld [vmem:[#allocation7 + $0x988] ss:$20 sps:$4 sm:$0xff]   ;;  %v5831_v9 = vld [vmem:[#allocation7 + $0x6e4] ss:$20 sps:$4 sm:$0xff]  }
 0x12e   :  { %v6778_v20 = vpack.c.bf16 %v217_v5, %v217_v5  ;;  %v6780_v17 = vpack.c.bf16 %v219_v15, %v219_v15  ;;  %v6782_v32 = vpack.c.bf16 %v216_v4, %v216_v4  ;;  %v6784_v51 = vpack.c.bf16 %v218_v18, %v218_v18  ;;  %v5829_v11 = vld [vmem:[#allocation7 + $0x6e0] ss:$20 sps:$4 sm:$0xff]   ;;  %v5835_v5 = vld [vmem:[#allocation7 + $0x6b8] ss:$20 sps:$4 sm:$0xff]   ;;  %v5841_v4 = vld [vmem:[#allocation7 + $0x690] ss:$20 sps:$4 sm:$0xff]  }
 0x12f   :  { %v6788_v22 = vmul.f32 %v6410_v10, %v213_v13  ;;  %v6790_v23 = vmul.f32 %v6410_v10, %v212_v14  ;;  %v6794_v24 = vpack.c.bf16 %v221_v6, %v221_v6  ;;  %v6796_v26 = vpack.c.bf16 %v223_v19, %v223_v19  ;;  %v5834_v10 = vld [vmem:[#allocation7 + $0x964] ss:$20 sps:$4 sm:$0xff]   ;;  %v5832_v12 = vld [vmem:[#allocation7 + $0x960] ss:$20 sps:$4 sm:$0xff]   ;;  %v5837_v13 = vld [vmem:[#allocation7 + $0x6bc] ss:$20 sps:$4 sm:$0xff]  }
 0x130   :  { %2855 = vmatprep.mubr.bf16.mxu0 %v6778_v20  ;;  %2896 = vmatprep.mubr.bf16.mxu1 %v6780_v17  ;;  %v5840_v14 = vld [vmem:[#allocation7 + $0x93c] ss:$20 sps:$4 sm:$0xff]   ;;  %v5838_v15 = vld [vmem:[#allocation7 + $0x938] ss:$20 sps:$4 sm:$0xff]  }
 0x131   :  { %2856 = vmatmul.mubr.bf16.vlgmr.msra.gmra.mxu0 %v6782_v32  ;;  %2897 = vmatmul.mubr.bf16.vlgmr.msra.gmra.mxu1 %v6784_v51  ;;  %v5844_v18 = vld [vmem:[#allocation7 + $0x910] ss:$20 sps:$4 sm:$0xff]   ;;  %v5849_v6 = vld [vmem:[#allocation7 + $0x66c] ss:$20 sps:$4 sm:$0xff]  }
 0x132   :  { %2906 = vmatpush1.bf16.msra.mxu0 %v5763_v8  ;;  %2947 = vmatpush1.bf16.msra.mxu1 %v5766_v16  ;;  %v5843_v8 = vld [vmem:[#allocation7 + $0x694] ss:$20 sps:$4 sm:$0xff]   ;;  %v5852_v19 = vld [vmem:[#allocation7 + $0x8ec] ss:$20 sps:$4 sm:$0xff]  }
 0x133   :  { %2937 = vmatprep.mubr.bf16.mxu0 %v6794_v24  ;;  %2978 = vmatprep.mubr.bf16.mxu1 %v6796_v26  ;;  %v5846_v16 = vld [vmem:[#allocation7 + $0x914] ss:$20 sps:$4 sm:$0xff]  }
 0x134   :  { %2907 = vmatprep.subr.bf16.mxu0 %v5771_v44  ;;  %2948 = vmatprep.subr.bf16.mxu1 %v5774_v21  ;;  %v5847_v44 = vld [vmem:[#allocation7 + $0x668] ss:$20 sps:$4 sm:$0xff]  }
 0x135   :  { %v5850_v21 = vld [vmem:[#allocation7 + $0x8e8] ss:$20 sps:$4 sm:$0xff]  }
 0x136   :  { %2908 = vmatpush1.bf16.msra.mxu0 %v5769_v27  ;;  %2949 = vmatpush1.bf16.msra.mxu1 %v5772_v28  ;;  %v5855_v27 = vld [vmem:[#allocation7 + $0x644] ss:$20 sps:$4 sm:$0xff]  }
 0x137   :  { %2909 = vmatprep.subr.bf16.mxu0 %v5777_v29  ;;  %2950 = vmatprep.subr.bf16.mxu1 %v5780_v30  ;;  %v5858_v28 = vld [vmem:[#allocation7 + $0x8c4] ss:$20 sps:$4 sm:$0xff]   ;;  %v5853_v29 = vld [vmem:[#allocation7 + $0x640] ss:$20 sps:$4 sm:$0xff]  }
 0x138   :  { %v5856_v30 = vld [vmem:[#allocation7 + $0x8c0] ss:$20 sps:$4 sm:$0xff]  }
 0x13a   :  { %2910 = vmatpush1.bf16.msra.mxu0 %v5775_v31  ;;  %2951 = vmatpush1.bf16.msra.mxu1 %v5778_v33  ;;  %v5861_v31 = vld [vmem:[#allocation7 + $0xb1c] ss:$20 sps:$4 sm:$0xff]   ;;  %v5864_v33 = vld [vmem:[#allocation7 + $0x124] ss:$20 sps:$4 sm:$0xff]  }
 0x13b   :  { %2911 = vmatprep.subr.bf16.mxu0 %v5783_v34  ;;  %2952 = vmatprep.subr.bf16.mxu1 %v5786_v35  ;;  %v5859_v34 = vld [vmem:[#allocation7 + $0xb18] ss:$20 sps:$4 sm:$0xff]   ;;  %v5862_v35 = vld [vmem:[#allocation7 + $0x120] ss:$20 sps:$4 sm:$0xff]  }
 0x13e   :  { %2912 = vmatpush1.bf16.msra.mxu0 %v5781_v36  ;;  %2953 = vmatpush1.bf16.msra.mxu1 %v5784_v37  ;;  %v5867_v36 = vld [vmem:[#allocation7 + $0xaf4] ss:$20 sps:$4 sm:$0xff]   ;;  %v5870_v37 = vld [vmem:[#allocation7 + $0xfc] ss:$20 sps:$4 sm:$0xff]  }
 0x13f   :  { %2913 = vmatprep.subr.bf16.mxu0 %v5789_v39  ;;  %2954 = vmatprep.subr.bf16.mxu1 %v5792_v40  ;;  %v6802_v39 = vpack.c.bf16 %v6774_v25, %v6774_v25  ;;  %v6806_v40 = vpack.c.bf16 %v6776_v38, %v6776_v38  ;;  %v5868_v25 = vld [vmem:[#allocation7 + $0xf8] ss:$20 sps:$4 sm:$0xff]  }
 0x140   :  { %v5873_v38 = vld [vmem:[#allocation7 + $0xacc] ss:$20 sps:$4 sm:$0xff]  }
 0x142   :  { %2914 = vmatpush1.bf16.msra.mxu0 %v5787_v41  ;;  %2955 = vmatpush1.bf16.msra.mxu1 %v5790_v42  ;;  %v6810_v41 = vpack.c.bf16 %v6788_v22, %v6788_v22  ;;  %v5865_v42 = vld [vmem:[#allocation7 + $0xaf0] ss:$20 sps:$4 sm:$0xff]  }
 0x143   :  { %2915 = vmatprep.subr.bf16.mxu0 %v5795_v43  ;;  %2956 = vmatprep.subr.bf16.mxu1 %v5798_v45  ;;  %v5876_v43 = vld [vmem:[#allocation7 + $0xd4] ss:$20 sps:$4 sm:$0xff]   ;;  %v5874_v22 = vld [vmem:[#allocation7 + $0xd0] ss:$20 sps:$4 sm:$0xff]  }
 0x144   :  { %v5871_v45 = vld [vmem:[#allocation7 + $0xac8] ss:$20 sps:$4 sm:$0xff]  }
 0x146   :  { %2916 = vmatpush1.bf16.msra.mxu0 %v5793_v46  ;;  %2957 = vmatpush1.bf16.msra.mxu1 %v5796_v47  ;;  %v5879_v46 = vld [vmem:[#allocation7 + $0xaa4] ss:$20 sps:$4 sm:$0xff]   ;;  %v5877_v47 = vld [vmem:[#allocation7 + $0xaa0] ss:$20 sps:$4 sm:$0xff]  }
 0x147   :  { %2917 = vmatprep.subr.bf16.mxu0 %v5801_v48  ;;  %2958 = vmatprep.subr.bf16.mxu1 %v5804_v49  ;;  %v5882_v48 = vld [vmem:[#allocation7 + $0xac] ss:$20 sps:$4 sm:$0xff]   ;;  %v5880_v49 = vld [vmem:[#allocation7 + $0xa8] ss:$20 sps:$4 sm:$0xff]  }
 0x14a   :  { %2918 = vmatpush1.bf16.msra.mxu0 %v5799_v50  ;;  %2959 = vmatpush1.bf16.msra.mxu1 %v5802_v52  ;;  %v5885_v50 = vld [vmem:[#allocation7 + $0xa7c] ss:$20 sps:$4 sm:$0xff]   ;;  %v5883_v52 = vld [vmem:[#allocation7 + $0xa78] ss:$20 sps:$4 sm:$0xff]  }
 0x14b   :  { %2919 = vmatprep.subr.bf16.mxu0 %v5807_v53  ;;  %2960 = vmatprep.subr.bf16.mxu1 %v5810_v54  ;;  %v5888_v53 = vld [vmem:[#allocation7 + $0x84] ss:$20 sps:$4 sm:$0xff]   ;;  %v5886_v54 = vld [vmem:[#allocation7 + $0x80] ss:$20 sps:$4 sm:$0xff]  }
 0x14e   :  { %2920 = vmatpush1.bf16.msra.mxu0 %v5805_v55  ;;  %2961 = vmatpush1.bf16.msra.mxu1 %v5808_v56  ;;  %v5891_v55 = vld [vmem:[#allocation7 + $0xa54] ss:$20 sps:$4 sm:$0xff]   ;;  %v5889_v56 = vld [vmem:[#allocation7 + $0xa50] ss:$20 sps:$4 sm:$0xff]  }
 0x14f   :  { %2921 = vmatprep.subr.bf16.mxu0 %v5813_v57  ;;  %2962 = vmatprep.subr.bf16.mxu1 %v5816_v58  ;;  %v5894_v57 = vld [vmem:[#allocation7 + $0x5c] ss:$20 sps:$4 sm:$0xff]   ;;  %v5892_v58 = vld [vmem:[#allocation7 + $0x58] ss:$20 sps:$4 sm:$0xff]  }
 0x152   :  { %2922 = vmatpush2.bf16.msra.mxu0 %v5811_v59  ;;  %2963 = vmatpush2.bf16.msra.mxu1 %v5814_v60  ;;  %v5897_v59 = vld [vmem:[#allocation7 + $0xa2c] ss:$20 sps:$4 sm:$0xff]   ;;  %v5895_v60 = vld [vmem:[#allocation7 + $0xa28] ss:$20 sps:$4 sm:$0xff]  }
 0x153   :  { %2923 = vmatprep.subr.bf16.mxu0 %v5819_v61  ;;  %2964 = vmatprep.subr.bf16.mxu1 %v5822_v62  ;;  %v5900_v61 = vld [vmem:[#allocation7 + $0x34] ss:$20 sps:$4 sm:$0xff]   ;;  %v5898_v62 = vld [vmem:[#allocation7 + $0x30] ss:$20 sps:$4 sm:$0xff]  }
 0x156   :  { %2924 = vmatpush2.bf16.msra.mxu0 %v5817_v63  ;;  %2965 = vmatpush2.bf16.msra.mxu1 %v5820_v0  ;;  %v5903_v63 = vld [vmem:[#allocation7 + $0xa04] ss:$20 sps:$4 sm:$0xff]   ;;  %v5901_v0 = vld [vmem:[#allocation7 + $0xa00] ss:$20 sps:$4 sm:$0xff]  }
 0x157   :  { %2925 = vmatprep.subr.bf16.mxu0 %v5825_v1  ;;  %2966 = vmatprep.subr.bf16.mxu1 %v5828_v2  ;;  %v5906_v1 = vld [vmem:[#allocation7 + $0xc] ss:$20 sps:$4 sm:$0xff]   ;;  %v5904_v2 = vld [vmem:[#allocation7 + $0x8] ss:$20 sps:$4 sm:$0xff]  }
 0x15a   :  { %2926 = vmatpush2.bf16.msra.mxu0 %v5823_v3  ;;  %2967 = vmatpush2.bf16.msra.mxu1 %v5826_v7  ;;  %v5909_v3 = vld [vmem:[#allocation7 + $0xc5c] ss:$20 sps:$4 sm:$0xff]   ;;  %v5907_v7 = vld [vmem:[#allocation7 + $0xc58] ss:$20 sps:$4 sm:$0xff]  }
 0x15b   :  { %2927 = vmatprep.subr.bf16.mxu0 %v5831_v9  ;;  %2968 = vmatprep.subr.bf16.mxu1 %v5834_v10  ;;  %v5912_v9 = vld [vmem:[#allocation7 + $0x264] ss:$20 sps:$4 sm:$0xff]   ;;  %v5910_v10 = vld [vmem:[#allocation7 + $0x260] ss:$20 sps:$4 sm:$0xff]  }
 0x15e   :  { %2928 = vmatpush2.bf16.msra.mxu0 %v5829_v11  ;;  %2969 = vmatpush2.bf16.msra.mxu1 %v5832_v12  ;;  %v5915_v11 = vld [vmem:[#allocation7 + $0xc34] ss:$20 sps:$4 sm:$0xff]   ;;  %v5913_v12 = vld [vmem:[#allocation7 + $0xc30] ss:$20 sps:$4 sm:$0xff]  }
 0x15f   :  { %2929 = vmatprep.subr.bf16.mxu0 %v5837_v13  ;;  %2970 = vmatprep.subr.bf16.mxu1 %v5840_v14  ;;  %v5918_v13 = vld [vmem:[#allocation7 + $0x23c] ss:$20 sps:$4 sm:$0xff]   ;;  %v5916_v14 = vld [vmem:[#allocation7 + $0x238] ss:$20 sps:$4 sm:$0xff]  }
 0x162   :  { %2930 = vmatpush2.bf16.msra.mxu0 %v5835_v5  ;;  %2971 = vmatpush2.bf16.msra.mxu1 %v5838_v15  ;;  %v5921_v5 = vld [vmem:[#allocation7 + $0xc0c] ss:$20 sps:$4 sm:$0xff]   ;;  %v5919_v15 = vld [vmem:[#allocation7 + $0xc08] ss:$20 sps:$4 sm:$0xff]  }
 0x163   :  { %2931 = vmatprep.subr.bf16.mxu0 %v5843_v8  ;;  %2972 = vmatprep.subr.bf16.mxu1 %v5846_v16  ;;  %v5924_v8 = vld [vmem:[#allocation7 + $0x214] ss:$20 sps:$4 sm:$0xff]   ;;  %v5922_v16 = vld [vmem:[#allocation7 + $0x210] ss:$20 sps:$4 sm:$0xff]  }
 0x166   :  { %2932 = vmatpush2.bf16.msra.mxu0 %v5841_v4  ;;  %2973 = vmatpush2.bf16.msra.mxu1 %v5844_v18  ;;  %v5927_v4 = vld [vmem:[#allocation7 + $0xbe4] ss:$20 sps:$4 sm:$0xff]   ;;  %v5925_v18 = vld [vmem:[#allocation7 + $0xbe0] ss:$20 sps:$4 sm:$0xff]  }
 0x167   :  { %2933 = vmatprep.subr.bf16.mxu0 %v5849_v6  ;;  %2974 = vmatprep.subr.bf16.mxu1 %v5852_v19  ;;  %v5930_v6 = vld [vmem:[#allocation7 + $0x1ec] ss:$20 sps:$4 sm:$0xff]   ;;  %v5928_v19 = vld [vmem:[#allocation7 + $0x1e8] ss:$20 sps:$4 sm:$0xff]  }
 0x16a   :  { %2934 = vmatpush2.bf16.msra.mxu0 %v5847_v44  ;;  %2975 = vmatpush2.bf16.msra.mxu1 %v5850_v21  ;;  %v5933_v44 = vld [vmem:[#allocation7 + $0xbbc] ss:$20 sps:$4 sm:$0xff]   ;;  %v5931_v21 = vld [vmem:[#allocation7 + $0xbb8] ss:$20 sps:$4 sm:$0xff]  }
 0x16b   :  { %2935 = vmatprep.subr.bf16.mxu0 %v5855_v27  ;;  %2976 = vmatprep.subr.bf16.mxu1 %v5858_v28  ;;  %v5936_v27 = vld [vmem:[#allocation7 + $0x1c4] ss:$20 sps:$4 sm:$0xff]   ;;  %v5934_v28 = vld [vmem:[#allocation7 + $0x1c0] ss:$20 sps:$4 sm:$0xff]  }
 0x16e   :  { %2936 = vmatpush2.bf16.msra.mxu0 %v5853_v29  ;;  %2977 = vmatpush2.bf16.msra.mxu1 %v5856_v30  ;;  %v5939_v29 = vld [vmem:[#allocation7 + $0xb94] ss:$20 sps:$4 sm:$0xff]   ;;  %v5937_v30 = vld [vmem:[#allocation7 + $0xb90] ss:$20 sps:$4 sm:$0xff]  }
 0x16f   :  { %2987 = vmatprep.subr.bf16.mxu0 %v5861_v31  ;;  %3028 = vmatprep.subr.bf16.mxu1 %v5864_v33  ;;  %v5942_v31 = vld [vmem:[#allocation7 + $0x19c] ss:$20 sps:$4 sm:$0xff]   ;;  %v5940_v33 = vld [vmem:[#allocation7 + $0x198] ss:$20 sps:$4 sm:$0xff]  }
 0x171   :  { %2938 = vmatmul.mubr.bf16.vlgmr.msra.gmra.mxu0 %v6802_v39  ;;  %2979 = vmatmul.mubr.bf16.vlgmr.msra.gmra.mxu1 %v6806_v40 }
 0x172   :  { %2988 = vmatpush1.bf16.msra.mxu0 %v5859_v34  ;;  %3019 = vmatprep.mubr.bf16.mxu0 %v6810_v41  ;;  %v5945_v34 = vld [vmem:[#allocation7 + $0xb6c] ss:$20 sps:$4 sm:$0xff]  }
 0x173   :  { %3029 = vmatpush1.bf16.msra.mxu1 %v5862_v35  ;;  %3060 = vmatprep.mubr.bf16.mxu1 %v6778_v20  ;;  %v5943_v35 = vld [vmem:[#allocation7 + $0xb68] ss:$20 sps:$4 sm:$0xff]  }
 0x174   :  { %2989 = vmatprep.subr.bf16.mxu0 %v5867_v36  ;;  %3030 = vmatprep.subr.bf16.mxu1 %v5870_v37  ;;  %v5948_v36 = vld [vmem:[#allocation7 + $0x174] ss:$20 sps:$4 sm:$0xff]   ;;  %v5946_v37 = vld [vmem:[#allocation7 + $0x170] ss:$20 sps:$4 sm:$0xff]  }
 0x176   :  { %2990 = vmatpush1.bf16.msra.mxu0 %v5865_v42  ;;  %v5951_v42 = vld [vmem:[#allocation7 + $0xb44] ss:$20 sps:$4 sm:$0xff]  }
 0x177   :  { %3031 = vmatpush1.bf16.msra.mxu1 %v5868_v25  ;;  %2991 = vmatprep.subr.bf16.mxu0 %v5873_v38  ;;  %v5949_v25 = vld [vmem:[#allocation7 + $0xb40] ss:$20 sps:$4 sm:$0xff]  }
 0x178   :  { %3032 = vmatprep.subr.bf16.mxu1 %v5876_v43  ;;  %v5954_v38 = vld [vmem:[#allocation7 + $0x14c] ss:$20 sps:$4 sm:$0xff]   ;;  %v5952_v43 = vld [vmem:[#allocation7 + $0x148] ss:$20 sps:$4 sm:$0xff]  }
 0x17a   :  { %2992 = vmatpush1.bf16.msra.mxu0 %v5871_v45  ;;  %v5957_v45 = vld [vmem:[#allocation7 + $0x3a4] ss:$20 sps:$4 sm:$0xff]  }
 0x17b   :  { %3033 = vmatpush1.bf16.msra.mxu1 %v5874_v22  ;;  %2993 = vmatprep.subr.bf16.mxu0 %v5879_v46  ;;  %v5955_v22 = vld [vmem:[#allocation7 + $0x3a0] ss:$20 sps:$4 sm:$0xff]   ;;  %v5960_v46 = vld [vmem:[#allocation7 + $0x624] ss:$20 sps:$4 sm:$0xff]  }
 0x17c   :  { %3034 = vmatprep.subr.bf16.mxu1 %v5882_v48  ;;  %v5963_v48 = vld [vmem:[#allocation7 + $0x37c] ss:$20 sps:$4 sm:$0xff]  }
 0x17e   :  { %2994 = vmatpush1.bf16.msra.mxu0 %v5877_v47  ;;  %v5958_v47 = vld [vmem:[#allocation7 + $0x620] ss:$20 sps:$4 sm:$0xff]  }
 0x17f   :  { %3035 = vmatpush1.bf16.msra.mxu1 %v5880_v49  ;;  %2995 = vmatprep.subr.bf16.mxu0 %v5885_v50  ;;  %v6818_v49 = vpack.c.bf16 %v6790_v23, %v6790_v23  ;;  %v5966_v50 = vld [vmem:[#allocation7 + $0x5fc] ss:$20 sps:$4 sm:$0xff]  }
 0x180   :  { %3036 = vmatprep.subr.bf16.mxu1 %v5888_v53  ;;  %v5964_v53 = vld [vmem:[#allocation7 + $0x5f8] ss:$20 sps:$4 sm:$0xff]   ;;  %v5967_v23 = vld [vmem:[#allocation7 + $0x350] ss:$20 sps:$4 sm:$0xff]  }
 0x182   :  { %2996 = vmatpush1.bf16.msra.mxu0 %v5883_v52  ;;  %v5961_v52 = vld [vmem:[#allocation7 + $0x378] ss:$20 sps:$4 sm:$0xff]  }
 0x183   :  { %3037 = vmatpush1.bf16.msra.mxu1 %v5886_v54  ;;  %2997 = vmatprep.subr.bf16.mxu0 %v5891_v55  ;;  %v5969_v54 = vld [vmem:[#allocation7 + $0x354] ss:$20 sps:$4 sm:$0xff]  }
 0x184   :  { %3038 = vmatprep.subr.bf16.mxu1 %v5894_v57  ;;  %v5972_v55 = vld [vmem:[#allocation7 + $0x5d4] ss:$20 sps:$4 sm:$0xff]   ;;  %v5975_v57 = vld [vmem:[#allocation7 + $0x32c] ss:$20 sps:$4 sm:$0xff]  }
 0x186   :  { %2998 = vmatpush1.bf16.msra.mxu0 %v5889_v56  ;;  %v5970_v56 = vld [vmem:[#allocation7 + $0x5d0] ss:$20 sps:$4 sm:$0xff]  }
 0x187   :  { %3039 = vmatpush1.bf16.msra.mxu1 %v5892_v58  ;;  %2999 = vmatprep.subr.bf16.mxu0 %v5897_v59  ;;  %v5978_v58 = vld [vmem:[#allocation7 + $0x5ac] ss:$20 sps:$4 sm:$0xff]   ;;  %v5973_v59 = vld [vmem:[#allocation7 + $0x328] ss:$20 sps:$4 sm:$0xff]  }
 0x188   :  { %3040 = vmatprep.subr.bf16.mxu1 %v5900_v61  ;;  %v5981_v61 = vld [vmem:[#allocation7 + $0x304] ss:$20 sps:$4 sm:$0xff]  }
 0x18a   :  { %3000 = vmatpush1.bf16.msra.mxu0 %v5895_v60  ;;  %v5976_v60 = vld [vmem:[#allocation7 + $0x5a8] ss:$20 sps:$4 sm:$0xff]  }
 0x18b   :  { %3041 = vmatpush1.bf16.msra.mxu1 %v5898_v62  ;;  %3001 = vmatprep.subr.bf16.mxu0 %v5903_v63  ;;  %v5984_v62 = vld [vmem:[#allocation7 + $0x584] ss:$20 sps:$4 sm:$0xff]   ;;  %v5979_v63 = vld [vmem:[#allocation7 + $0x300] ss:$20 sps:$4 sm:$0xff]  }
 0x18c   :  { %3042 = vmatprep.subr.bf16.mxu1 %v5906_v1  ;;  %v5987_v1 = vld [vmem:[#allocation7 + $0x2dc] ss:$20 sps:$4 sm:$0xff]  }
 0x18e   :  { %3002 = vmatpush1.bf16.msra.mxu0 %v5901_v0  ;;  %v5982_v0 = vld [vmem:[#allocation7 + $0x580] ss:$20 sps:$4 sm:$0xff]  }
 0x18f   :  { %3043 = vmatpush1.bf16.msra.mxu1 %v5904_v2  ;;  %3003 = vmatprep.subr.bf16.mxu0 %v5909_v3  ;;  %v5990_v2 = vld [vmem:[#allocation7 + $0x55c] ss:$20 sps:$4 sm:$0xff]   ;;  %v5985_v3 = vld [vmem:[#allocation7 + $0x2d8] ss:$20 sps:$4 sm:$0xff]  }
 0x190   :  { %3044 = vmatprep.subr.bf16.mxu1 %v5912_v9  ;;  %v5993_v9 = vld [vmem:[#allocation7 + $0x2b4] ss:$20 sps:$4 sm:$0xff]  }
 0x192   :  { %3004 = vmatpush2.bf16.msra.mxu0 %v5907_v7  ;;  %v5988_v7 = vld [vmem:[#allocation7 + $0x558] ss:$20 sps:$4 sm:$0xff]  }
 0x193   :  { %3045 = vmatpush2.bf16.msra.mxu1 %v5910_v10  ;;  %3005 = vmatprep.subr.bf16.mxu0 %v5915_v11  ;;  %v5996_v10 = vld [vmem:[#allocation7 + $0x534] ss:$20 sps:$4 sm:$0xff]   ;;  %v5991_v11 = vld [vmem:[#allocation7 + $0x2b0] ss:$20 sps:$4 sm:$0xff]  }
 0x194   :  { %3046 = vmatprep.subr.bf16.mxu1 %v5918_v13  ;;  %v5999_v13 = vld [vmem:[#allocation7 + $0x28c] ss:$20 sps:$4 sm:$0xff]  }
 0x196   :  { %3006 = vmatpush2.bf16.msra.mxu0 %v5913_v12  ;;  %v5994_v12 = vld [vmem:[#allocation7 + $0x530] ss:$20 sps:$4 sm:$0xff]  }
 0x197   :  { %3047 = vmatpush2.bf16.msra.mxu1 %v5916_v14  ;;  %3007 = vmatprep.subr.bf16.mxu0 %v5921_v5  ;;  %v6002_v14 = vld [vmem:[#allocation7 + $0x50c] ss:$20 sps:$4 sm:$0xff]   ;;  %v5997_v5 = vld [vmem:[#allocation7 + $0x288] ss:$20 sps:$4 sm:$0xff]  }
 0x198   :  { %3048 = vmatprep.subr.bf16.mxu1 %v5924_v8  ;;  %v6005_v8 = vld [vmem:[#allocation7 + $0x4e4] ss:$20 sps:$4 sm:$0xff]  }
 0x19a   :  { %3008 = vmatpush2.bf16.msra.mxu0 %v5919_v15  ;;  %v6000_v15 = vld [vmem:[#allocation7 + $0x508] ss:$20 sps:$4 sm:$0xff]  }
 0x19b   :  { %3049 = vmatpush2.bf16.msra.mxu1 %v5922_v16  ;;  %3009 = vmatprep.subr.bf16.mxu0 %v5927_v4  ;;  %v6008_v16 = vld [vmem:[#allocation7 + $0x764] ss:$20 sps:$4 sm:$0xff]   ;;  %v6003_v4 = vld [vmem:[#allocation7 + $0x4e0] ss:$20 sps:$4 sm:$0xff]  }
 0x19c   :  { %3050 = vmatprep.subr.bf16.mxu1 %v5930_v6  ;;  %v6011_v6 = vld [vmem:[#allocation7 + $0x4bc] ss:$20 sps:$4 sm:$0xff]  }
 0x19e   :  { %3010 = vmatpush2.bf16.msra.mxu0 %v5925_v18  ;;  %v6006_v18 = vld [vmem:[#allocation7 + $0x760] ss:$20 sps:$4 sm:$0xff]  }
 0x19f   :  { %3051 = vmatpush2.bf16.msra.mxu1 %v5928_v19  ;;  %3011 = vmatprep.subr.bf16.mxu0 %v5933_v44  ;;  %v6014_v19 = vld [vmem:[#allocation7 + $0x73c] ss:$20 sps:$4 sm:$0xff]   ;;  %v6009_v44 = vld [vmem:[#allocation7 + $0x4b8] ss:$20 sps:$4 sm:$0xff]  }
 0x1a0   :  { %3052 = vmatprep.subr.bf16.mxu1 %v5936_v27  ;;  %v6017_v27 = vld [vmem:[#allocation7 + $0x494] ss:$20 sps:$4 sm:$0xff]  }
 0x1a2   :  { %3012 = vmatpush2.bf16.msra.mxu0 %v5931_v21  ;;  %v6012_v21 = vld [vmem:[#allocation7 + $0x738] ss:$20 sps:$4 sm:$0xff]  }
 0x1a3   :  { %3053 = vmatpush2.bf16.msra.mxu1 %v5934_v28  ;;  %3013 = vmatprep.subr.bf16.mxu0 %v5939_v29  ;;  %v6020_v28 = vld [vmem:[#allocation7 + $0x714] ss:$20 sps:$4 sm:$0xff]   ;;  %v6015_v29 = vld [vmem:[#allocation7 + $0x490] ss:$20 sps:$4 sm:$0xff]  }
 0x1a4   :  { %3054 = vmatprep.subr.bf16.mxu1 %v5942_v31  ;;  %v6023_v31 = vld [vmem:[#allocation7 + $0x46c] ss:$20 sps:$4 sm:$0xff]  }
 0x1a6   :  { %3014 = vmatpush2.bf16.msra.mxu0 %v5937_v30  ;;  %v6018_v30 = vld [vmem:[#allocation7 + $0x710] ss:$20 sps:$4 sm:$0xff]  }
 0x1a7   :  { %3055 = vmatpush2.bf16.msra.mxu1 %v5940_v33  ;;  %3015 = vmatprep.subr.bf16.mxu0 %v5945_v34  ;;  %v6026_v33 = vld [vmem:[#allocation7 + $0x6ec] ss:$20 sps:$4 sm:$0xff]   ;;  %v6021_v34 = vld [vmem:[#allocation7 + $0x468] ss:$20 sps:$4 sm:$0xff]  }
 0x1a8   :  { %3056 = vmatprep.subr.bf16.mxu1 %v5948_v36  ;;  %v6029_v36 = vld [vmem:[#allocation7 + $0x444] ss:$20 sps:$4 sm:$0xff]  }
 0x1aa   :  { %3016 = vmatpush2.bf16.msra.mxu0 %v5943_v35  ;;  %v6024_v35 = vld [vmem:[#allocation7 + $0x6e8] ss:$20 sps:$4 sm:$0xff]  }
 0x1ab   :  { %3057 = vmatpush2.bf16.msra.mxu1 %v5946_v37  ;;  %3017 = vmatprep.subr.bf16.mxu0 %v5951_v42  ;;  %v6032_v37 = vld [vmem:[#allocation7 + $0x6c4] ss:$20 sps:$4 sm:$0xff]   ;;  %v6027_v42 = vld [vmem:[#allocation7 + $0x440] ss:$20 sps:$4 sm:$0xff]  }
 0x1ac   :  { %3058 = vmatprep.subr.bf16.mxu1 %v5954_v38  ;;  %v6035_v38 = vld [vmem:[#allocation7 + $0x41c] ss:$20 sps:$4 sm:$0xff]  }
 0x1ae   :  { %3018 = vmatpush2.bf16.msra.mxu0 %v5949_v25  ;;  %v6030_v25 = vld [vmem:[#allocation7 + $0x6c0] ss:$20 sps:$4 sm:$0xff]  }
 0x1af   :  { %3059 = vmatpush2.bf16.msra.mxu1 %v5952_v43  ;;  %3069 = vmatprep.subr.bf16.mxu0 %v5957_v45  ;;  %v6038_v43 = vld [vmem:[#allocation7 + $0x69c] ss:$20 sps:$4 sm:$0xff]   ;;  %v6033_v45 = vld [vmem:[#allocation7 + $0x418] ss:$20 sps:$4 sm:$0xff]  }
 0x1b0   :  { %3110 = vmatprep.subr.bf16.mxu1 %v5960_v46  ;;  %v6036_v46 = vld [vmem:[#allocation7 + $0x698] ss:$20 sps:$4 sm:$0xff]  }
 0x1b1   :  { %3020 = vmatmul.mubr.bf16.vlgmr.msra.gmra.mxu0 %v6818_v49 }
 0x1b2   :  { %3061 = vmatmul.mubr.bf16.vlgmr.msra.gmra.mxu1 %v6782_v32  ;;  %3070 = vmatpush1.bf16.msra.mxu0 %v5955_v22  ;;  %v718_v22 = vlaneseq }
 0x1b3   :  { %3101 = vmatprep.mubr.bf16.mxu0 %v6780_v17  ;;  %3111 = vmatpush1.bf16.msra.mxu1 %v5958_v47  ;;  %v6041_v47 = vld [vmem:[#allocation7 + $0x3f4] ss:$20 sps:$4 sm:$0xff]  }
 0x1b4   :  { %3142 = vmatprep.mubr.bf16.mxu1 %v6794_v24  ;;  %3071 = vmatprep.subr.bf16.mxu0 %v5963_v48  ;;  %v6044_v48 = vld [vmem:[#allocation7 + $0x674] ss:$20 sps:$4 sm:$0xff]  }
 0x1b5   :  { %3112 = vmatprep.subr.bf16.mxu1 %v5966_v50  ;;  %v6039_v50 = vld [vmem:[#allocation7 + $0x3f0] ss:$20 sps:$4 sm:$0xff]  }
 0x1b6   :  { %3072 = vmatpush1.bf16.msra.mxu0 %v5961_v52  ;;  %v6824_v52 = vshrl.u32 %v718_v22, 7  ;;  %v6087_v22 = vld [vmem:[#allocation7 + $0x7b0] ss:$20 sps:$4 sm:$0xff]  }
 0x1b7   :  { %3113 = vmatpush1.bf16.msra.mxu1 %v5964_v53  ;;  %3073 = vmatprep.subr.bf16.mxu0 %v5969_v54  ;;  %v6042_v53 = vld [vmem:[#allocation7 + $0x670] ss:$20 sps:$4 sm:$0xff]   ;;  %v6047_v54 = vld [vmem:[#allocation7 + $0x3cc] ss:$20 sps:$4 sm:$0xff]  }
 0x1b8   :  { %3114 = vmatprep.subr.bf16.mxu1 %v5972_v55  ;;  %v6050_v55 = vld [vmem:[#allocation7 + $0x64c] ss:$20 sps:$4 sm:$0xff]  }
 0x1ba   :  { %3074 = vmatpush1.bf16.msra.mxu0 %v5967_v23  ;;  %v6045_v23 = vld [vmem:[#allocation7 + $0x3c8] ss:$20 sps:$4 sm:$0xff]  }
 0x1bb   :  { %3115 = vmatpush1.bf16.msra.mxu1 %v5970_v56  ;;  %3075 = vmatprep.subr.bf16.mxu0 %v5975_v57  ;;  %v720_v56 = vsub.s32 0, %v6824_v52  ;;  %v6048_v57 = vld [vmem:[#allocation7 + $0x648] ss:$20 sps:$4 sm:$0xff]  }
 0x1bc   :  { %3116 = vmatprep.subr.bf16.mxu1 %v5978_v58  ;;  %v6053_v58 = vld [vmem:[#allocation7 + $0x8a4] ss:$20 sps:$4 sm:$0xff]  }
 0x1be   :  { %3076 = vmatpush1.bf16.msra.mxu0 %v5973_v59  ;;  %v6827_v59 = vld [vmem:[#allocation8] sm:$0x1f] }
 0x1bf   :  { %3117 = vmatpush1.bf16.msra.mxu1 %v5976_v60  ;;  %3077 = vmatprep.subr.bf16.mxu0 %v5981_v61  ;;  %v6056_v60 = vld [vmem:[#allocation7 + $0xb24] ss:$20 sps:$4 sm:$0xff]   ;;  %v724_v61 = vsub.s32 1, %v6824_v52 }
 0x1c0   :  { %3118 = vmatprep.subr.bf16.mxu1 %v5984_v62  ;;  %v6051_v62 = vld [vmem:[#allocation7 + $0x8a0] ss:$20 sps:$4 sm:$0xff]  }
 0x1c2   :  { %3078 = vmatpush1.bf16.msra.mxu0 %v5979_v63  ;;  %v721_v63 = vrot.slane %v6827_v59, %v720_v56 }
 0x1c3   :  { %3119 = vmatpush1.bf16.msra.mxu1 %v5982_v0  ;;  %3079 = vmatprep.subr.bf16.mxu0 %v5987_v1  ;;  %v6054_v0 = vld [vmem:[#allocation7 + $0xb20] ss:$20 sps:$4 sm:$0xff]   ;;  %v725_v1 = vrot.slane %v6827_v59, %v724_v61 }
 0x1c4   :  { %3120 = vmatprep.subr.bf16.mxu1 %v5990_v2  ;;  %v6059_v2 = vld [vmem:[#allocation7 + $0x87c] ss:$20 sps:$4 sm:$0xff]  }
 0x1c6   :  { %3080 = vmatpush1.bf16.msra.mxu0 %v5985_v3 }
 0x1c7   :  { %3121 = vmatpush1.bf16.msra.mxu1 %v5988_v7  ;;  %3081 = vmatprep.subr.bf16.mxu0 %v5993_v9  ;;  %v6062_v9 = vld [vmem:[#allocation7 + $0xafc] ss:$20 sps:$4 sm:$0xff]  }
 0x1c8   :  { %3122 = vmatprep.subr.bf16.mxu1 %v5996_v10 }
 0x1ca   :  { %3082 = vmatpush1.bf16.msra.mxu0 %v5991_v11  ;;  %v6057_v11 = vld [vmem:[#allocation7 + $0x878] ss:$20 sps:$4 sm:$0xff]  }
 0x1cb   :  { %3123 = vmatpush1.bf16.msra.mxu1 %v5994_v12  ;;  %3083 = vmatprep.subr.bf16.mxu0 %v5999_v13 }
 0x1cc   :  { %3124 = vmatprep.subr.bf16.mxu1 %v6002_v14  ;;  %v6060_v14 = vld [vmem:[#allocation7 + $0xaf8] ss:$20 sps:$4 sm:$0xff]  }
 0x1ce   :  { %3084 = vmatpush1.bf16.msra.mxu0 %v5997_v5  ;;  %v6065_v5 = vld [vmem:[#allocation7 + $0x854] ss:$20 sps:$4 sm:$0xff]  }
 0x1cf   :  { %3125 = vmatpush1.bf16.msra.mxu1 %v6000_v15  ;;  %3085 = vmatprep.subr.bf16.mxu0 %v6005_v8 }
 0x1d0   :  { %3126 = vmatprep.subr.bf16.mxu1 %v6008_v16  ;;  %v6068_v16 = vld [vmem:[#allocation7 + $0xad4] ss:$20 sps:$4 sm:$0xff]  }
 0x1d2   :  { %3086 = vmatpush2.bf16.msra.mxu0 %v6003_v4 }
 0x1d3   :  { %3127 = vmatpush2.bf16.msra.mxu1 %v6006_v18  ;;  %3087 = vmatprep.subr.bf16.mxu0 %v6011_v6 }
 0x1d4   :  { %3128 = vmatprep.subr.bf16.mxu1 %v6014_v19  ;;  %v6063_v19 = vld [vmem:[#allocation7 + $0x850] ss:$20 sps:$4 sm:$0xff]  }
 0x1d6   :  { %3088 = vmatpush2.bf16.msra.mxu0 %v6009_v44 }
 0x1d7   :  { %3129 = vmatpush2.bf16.msra.mxu1 %v6012_v21  ;;  %3089 = vmatprep.subr.bf16.mxu0 %v6017_v27  ;;  %v6066_v27 = vld [vmem:[#allocation7 + $0xad0] ss:$20 sps:$4 sm:$0xff]  }
 0x1d8   :  { %3130 = vmatprep.subr.bf16.mxu1 %v6020_v28  ;;  %v6071_v28 = vld [vmem:[#allocation7 + $0x82c] ss:$20 sps:$4 sm:$0xff]  }
 0x1da   :  { %3090 = vmatpush2.bf16.msra.mxu0 %v6015_v29  ;;  %v6074_v29 = vld [vmem:[#allocation7 + $0xaac] ss:$20 sps:$4 sm:$0xff]  }
 0x1db   :  { %3131 = vmatpush2.bf16.msra.mxu1 %v6018_v30  ;;  %3091 = vmatprep.subr.bf16.mxu0 %v6023_v31  ;;  %v6069_v30 = vld [vmem:[#allocation7 + $0x828] ss:$20 sps:$4 sm:$0xff]  }
 0x1dc   :  { %3132 = vmatprep.subr.bf16.mxu1 %v6026_v33  ;;  %v6072_v31 = vld [vmem:[#allocation7 + $0xaa8] ss:$20 sps:$4 sm:$0xff]   ;;  %v6077_v33 = vld [vmem:[#allocation7 + $0x804] ss:$20 sps:$4 sm:$0xff]  }
 0x1de   :  { %3092 = vmatpush2.bf16.msra.mxu0 %v6021_v34  ;;  %v6080_v34 = vld [vmem:[#allocation7 + $0xa84] ss:$20 sps:$4 sm:$0xff]  }
 0x1df   :  { %3133 = vmatpush2.bf16.msra.mxu1 %v6024_v35  ;;  %3093 = vmatprep.subr.bf16.mxu0 %v6029_v36  ;;  %v6075_v35 = vld [vmem:[#allocation7 + $0x800] ss:$20 sps:$4 sm:$0xff]  }
 0x1e0   :  { %3134 = vmatprep.subr.bf16.mxu1 %v6032_v37  ;;  %v6078_v36 = vld [vmem:[#allocation7 + $0xa80] ss:$20 sps:$4 sm:$0xff]   ;;  %v6083_v37 = vld [vmem:[#allocation7 + $0x7dc] ss:$20 sps:$4 sm:$0xff]  }
 0x1e2   :  { %3094 = vmatpush2.bf16.msra.mxu0 %v6027_v42  ;;  %v6086_v42 = vld [vmem:[#allocation7 + $0xa5c] ss:$20 sps:$4 sm:$0xff]  }
 0x1e3   :  { %3135 = vmatpush2.bf16.msra.mxu1 %v6030_v25  ;;  %3095 = vmatprep.subr.bf16.mxu0 %v6035_v38  ;;  %v6081_v25 = vld [vmem:[#allocation7 + $0x7d8] ss:$20 sps:$4 sm:$0xff]  }
 0x1e4   :  { %3136 = vmatprep.subr.bf16.mxu1 %v6038_v43  ;;  %v6084_v38 = vld [vmem:[#allocation7 + $0xa58] ss:$20 sps:$4 sm:$0xff]   ;;  %v6089_v43 = vld [vmem:[#allocation7 + $0x7b4] ss:$20 sps:$4 sm:$0xff]  }
 0x1e6   :  { %3096 = vmatpush2.bf16.msra.mxu0 %v6033_v45  ;;  %v6092_v45 = vld [vmem:[#allocation7 + $0xa34] ss:$20 sps:$4 sm:$0xff]  }
 0x1e7   :  { %3137 = vmatpush2.bf16.msra.mxu1 %v6036_v46  ;;  %3097 = vmatprep.subr.bf16.mxu0 %v6041_v47  ;;  %v6090_v46 = vld [vmem:[#allocation7 + $0xa30] ss:$20 sps:$4 sm:$0xff]   ;;  %v6095_v47 = vld [vmem:[#allocation7 + $0x78c] ss:$20 sps:$4 sm:$0xff]  }
 0x1e8   :  { %3138 = vmatprep.subr.bf16.mxu1 %v6044_v48  ;;  %v6098_v48 = vld [vmem:[#allocation7 + $0xa0c] ss:$20 sps:$4 sm:$0xff]  }
 0x1ea   :  { %3098 = vmatpush2.bf16.msra.mxu0 %v6039_v50  ;;  %v6093_v50 = vld [vmem:[#allocation7 + $0x788] ss:$20 sps:$4 sm:$0xff]  }
 0x1eb   :  { %3139 = vmatpush2.bf16.msra.mxu1 %v6042_v53  ;;  %3099 = vmatprep.subr.bf16.mxu0 %v6047_v54  ;;  %v6096_v53 = vld [vmem:[#allocation7 + $0xa08] ss:$20 sps:$4 sm:$0xff]   ;;  %v6101_v54 = vld [vmem:[#allocation7 + $0x9e4] ss:$20 sps:$4 sm:$0xff]  }
 0x1ec   :  { %3140 = vmatprep.subr.bf16.mxu1 %v6050_v55  ;;  %v6104_v55 = vld [vmem:[#allocation7 + $0xc64] ss:$20 sps:$4 sm:$0xff]  }
 0x1ee   :  { %3100 = vmatpush2.bf16.msra.mxu0 %v6045_v23  ;;  %v6099_v23 = vld [vmem:[#allocation7 + $0x9e0] ss:$20 sps:$4 sm:$0xff]  }
 0x1ef   :  { %3141 = vmatpush2.bf16.msra.mxu1 %v6048_v57  ;;  %3151 = vmatprep.subr.bf16.mxu0 %v6053_v58  ;;  %v6102_v57 = vld [vmem:[#allocation7 + $0xc60] ss:$20 sps:$4 sm:$0xff]   ;;  %v6107_v58 = vld [vmem:[#allocation7 + $0x9bc] ss:$20 sps:$4 sm:$0xff]  }
 0x1f0   :  { %3192 = vmatprep.subr.bf16.mxu1 %v6056_v60  ;;  %v6110_v60 = vld [vmem:[#allocation7 + $0xc3c] ss:$20 sps:$4 sm:$0xff]  }
 0x1f1   :  { %3102 = vmatmul.mubr.bf16.vlgmr.msra.gmra.mxu0 %v6784_v51  ;;  %v2857_v3 = vpop.f32.mrf.mxu0  ;;  %v2898_v7 = vpop.f32.mrf.mxu1 }
 0x1f2   :  { %3143 = vmatmul.mubr.bf16.vlgmr.msra.gmra.mxu1 %v6802_v39  ;;  %v2858_v10 = vadd.f32 %v2857_v3, %v721_v63  ;;  %3152 = vmatpush1.bf16.msra.mxu0 %v6051_v62  ;;  %v6105_v62 = vld [vmem:[#allocation7 + $0x9b8] ss:$20 sps:$4 sm:$0xff]   ;;  %v6114_v3 = vld [vmem:[#allocation7 + $0xc10] ss:$20 sps:$4 sm:$0xff]  }
 0x1f3   :  { %3183 = vmatprep.mubr.bf16.mxu0 %v6796_v26  ;;  %3193 = vmatpush1.bf16.msra.mxu1 %v6054_v0  ;;  %v2859_v12 = vpop.f32.mrf.mxu0  ;;  %v2900_v13 = vpop.f32.mrf.mxu1  ;;  %v6108_v63 = vld [vmem:[#allocation7 + $0xc38] ss:$20 sps:$4 sm:$0xff]   ;;  %v6113_v0 = vld [vmem:[#allocation7 + $0x994] ss:$20 sps:$4 sm:$0xff]  }
 0x1f4   :  { %v6839_v15 = vadd.f32 %v2898_v7, %v2858_v10  ;;  %3224 = vmatprep.mubr.bf16.mxu1 %v6810_v41  ;;  %v2860_v8 = vadd.f32 %v2859_v12, %v725_v1  ;;  %3153 = vmatprep.subr.bf16.mxu0 %v6059_v2  ;;  %v6116_v1 = vld [vmem:[#allocation7 + $0xc14] ss:$20 sps:$4 sm:$0xff]   ;;  %v6111_v2 = vld [vmem:[#allocation7 + $0x990] ss:$20 sps:$4 sm:$0xff]   ;;  %v6119_v7 = vld [vmem:[#allocation7 + $0x96c] ss:$20 sps:$4 sm:$0xff]  }
 0x1f5   :  { %3194 = vmatprep.subr.bf16.mxu1 %v6062_v9  ;;  %v2861_v4 = vpop.f32.mrf.mxu0  ;;  %v2902_v18 = vpop.f32.mrf.mxu1  ;;  %v6122_v9 = vld [vmem:[#allocation7 + $0xbec] ss:$20 sps:$4 sm:$0xff]   ;;  %v6117_v10 = vld [vmem:[#allocation7 + $0x968] ss:$20 sps:$4 sm:$0xff]   ;;  %v6125_v12 = vld [vmem:[#allocation7 + $0x944] ss:$20 sps:$4 sm:$0xff]  }
 0x1f6   :  { %v6842_v6 = vadd.f32 %v2900_v13, %v2860_v8  ;;  %3154 = vmatpush1.bf16.msra.mxu0 %v6057_v11  ;;  %v6120_v11 = vld [vmem:[#allocation7 + $0xbe8] ss:$20 sps:$4 sm:$0xff]   ;;  %v6128_v13 = vld [vmem:[#allocation7 + $0xbc4] ss:$20 sps:$4 sm:$0xff]  }
 0x1f7   :  { %3195 = vmatpush1.bf16.msra.mxu1 %v6060_v14  ;;  %v2862_v44 = vpop.f32.mrf.mxu0  ;;  %v2903_v21 = vpop.f32.mrf.mxu1  ;;  %3155 = vmatprep.subr.bf16.mxu0 %v6065_v5  ;;  %v6123_v14 = vld [vmem:[#allocation7 + $0x940] ss:$20 sps:$4 sm:$0xff]   ;;  %v6131_v8 = vld [vmem:[#allocation7 + $0x91c] ss:$20 sps:$4 sm:$0xff]   ;;  %v6129_v4 = vld [vmem:[#allocation7 + $0x918] ss:$20 sps:$4 sm:$0xff]  }
 0x1f8   :  { %3196 = vmatprep.subr.bf16.mxu1 %v6068_v16  ;;  %v6126_v5 = vld [vmem:[#allocation7 + $0xbc0] ss:$20 sps:$4 sm:$0xff]   ;;  %v6134_v16 = vld [vmem:[#allocation7 + $0xb9c] ss:$20 sps:$4 sm:$0xff]   ;;  %v6132_v18 = vld [vmem:[#allocation7 + $0xb98] ss:$20 sps:$4 sm:$0xff]  }
 0x1f9   :  { %v6140_v44 = vld [vmem:[#allocation7 + $0xb74] ss:$20 sps:$4 sm:$0xff]   ;;  %v6135_v21 = vld [vmem:[#allocation7 + $0x8f0] ss:$20 sps:$4 sm:$0xff]  }
 0x1fa   :  { %3156 = vmatpush1.bf16.msra.mxu0 %v6063_v19  ;;  %v6137_v19 = vld [vmem:[#allocation7 + $0x8f4] ss:$20 sps:$4 sm:$0xff]  }
 0x1fb   :  { %3197 = vmatpush1.bf16.msra.mxu1 %v6066_v27  ;;  %3157 = vmatprep.subr.bf16.mxu0 %v6071_v28  ;;  %v6138_v27 = vld [vmem:[#allocation7 + $0xb70] ss:$20 sps:$4 sm:$0xff]   ;;  %v6143_v28 = vld [vmem:[#allocation7 + $0x8cc] ss:$20 sps:$4 sm:$0xff]  }
 0x1fc   :  { %3198 = vmatprep.subr.bf16.mxu1 %v6074_v29  ;;  %v6146_v29 = vld [vmem:[#allocation7 + $0xb4c] ss:$20 sps:$4 sm:$0xff]  }
 0x1fe   :  { %3158 = vmatpush1.bf16.msra.mxu0 %v6069_v30  ;;  %v6141_v30 = vld [vmem:[#allocation7 + $0x8c8] ss:$20 sps:$4 sm:$0xff]  }
 0x1ff   :  { %3199 = vmatpush1.bf16.msra.mxu1 %v6072_v31  ;;  %3159 = vmatprep.subr.bf16.mxu0 %v6077_v33  ;;  %v6144_v31 = vld [vmem:[#allocation7 + $0xb48] ss:$20 sps:$4 sm:$0xff]  }
 0x200   :  { %3200 = vmatprep.subr.bf16.mxu1 %v6080_v34  ;;  %v6147_v33 = vld [vmem:[#allocation7 + $0x268] ss:$20 sps:$4 sm:$0xff]  }
 0x201   :  { %v6148_v34 = vld [vmem:[#allocation7 + $0x4e8] ss:$20 sps:$4 sm:$0xff]  }
 0x202   :  { %3160 = vmatpush1.bf16.msra.mxu0 %v6075_v35  ;;  %v6149_v35 = vld [vmem:[#allocation7 + $0x128] ss:$20 sps:$4 sm:$0xff]  }
 0x203   :  { %3201 = vmatpush1.bf16.msra.mxu1 %v6078_v36  ;;  %3161 = vmatprep.subr.bf16.mxu0 %v6083_v37  ;;  %v6150_v36 = vld [vmem:[#allocation7 + $0x3a8] ss:$20 sps:$4 sm:$0xff]   ;;  %v6151_v37 = vld [vmem:[#allocation7 + $0x240] ss:$20 sps:$4 sm:$0xff]  }
 0x204   :  { %3202 = vmatprep.subr.bf16.mxu1 %v6086_v42 }
 0x206   :  { %3162 = vmatpush1.bf16.msra.mxu0 %v6081_v25 }
 0x207   :  { %3203 = vmatpush1.bf16.msra.mxu1 %v6084_v38  ;;  %3163 = vmatprep.subr.bf16.mxu0 %v6089_v43  ;;  %v6152_v38 = vld [vmem:[#allocation7 + $0x4c0] ss:$20 sps:$4 sm:$0xff]  }
 0x208   :  { %3204 = vmatprep.subr.bf16.mxu1 %v6092_v45  ;;  %v6153_v45 = vld [vmem:[#allocation7 + $0x100] ss:$20 sps:$4 sm:$0xff]  }
 0x20a   :  { %3164 = vmatpush1.bf16.msra.mxu0 %v6087_v22 }
 0x20b   :  { %3205 = vmatpush1.bf16.msra.mxu1 %v6090_v46  ;;  %3165 = vmatprep.subr.bf16.mxu0 %v6095_v47  ;;  %v6154_v47 = vld [vmem:[#allocation7 + $0x380] ss:$20 sps:$4 sm:$0xff]  }
 0x20c   :  { %3206 = vmatprep.subr.bf16.mxu1 %v6098_v48  ;;  %v6155_v48 = vld [vmem:[#allocation7 + $0x218] ss:$20 sps:$4 sm:$0xff]  }
 0x20e   :  { %3166 = vmatpush1.bf16.msra.mxu0 %v6093_v50 }
 0x20f   :  { %3207 = vmatpush1.bf16.msra.mxu1 %v6096_v53  ;;  %3167 = vmatprep.subr.bf16.mxu0 %v6101_v54  ;;  %v6156_v53 = vld [vmem:[#allocation7 + $0x498] ss:$20 sps:$4 sm:$0xff]  }
 0x210   :  { %3208 = vmatprep.subr.bf16.mxu1 %v6104_v55  ;;  %v6157_v55 = vld [vmem:[#allocation7 + $0xd8] ss:$20 sps:$4 sm:$0xff]  }
 0x212   :  { %3168 = vmatpush2.bf16.msra.mxu0 %v6099_v23 }
 0x213   :  { %3209 = vmatpush2.bf16.msra.mxu1 %v6102_v57  ;;  %3169 = vmatprep.subr.bf16.mxu0 %v6107_v58  ;;  %v6158_v57 = vld [vmem:[#allocation7 + $0x358] ss:$20 sps:$4 sm:$0xff]   ;;  %v6159_v58 = vld [vmem:[#allocation7 + $0x1f0] ss:$20 sps:$4 sm:$0xff]  }
 0x214   :  { %3210 = vmatprep.subr.bf16.mxu1 %v6110_v60  ;;  %v6160_v60 = vld [vmem:[#allocation7 + $0x470] ss:$20 sps:$4 sm:$0xff]  }
 0x216   :  { %3170 = vmatpush2.bf16.msra.mxu0 %v6105_v62  ;;  %v6161_v62 = vld [vmem:[#allocation7 + $0xb0] ss:$20 sps:$4 sm:$0xff]  }
 0x217   :  { %3211 = vmatpush2.bf16.msra.mxu1 %v6108_v63  ;;  %3171 = vmatprep.subr.bf16.mxu0 %v6113_v0  ;;  %v6163_v63 = vld [vmem:[#allocation7 + $0x1c8] ss:$20 sps:$4 sm:$0xff]  }
 0x218   :  { %3212 = vmatprep.subr.bf16.mxu1 %v6116_v1  ;;  %v6164_v0 = vld [vmem:[#allocation7 + $0x448] ss:$20 sps:$4 sm:$0xff]  }
 0x219   :  { %v6165_v1 = vld [vmem:[#allocation7 + $0x88] ss:$20 sps:$4 sm:$0xff]  }
 0x21a   :  { %3172 = vmatpush2.bf16.msra.mxu0 %v6111_v2  ;;  %v6166_v2 = vld [vmem:[#allocation7 + $0x308] ss:$20 sps:$4 sm:$0xff]  }
 0x21b   :  { %3213 = vmatpush2.bf16.msra.mxu1 %v6114_v3  ;;  %3173 = vmatprep.subr.bf16.mxu0 %v6119_v7  ;;  %v6167_v3 = vld [vmem:[#allocation7 + $0x1a0] ss:$20 sps:$4 sm:$0xff]  }
 0x21c   :  { %3214 = vmatprep.subr.bf16.mxu1 %v6122_v9  ;;  %v6168_v7 = vld [vmem:[#allocation7 + $0x420] ss:$20 sps:$4 sm:$0xff]  }
 0x21d   :  { %v6169_v9 = vld [vmem:[#allocation7 + $0x60] ss:$20 sps:$4 sm:$0xff]  }
 0x21e   :  { %3174 = vmatpush2.bf16.msra.mxu0 %v6117_v10  ;;  %v6170_v10 = vld [vmem:[#allocation7 + $0x2e0] ss:$20 sps:$4 sm:$0xff]  }
 0x21f   :  { %3215 = vmatpush2.bf16.msra.mxu1 %v6120_v11  ;;  %3175 = vmatprep.subr.bf16.mxu0 %v6125_v12  ;;  %v6171_v11 = vld [vmem:[#allocation7 + $0x178] ss:$20 sps:$4 sm:$0xff]  }
 0x220   :  { %3216 = vmatprep.subr.bf16.mxu1 %v6128_v13  ;;  %v6172_v12 = vld [vmem:[#allocation7 + $0x3f8] ss:$20 sps:$4 sm:$0xff]  }
 0x221   :  { %v6173_v13 = vld [vmem:[#allocation7 + $0x38] ss:$20 sps:$4 sm:$0xff]  }
 0x222   :  { %3176 = vmatpush2.bf16.msra.mxu0 %v6123_v14  ;;  %v6174_v14 = vld [vmem:[#allocation7 + $0x2b8] ss:$20 sps:$4 sm:$0xff]  }
 0x223   :  { %3217 = vmatpush2.bf16.msra.mxu1 %v6126_v5  ;;  %3177 = vmatprep.subr.bf16.mxu0 %v6131_v8  ;;  %v6175_v5 = vld [vmem:[#allocation7 + $0x150] ss:$20 sps:$4 sm:$0xff]  }
 0x224   :  { %3218 = vmatprep.subr.bf16.mxu1 %v6134_v16  ;;  %v6176_v8 = vld [vmem:[#allocation7 + $0x3d0] ss:$20 sps:$4 sm:$0xff]  }
 0x225   :  { %v6177_v16 = vld [vmem:[#allocation7 + $0x10] ss:$20 sps:$4 sm:$0xff]  }
 0x226   :  { %3178 = vmatpush2.bf16.msra.mxu0 %v6129_v4  ;;  %v6178_v4 = vld [vmem:[#allocation7 + $0x290] ss:$20 sps:$4 sm:$0xff]  }
 0x227   :  { %3219 = vmatpush2.bf16.msra.mxu1 %v6132_v18  ;;  %3179 = vmatprep.subr.bf16.mxu0 %v6137_v19  ;;  %v6179_v18 = vld [vmem:[#allocation7 + $0x768] ss:$20 sps:$4 sm:$0xff]  }
 0x228   :  { %3220 = vmatprep.subr.bf16.mxu1 %v6140_v44  ;;  %v6180_v19 = vld [vmem:[#allocation7 + $0x9e8] ss:$20 sps:$4 sm:$0xff]  }
 0x229   :  { %v6181_v44 = vld [vmem:[#allocation7 + $0x628] ss:$20 sps:$4 sm:$0xff]  }
 0x22a   :  { %3180 = vmatpush2.bf16.msra.mxu0 %v6135_v21  ;;  %v6182_v21 = vld [vmem:[#allocation7 + $0x8a8] ss:$20 sps:$4 sm:$0xff]  }
 0x22b   :  { %3221 = vmatpush2.bf16.msra.mxu1 %v6138_v27  ;;  %3181 = vmatprep.subr.bf16.mxu0 %v6143_v28  ;;  %v6183_v27 = vld [vmem:[#allocation7 + $0x740] ss:$20 sps:$4 sm:$0xff]  }
 0x22c   :  { %3222 = vmatprep.subr.bf16.mxu1 %v6146_v29  ;;  %v6184_v28 = vld [vmem:[#allocation7 + $0x9c0] ss:$20 sps:$4 sm:$0xff]  }
 0x22d   :  { %v6185_v29 = vld [vmem:[#allocation7 + $0x600] ss:$20 sps:$4 sm:$0xff]  }
 0x22e   :  { %3182 = vmatpush2.bf16.msra.mxu0 %v6141_v30  ;;  %v6186_v30 = vld [vmem:[#allocation7 + $0x880] ss:$20 sps:$4 sm:$0xff]  }
 0x22f   :  { %3223 = vmatpush2.bf16.msra.mxu1 %v6144_v31  ;;  %5418 = vmatprep.subr.bf16.mxu0 %v6147_v33  ;;  %v6187_v31 = vld [vmem:[#allocation7 + $0x718] ss:$20 sps:$4 sm:$0xff]  }
 0x230   :  { %5440 = vmatprep.subr.bf16.mxu1 %v6148_v34  ;;  %v6188_v33 = vld [vmem:[#allocation7 + $0x998] ss:$20 sps:$4 sm:$0xff]  }
 0x231   :  { %v2939_v42 = vpop.f32.mrf.mxu0  ;;  %v2980_v25 = vpop.f32.mrf.mxu1  ;;  %3184 = vmatmul.mubr.bf16.vlgmr.msra.gmra.mxu0 %v6806_v40  ;;  %v6189_v34 = vld [vmem:[#allocation7 + $0x5d8] ss:$20 sps:$4 sm:$0xff]  }
 0x232   :  { %v2940_v43 = vadd.f32 %v2939_v42, %v6839_v15  ;;  %3225 = vmatmul.mubr.bf16.vlgmr.msra.gmra.mxu1 %v6818_v49  ;;  %5419 = vmatpush3.bf16.msra.mxu0 %v6149_v35  ;;  %v6191_v35 = vld [vmem:[#allocation7 + $0x6f0] ss:$20 sps:$4 sm:$0xff]   ;;  %v6196_v42 = vld [vmem:[#allocation7 + $0x948] ss:$20 sps:$4 sm:$0xff]  }
 0x233   :  { %3265 = vmatprep.mubr.bf16.mxu0 %v6778_v20  ;;  %5441 = vmatpush3.bf16.msra.mxu1 %v6150_v36  ;;  %v6848_v22 = vpop.f32.mrf.mxu0  ;;  %v6850_v46 = vpop.f32.mrf.mxu1  ;;  %v6193_v36 = vld [vmem:[#allocation7 + $0x5b0] ss:$20 sps:$4 sm:$0xff]  }
 0x234   :  { %v6852_v50 = vadd.f32 %v2980_v25, %v2940_v43  ;;  %3305 = vmatprep.mubr.bf16.mxu1 %v6780_v17  ;;  %5420 = vmatprep.subr.bf16.mxu0 %v6151_v37  ;;  %v6162_v17 = vld [vmem:[#allocation7 + $0x330] ss:$20 sps:$4 sm:$0xff]   ;;  %v6195_v37 = vld [vmem:[#allocation7 + $0x6c8] ss:$20 sps:$4 sm:$0xff]   ;;  %v6200_v43 = vld [vmem:[#allocation7 + $0x920] ss:$20 sps:$4 sm:$0xff]  }
 0x235   :  { %v2943_v15 = vpop.f32.mrf.mxu0  ;;  %v2984_v54 = vpop.f32.mrf.mxu1  ;;  %5442 = vmatprep.subr.bf16.mxu1 %v6152_v38  ;;  %v6198_v25 = vld [vmem:[#allocation7 + $0x808] ss:$20 sps:$4 sm:$0xff]   ;;  %v6199_v38 = vld [vmem:[#allocation7 + $0x6a0] ss:$20 sps:$4 sm:$0xff]  }
 0x236   :  { %5421 = vmatpush3.bf16.msra.mxu0 %v6153_v45  ;;  %v6201_v45 = vld [vmem:[#allocation7 + $0x560] ss:$20 sps:$4 sm:$0xff]   ;;  %v6205_v15 = vld [vmem:[#allocation7 + $0x538] ss:$20 sps:$4 sm:$0xff]  }
 0x237   :  { %5443 = vmatpush3.bf16.msra.mxu1 %v6154_v47  ;;  %v2944_v20 = vpop.f32.mrf.mxu0  ;;  %v2985_v23 = vpop.f32.mrf.mxu1  ;;  %5422 = vmatprep.subr.bf16.mxu0 %v6155_v48  ;;  %v6202_v47 = vld [vmem:[#allocation7 + $0x7e0] ss:$20 sps:$4 sm:$0xff]   ;;  %v6203_v48 = vld [vmem:[#allocation7 + $0x678] ss:$20 sps:$4 sm:$0xff]  }
 0x238   :  { %5444 = vmatprep.subr.bf16.mxu1 %v6156_v53  ;;  %v6204_v53 = vld [vmem:[#allocation7 + $0x8f8] ss:$20 sps:$4 sm:$0xff]   ;;  %v6208_v20 = vld [vmem:[#allocation7 + $0x8d0] ss:$20 sps:$4 sm:$0xff]  }
 0x239   :  { %v6206_v54 = vld [vmem:[#allocation7 + $0x7b8] ss:$20 sps:$4 sm:$0xff]   ;;  %v6209_v23 = vld [vmem:[#allocation7 + $0x510] ss:$20 sps:$4 sm:$0xff]  }
 0x23a   :  { %5423 = vmatpush3.bf16.msra.mxu0 %v6157_v55  ;;  %v6207_v55 = vld [vmem:[#allocation7 + $0x650] ss:$20 sps:$4 sm:$0xff]  }
 0x23b   :  { %5445 = vmatpush3.bf16.msra.mxu1 %v6158_v57  ;;  %5424 = vmatprep.subr.bf16.mxu0 %v6159_v58  ;;  %v6210_v57 = vld [vmem:[#allocation7 + $0x790] ss:$20 sps:$4 sm:$0xff]   ;;  %v6211_v58 = vld [vmem:[#allocation7 + $0xc68] ss:$20 sps:$4 sm:$0xff]  }
 0x23c   :  { %5446 = vmatprep.subr.bf16.mxu1 %v6160_v60  ;;  %v6214_v60 = vld [vmem:[%s7304_s4 + $0xac] ss:$12 sps:$4 sm:$0xff]  }
 0x23e   :  { %5425 = vmatpush3.bf16.msra.mxu0 %v6161_v62  ;;  %v2942_v62 = vadd.f32 %v6848_v22, %v6842_v6 }
 0x23f   :  { %5447 = vmatpush3.bf16.msra.mxu1 %v6162_v17  ;;  %5426 = vmatprep.subr.bf16.mxu0 %v6163_v63  ;;  %v6215_v17 = vld [vmem:[#allocation7 + $0xb28] ss:$20 sps:$4 sm:$0xff]   ;;  %v6212_v63 = vld [vmem:[%s7304_s4 + $0xa8] ss:$12 sps:$4 sm:$0xff]  }
 0x240   :  { %5448 = vmatprep.subr.bf16.mxu1 %v6164_v0  ;;  %v6216_v0 = vld [vmem:[#allocation7 + $0xc40] ss:$20 sps:$4 sm:$0xff]   ;;  %v2983_v6 = vadd.f32 %v6850_v46, %v2942_v62  ;;  %v6260_v62 = vld [vmem:[%s7304_s4 + $0x120] ss:$12 sps:$4 sm:$0xff]  }
 0x242   :  { %5427 = vmatpush3.bf16.msra.mxu0 %v6165_v1  ;;  %v6219_v1 = vld [vmem:[%s7304_s4 + $0x94] ss:$12 sps:$4 sm:$0xff]  }
 0x243   :  { %5449 = vmatpush3.bf16.msra.mxu1 %v6166_v2  ;;  %5428 = vmatprep.subr.bf16.mxu0 %v6167_v3  ;;  %v6220_v3 = vld [vmem:[#allocation7 + $0xb00] ss:$20 sps:$4 sm:$0xff]  }
 0x244   :  { %5450 = vmatprep.subr.bf16.mxu1 %v6168_v7 }
 0x246   :  { %5429 = vmatpush3.bf16.msra.mxu0 %v6169_v9  ;;  %v6217_v9 = vld [vmem:[%s7304_s4 + $0x90] ss:$12 sps:$4 sm:$0xff]  }
 0x247   :  { %5451 = vmatpush3.bf16.msra.mxu1 %v6170_v10  ;;  %5430 = vmatprep.subr.bf16.mxu0 %v6171_v11  ;;  %v6221_v10 = vld [vmem:[#allocation7 + $0xc18] ss:$20 sps:$4 sm:$0xff]  }
 0x248   :  { %5452 = vmatprep.subr.bf16.mxu1 %v6172_v12 }
 0x24a   :  { %5431 = vmatpush3.bf16.msra.mxu0 %v6173_v13  ;;  %v6225_v13 = vld [vmem:[#allocation7 + $0xad8] ss:$20 sps:$4 sm:$0xff]  }
 0x24b   :  { %5453 = vmatpush3.bf16.msra.mxu1 %v6174_v14  ;;  %5432 = vmatprep.subr.bf16.mxu0 %v6175_v5  ;;  %v6222_v5 = vld [vmem:[%s7304_s4 + $0x78] ss:$12 sps:$4 sm:$0xff]  }
 0x24c   :  { %5454 = vmatprep.subr.bf16.mxu1 %v6176_v8 }
 0x24e   :  { %5433 = vmatpush3.bf16.msra.mxu0 %v6177_v16 }
 0x24f   :  { %5455 = vmatpush3.bf16.msra.mxu1 %v6178_v4  ;;  %5462 = vmatprep.subr.bf16.mxu0 %v6179_v18  ;;  %v6226_v4 = vld [vmem:[#allocation7 + $0xbf0] ss:$20 sps:$4 sm:$0xff]  }
 0x250   :  { %5484 = vmatprep.subr.bf16.mxu1 %v6180_v19  ;;  %v6229_v18 = vld [vmem:[%s7304_s4 + $0x64] ss:$12 sps:$4 sm:$0xff]  }
 0x251   :  { %3266 = vmatmul.mubr.bf16.vlgmr.msra.gmra.mxu0 %v6782_v32  ;;  %v6190_v32 = vld [vmem:[#allocation7 + $0x858] ss:$20 sps:$4 sm:$0xff]  }
 0x252   :  { %3306 = vmatmul.mubr.bf16.vlgmr.msra.gmra.mxu1 %v6784_v51  ;;  %5463 = vmatpush3.bf16.msra.mxu0 %v6181_v44  ;;  %v6192_v51 = vld [vmem:[#allocation7 + $0x970] ss:$20 sps:$4 sm:$0xff]  }
 0x253   :  { %3345 = vmatprep.mubr.bf16.mxu0 %v6794_v24  ;;  %5485 = vmatpush3.bf16.msra.mxu1 %v6182_v21  ;;  %v6194_v24 = vld [vmem:[#allocation7 + $0x830] ss:$20 sps:$4 sm:$0xff]  }
 0x254   :  { %3385 = vmatprep.mubr.bf16.mxu1 %v6796_v26  ;;  %5464 = vmatprep.subr.bf16.mxu0 %v6183_v27  ;;  %v6197_v26 = vld [vmem:[#allocation7 + $0x588] ss:$20 sps:$4 sm:$0xff]   ;;  %v6230_v44 = vld [vmem:[#allocation7 + $0xab0] ss:$20 sps:$4 sm:$0xff]  }
 0x255   :  { %5486 = vmatprep.subr.bf16.mxu1 %v6184_v28  ;;  %v6227_v21 = vld [vmem:[%s7304_s4 + $0x60] ss:$12 sps:$4 sm:$0xff]  }
 0x256   :  { %5465 = vmatpush3.bf16.msra.mxu0 %v6185_v29  ;;  %v6231_v27 = vld [vmem:[#allocation7 + $0xbc8] ss:$20 sps:$4 sm:$0xff]  }
 0x257   :  { %5487 = vmatpush3.bf16.msra.mxu1 %v6186_v30  ;;  %5466 = vmatprep.subr.bf16.mxu0 %v6187_v31  ;;  %v6234_v28 = vld [vmem:[%s7304_s4 + $0x4c] ss:$12 sps:$4 sm:$0xff]   ;;  %v6232_v30 = vld [vmem:[%s7304_s4 + $0x48] ss:$12 sps:$4 sm:$0xff]  }
 0x258   :  { %5488 = vmatprep.subr.bf16.mxu1 %v6188_v33  ;;  %v6235_v29 = vld [vmem:[#allocation7 + $0xa88] ss:$20 sps:$4 sm:$0xff]   ;;  %v6236_v31 = vld [vmem:[#allocation7 + $0xba0] ss:$20 sps:$4 sm:$0xff]  }
 0x259   :  { %v6239_v33 = vld [vmem:[%s7304_s4 + $0x34] ss:$12 sps:$4 sm:$0xff]  }
 0x25a   :  { %5467 = vmatpush3.bf16.msra.mxu0 %v6189_v34  ;;  %v6240_v34 = vld [vmem:[#allocation7 + $0xa60] ss:$20 sps:$4 sm:$0xff]  }
 0x25b   :  { %5489 = vmatpush3.bf16.msra.mxu1 %v6190_v32  ;;  %5468 = vmatprep.subr.bf16.mxu0 %v6191_v35  ;;  %v6237_v32 = vld [vmem:[%s7304_s4 + $0x30] ss:$12 sps:$4 sm:$0xff]  }
 0x25c   :  { %5490 = vmatprep.subr.bf16.mxu1 %v6192_v51  ;;  %v6241_v35 = vld [vmem:[#allocation7 + $0xb78] ss:$20 sps:$4 sm:$0xff]  }
 0x25d   :  { %v6244_v51 = vld [vmem:[%s7304_s4 + $0x1c] ss:$12 sps:$4 sm:$0xff]  }
 0x25e   :  { %5469 = vmatpush3.bf16.msra.mxu0 %v6193_v36  ;;  %v6245_v36 = vld [vmem:[#allocation7 + $0xa38] ss:$20 sps:$4 sm:$0xff]  }
 0x25f   :  { %5491 = vmatpush3.bf16.msra.mxu1 %v6194_v24  ;;  %5470 = vmatprep.subr.bf16.mxu0 %v6195_v37  ;;  %v6242_v24 = vld [vmem:[%s7304_s4 + $0x18] ss:$12 sps:$4 sm:$0xff]  }
 0x260   :  { %5492 = vmatprep.subr.bf16.mxu1 %v6196_v42  ;;  %v6246_v37 = vld [vmem:[#allocation7 + $0xb50] ss:$20 sps:$4 sm:$0xff]  }
 0x261   :  { %v6249_v42 = vld [vmem:[%s7304_s4 + $0x4] ss:$12 sps:$4 sm:$0xff]  }
 0x262   :  { %5471 = vmatpush3.bf16.msra.mxu0 %v6197_v26  ;;  %v6250_v26 = vld [vmem:[#allocation7 + $0xa10] ss:$20 sps:$4 sm:$0xff]  }
 0x263   :  { %5493 = vmatpush3.bf16.msra.mxu1 %v6198_v25  ;;  %5472 = vmatprep.subr.bf16.mxu0 %v6199_v38  ;;  %v6247_v25 = vld [vmem:[%s7304_s4] ss:$12 sps:$4 sm:$0xff]  }
 0x264   :  { %5494 = vmatprep.subr.bf16.mxu1 %v6200_v43  ;;  %v6277_v38 = vld [vmem:[%s7304_s4 + $0x22c] ss:$12 sps:$4 sm:$0xff]  }
 0x265   :  { %v6253_v43 = vld [vmem:[%s7304_s4 + $0x16c] ss:$12 sps:$4 sm:$0xff]  }
 0x266   :  { %5473 = vmatpush3.bf16.msra.mxu0 %v6201_v45  ;;  %v6275_v45 = vld [vmem:[%s7304_s4 + $0x228] ss:$12 sps:$4 sm:$0xff]  }
 0x267   :  { %5495 = vmatpush3.bf16.msra.mxu1 %v6202_v47  ;;  %5474 = vmatprep.subr.bf16.mxu0 %v6203_v48  ;;  %v6251_v47 = vld [vmem:[%s7304_s4 + $0x168] ss:$12 sps:$4 sm:$0xff]  }
 0x268   :  { %5496 = vmatprep.subr.bf16.mxu1 %v6204_v53  ;;  %v6280_v48 = vld [vmem:[%s7304_s4 + $0x214] ss:$12 sps:$4 sm:$0xff]  }
 0x269   :  { %v6256_v53 = vld [vmem:[%s7304_s4 + $0x154] ss:$12 sps:$4 sm:$0xff]  }
 0x26a   :  { %5475 = vmatpush3.bf16.msra.mxu0 %v6205_v15  ;;  %v6278_v15 = vld [vmem:[%s7304_s4 + $0x210] ss:$12 sps:$4 sm:$0xff]  }
 0x26b   :  { %5497 = vmatpush3.bf16.msra.mxu1 %v6206_v54  ;;  %5476 = vmatprep.subr.bf16.mxu0 %v6207_v55  ;;  %v6254_v54 = vld [vmem:[%s7304_s4 + $0x150] ss:$12 sps:$4 sm:$0xff]  }
 0x26c   :  { %5498 = vmatprep.subr.bf16.mxu1 %v6208_v20  ;;  %v6283_v55 = vld [vmem:[%s7304_s4 + $0x1fc] ss:$12 sps:$4 sm:$0xff]   ;;  %v6281_v20 = vld [vmem:[%s7304_s4 + $0x1f8] ss:$12 sps:$4 sm:$0xff]  }
 0x26e   :  { %5477 = vmatpush3.bf16.msra.mxu0 %v6209_v23  ;;  %v6257_v23 = vld [vmem:[%s7304_s4 + $0x138] ss:$12 sps:$4 sm:$0xff]  }
 0x26f   :  { %5499 = vmatpush3.bf16.msra.mxu1 %v6210_v57  ;;  %5506 = vmatprep.subr.bf16.mxu0 %v6211_v58  ;;  %v6286_v57 = vld [vmem:[%s7304_s4 + $0x1e4] ss:$12 sps:$4 sm:$0xff]  }
 0x270   :  { %4270 = vmatprep.subr.bf16.mxu1 %v6214_v60  ;;  %v6262_v58 = vld [vmem:[%s7304_s4 + $0x124] ss:$12 sps:$4 sm:$0xff]   ;;  %v6284_v60 = vld [vmem:[%s7304_s4 + $0x1e0] ss:$12 sps:$4 sm:$0xff]  }
 0x271   :  { %v6870_v2 = vpop.f32.mrf.mxu0  ;;  %3346 = vmatmul.mubr.bf16.vlgmr.msra.gmra.mxu0 %v6802_v39  ;;  %v6224_v39 = vld [vmem:[%s7304_s4 + $0x7c] ss:$12 sps:$4 sm:$0xff]  }
 0x272   :  { %v6874_v22 = vpop.f32.mrf.mxu1  ;;  %3386 = vmatmul.mubr.bf16.vlgmr.msra.gmra.mxu1 %v6806_v40  ;;  %5507 = vmatpush3.bf16.msra.mxu0 %v6215_v17  ;;  %v6289_v17 = vld [vmem:[%s7304_s4 + $0x1cc] ss:$12 sps:$4 sm:$0xff]  }
 0x273   :  { %3425 = vmatprep.mubr.bf16.mxu0 %v6810_v41  ;;  %4271 = vmatpush1.bf16.msra.mxu1 %v6212_v63  ;;  %v3023_v7 = vpop.f32.mrf.mxu0  ;;  %v6265_v63 = vld [vmem:[%s7304_s4 + $0x10c] ss:$12 sps:$4 sm:$0xff]  }
 0x274   :  { %v3024_v11 = vadd.f32 %v3023_v7, %v2983_v6  ;;  %v6881_v12 = vpop.f32.mrf.mxu1  ;;  %5508 = vmatprep.subr.bf16.mxu0 %v6216_v0  ;;  %4272 = vmatprep.subr.bf16.mxu1 %v6219_v1  ;;  %v6287_v0 = vld [vmem:[%s7304_s4 + $0x1c8] ss:$12 sps:$4 sm:$0xff]   ;;  %v6290_v7 = vld [vmem:[%s7304_s4 + $0x1b0] ss:$12 sps:$4 sm:$0xff]  }
 0x275   :  { %v3025_v40 = vpop.f32.mrf.mxu0  ;;  %v6263_v1 = vld [vmem:[%s7304_s4 + $0x108] ss:$12 sps:$4 sm:$0xff]  }
 0x276   :  { %vm3434_vm0 = vcmp.gt.f32.partialorder %v3024_v11, 0.0  ;;  %v3439_v46 = vmul.f32 0.01, %v3024_v11  ;;  %v3066_v41 = vpop.f32.mrf.mxu1  ;;  %5509 = vmatpush3.bf16.msra.mxu0 %v6220_v3  ;;  %v6292_v6 = vld [vmem:[%s7304_s4 + $0x1b4] ss:$12 sps:$4 sm:$0xff]  }
 0x277   :  { %4273 = vmatpush1.bf16.msra.mxu1 %v6217_v9  ;;  %v3026_v14 = vpop.f32.mrf.mxu0  ;;  %5510 = vmatprep.subr.bf16.mxu0 %v6221_v10  ;;  %v6268_v3 = vld [vmem:[%s7304_s4 + $0xf4] ss:$12 sps:$4 sm:$0xff]   ;;  %v6266_v9 = vld [vmem:[%s7304_s4 + $0xf0] ss:$12 sps:$4 sm:$0xff]   ;;  %v6293_v40 = vld [vmem:[%s7304_s4 + $0x198] ss:$12 sps:$4 sm:$0xff]  }
 0x278   :  { %v3067_v8 = vpop.f32.mrf.mxu1  ;;  %4274 = vmatprep.subr.bf16.mxu1 %v6224_v39  ;;  %v3444_v16 = vsel %vm3434_vm0, %v3024_v11, %v3439_v46  ;;  %v6295_v10 = vld [vmem:[%s7304_s4 + $0x19c] ss:$12 sps:$4 sm:$0xff]   ;;  %v3022_v39 = vadd.f32 %v6870_v2, %v6852_v50  ;;  %v6269_v46 = vld [vmem:[%s7304_s4 + $0xd8] ss:$12 sps:$4 sm:$0xff]   ;;  %v6296_v14 = vld [vmem:[%s7304_s4 + $0x180] ss:$12 sps:$4 sm:$0xff]  }
 0x279   :  { %v6892_v19 = vpack.c.bf16 %v3444_v16, %v3444_v16  ;;  %v6271_v11 = vld [vmem:[%s7304_s4 + $0xdc] ss:$12 sps:$4 sm:$0xff]   ;;  %v6298_v41 = vld [vmem:[%s7304_s4 + $0x184] ss:$12 sps:$4 sm:$0xff]   ;;  %v6301_v8 = vld [vmem:[%s7304_s4 + $0x2ec] ss:$12 sps:$4 sm:$0xff]  }
 0x27a   :  { %5511 = vmatpush3.bf16.msra.mxu0 %v6225_v13  ;;  %v728_v13 = vsub.s32 2, %v6824_v52  ;;  %v6274_v50 = vld [vmem:[%s7304_s4 + $0xc4] ss:$12 sps:$4 sm:$0xff]   ;;  %v3438_v2 = vmul.f32 0.01, %v3022_v39  ;;  %vm3433_vm1 = vcmp.gt.f32.partialorder %v3022_v39, 0.0 }
 0x27b   :  { %4275 = vmatpush1.bf16.msra.mxu1 %v6222_v5  ;;  %4302 = vmatprep.mubr.bf16.mxu1 %v6892_v19  ;;  %v6272_v5 = vld [vmem:[%s7304_s4 + $0xc0] ss:$12 sps:$4 sm:$0xff]  }
 0x27c   :  { %5512 = vmatprep.subr.bf16.mxu0 %v6226_v4  ;;  %4276 = vmatprep.subr.bf16.mxu1 %v6229_v18  ;;  %v729_v16 = vrot.slane %v6827_v59, %v728_v13  ;;  %v3443_v4 = vsel %vm3433_vm1, %v3022_v39, %v3438_v2  ;;  %v6299_v18 = vld [vmem:[%s7304_s4 + $0x2e8] ss:$12 sps:$4 sm:$0xff]  }
 0x27d   :  { %v7138_v39 = vld [vmem:[#allocation8] sm:$0x1f] }
 0x27e   :  { %5513 = vmatpush3.bf16.msra.mxu0 %v6230_v44  ;;  %v6304_v44 = vld [vmem:[%s7304_s4 + $0x2d4] ss:$12 sps:$4 sm:$0xff]  }
 0x27f   :  { %4277 = vmatpush1.bf16.msra.mxu1 %v6227_v21  ;;  %5514 = vmatprep.subr.bf16.mxu0 %v6231_v27  ;;  %v7034_v21 = vpack.c.bf16 %v3443_v4, %v3443_v4  ;;  %v3063_v27 = vadd.f32 %v6874_v22, %v729_v16 }
 0x280   :  { %4278 = vmatprep.subr.bf16.mxu1 %v6234_v28 }
 0x282   :  { %5515 = vmatpush3.bf16.msra.mxu0 %v6235_v29 }
 0x283   :  { %4279 = vmatpush1.bf16.msra.mxu1 %v6232_v30  ;;  %5516 = vmatprep.subr.bf16.mxu0 %v6236_v31  ;;  %v6302_v30 = vld [vmem:[%s7304_s4 + $0x2d0] ss:$12 sps:$4 sm:$0xff]  }
 0x284   :  { %4280 = vmatprep.subr.bf16.mxu1 %v6239_v33  ;;  %v6307_v33 = vld [vmem:[%s7304_s4 + $0x2bc] ss:$12 sps:$4 sm:$0xff]  }
 0x286   :  { %5517 = vmatpush3.bf16.msra.mxu0 %v6240_v34 }
 0x287   :  { %4281 = vmatpush1.bf16.msra.mxu1 %v6237_v32  ;;  %5518 = vmatprep.subr.bf16.mxu0 %v6241_v35 }
 0x288   :  { %4282 = vmatprep.subr.bf16.mxu1 %v6244_v51  ;;  %v6305_v51 = vld [vmem:[%s7304_s4 + $0x2b8] ss:$12 sps:$4 sm:$0xff]  }
 0x28a   :  { %5519 = vmatpush3.bf16.msra.mxu0 %v6245_v36 }
 0x28b   :  { %4283 = vmatpush1.bf16.msra.mxu1 %v6242_v24  ;;  %5520 = vmatprep.subr.bf16.mxu0 %v6246_v37  ;;  %v6310_v24 = vld [vmem:[%s7304_s4 + $0x2a4] ss:$12 sps:$4 sm:$0xff]  }
 0x28c   :  { %4284 = vmatprep.subr.bf16.mxu1 %v6249_v42  ;;  %v6339_v42 = vld [vmem:[%s7304_s4 + $0x3a8] ss:$12 sps:$4 sm:$0xff]  }
 0x28e   :  { %5521 = vmatpush3.bf16.msra.mxu0 %v6250_v26  ;;  %v6341_v26 = vld [vmem:[%s7304_s4 + $0x3ac] ss:$12 sps:$4 sm:$0xff]  }
 0x28f   :  { %4285 = vmatpush1.bf16.msra.mxu1 %v6247_v25  ;;  %4311 = vmatprep.subr.bf16.mxu0 %v6277_v38  ;;  %v6345_v25 = vld [vmem:[%s7304_s4 + $0x394] ss:$12 sps:$4 sm:$0xff]  }
 0x290   :  { %4286 = vmatprep.subr.bf16.mxu1 %v6253_v43  ;;  %v6308_v38 = vld [vmem:[%s7304_s4 + $0x2a0] ss:$12 sps:$4 sm:$0xff]  }
 0x291   :  { %3426 = vmatmul.mubr.bf16.vlgmr.msra.gmra.mxu0 %v6818_v49  ;;  %v6259_v49 = vld [vmem:[%s7304_s4 + $0x13c] ss:$12 sps:$4 sm:$0xff]   ;;  %v6313_v43 = vld [vmem:[%s7304_s4 + $0x28c] ss:$12 sps:$4 sm:$0xff]  }
 0x292   :  { %4312 = vmatpush1.bf16.msra.mxu0 %v6275_v45  ;;  %v6343_v45 = vld [vmem:[%s7304_s4 + $0x390] ss:$12 sps:$4 sm:$0xff]  }
 0x293   :  { %4287 = vmatpush2.bf16.msra.mxu1 %v6251_v47  ;;  %4313 = vmatprep.subr.bf16.mxu0 %v6280_v48  ;;  %v6349_v47 = vld [vmem:[%s7304_s4 + $0x37c] ss:$12 sps:$4 sm:$0xff]  }
 0x294   :  { %4288 = vmatprep.subr.bf16.mxu1 %v6256_v53  ;;  %v6311_v48 = vld [vmem:[%s7304_s4 + $0x288] ss:$12 sps:$4 sm:$0xff]  }
 0x295   :  { %v6316_v53 = vld [vmem:[%s7304_s4 + $0x274] ss:$12 sps:$4 sm:$0xff]  }
 0x296   :  { %4314 = vmatpush1.bf16.msra.mxu0 %v6278_v15  ;;  %v6347_v15 = vld [vmem:[%s7304_s4 + $0x378] ss:$12 sps:$4 sm:$0xff]  }
 0x297   :  { %4289 = vmatpush2.bf16.msra.mxu1 %v6254_v54  ;;  %4315 = vmatprep.subr.bf16.mxu0 %v6283_v55  ;;  %v6353_v54 = vld [vmem:[%s7304_s4 + $0x364] ss:$12 sps:$4 sm:$0xff]  }
 0x298   :  { %4290 = vmatprep.subr.bf16.mxu1 %v6259_v49  ;;  %v6314_v55 = vld [vmem:[%s7304_s4 + $0x270] ss:$12 sps:$4 sm:$0xff]  }
 0x299   :  { %v6319_v49 = vld [vmem:[%s7304_s4 + $0x25c] ss:$12 sps:$4 sm:$0xff]  }
 0x29a   :  { %4316 = vmatpush1.bf16.msra.mxu0 %v6281_v20  ;;  %v6351_v20 = vld [vmem:[%s7304_s4 + $0x360] ss:$12 sps:$4 sm:$0xff]  }
 0x29b   :  { %4291 = vmatpush2.bf16.msra.mxu1 %v6257_v23  ;;  %4317 = vmatprep.subr.bf16.mxu0 %v6286_v57  ;;  %v6357_v23 = vld [vmem:[%s7304_s4 + $0x34c] ss:$12 sps:$4 sm:$0xff]  }
 0x29c   :  { %4292 = vmatprep.subr.bf16.mxu1 %v6262_v58  ;;  %v6317_v57 = vld [vmem:[%s7304_s4 + $0x258] ss:$12 sps:$4 sm:$0xff]  }
 0x29d   :  { %v6322_v58 = vld [vmem:[%s7304_s4 + $0x244] ss:$12 sps:$4 sm:$0xff]  }
 0x29e   :  { %4318 = vmatpush1.bf16.msra.mxu0 %v6284_v60  ;;  %v6355_v60 = vld [vmem:[%s7304_s4 + $0x348] ss:$12 sps:$4 sm:$0xff]  }
 0x29f   :  { %4293 = vmatpush2.bf16.msra.mxu1 %v6260_v62  ;;  %4319 = vmatprep.subr.bf16.mxu0 %v6289_v17  ;;  %v6361_v62 = vld [vmem:[%s7304_s4 + $0x334] ss:$12 sps:$4 sm:$0xff]  }
 0x2a0   :  { %4294 = vmatprep.subr.bf16.mxu1 %v6265_v63  ;;  %v6320_v17 = vld [vmem:[%s7304_s4 + $0x240] ss:$12 sps:$4 sm:$0xff]   ;;  %v6323_v63 = vld [vmem:[%s7304_s4 + $0x170] ss:$12 sps:$4 sm:$0xff]  }
 0x2a2   :  { %4320 = vmatpush1.bf16.msra.mxu0 %v6287_v0  ;;  %v6359_v0 = vld [vmem:[%s7304_s4 + $0x330] ss:$12 sps:$4 sm:$0xff]  }
 0x2a3   :  { %4295 = vmatpush2.bf16.msra.mxu1 %v6263_v1  ;;  %4321 = vmatprep.subr.bf16.mxu0 %v6292_v6  ;;  %v6365_v1 = vld [vmem:[%s7304_s4 + $0x31c] ss:$12 sps:$4 sm:$0xff]   ;;  %v6363_v6 = vld [vmem:[%s7304_s4 + $0x318] ss:$12 sps:$4 sm:$0xff]  }
 0x2a4   :  { %4296 = vmatprep.subr.bf16.mxu1 %v6268_v3  ;;  %v6369_v3 = vld [vmem:[%s7304_s4 + $0x304] ss:$12 sps:$4 sm:$0xff]  }
 0x2a6   :  { %4322 = vmatpush1.bf16.msra.mxu0 %v6290_v7  ;;  %v6367_v7 = vld [vmem:[%s7304_s4 + $0x300] ss:$12 sps:$4 sm:$0xff]  }
 0x2a7   :  { %4297 = vmatpush2.bf16.msra.mxu1 %v6266_v9  ;;  %4323 = vmatprep.subr.bf16.mxu0 %v6295_v10  ;;  %v6371_v9 = vld [vmem:[%s7304_s4 + $0x2f0] ss:$12 sps:$4 sm:$0xff]   ;;  %v6615_v10 = vmov 0  }
 0x2a8   :  { %4298 = vmatprep.subr.bf16.mxu1 %v6271_v11  ;;  %v732_v11 = vsub.s32 3, %v6824_v52 }
 0x2aa   :  { %4324 = vmatpush1.bf16.msra.mxu0 %v6293_v40  ;;  %v733_v40 = vrot.slane %v7138_v39, %v732_v11 }
 0x2ab   :  { %4299 = vmatpush2.bf16.msra.mxu1 %v6269_v46  ;;  %4325 = vmatprep.subr.bf16.mxu0 %v6298_v41 }
 0x2ac   :  { %4300 = vmatprep.subr.bf16.mxu1 %v6274_v50  ;;  %v3065_v46 = vadd.f32 %v6881_v12, %v733_v40 }
 0x2ae   :  { %4326 = vmatpush1.bf16.msra.mxu0 %v6296_v14 }
 0x2af   :  { %4301 = vmatpush2.bf16.msra.mxu1 %v6272_v5  ;;  %4327 = vmatprep.subr.bf16.mxu0 %v6301_v8 }
 0x2b0   :  { %4352 = vmatprep.subr.bf16.mxu1 %v6341_v26  ;;  %v6332_v26 = vld [vmem:[%s7304_s4 + $0x50] ss:$12 sps:$4 sm:$0xff]  }
 0x2b1   :  { %v3103_v28 = vpop.f32.mrf.mxu0 }
 0x2b2   :  { %v3104_v29 = vadd.f32 %v3103_v28, %v3063_v27  ;;  %v3144_v59 = vpop.f32.mrf.mxu1  ;;  %4303 = vmatmul.mubr.bf16.vlgmr.msra.gmra.mxu1 %v7034_v21  ;;  %4328 = vmatpush2.bf16.msra.mxu0 %v6299_v18 }
 0x2b3   :  { %v7041_v31 = vpop.f32.mrf.mxu0  ;;  %4329 = vmatprep.subr.bf16.mxu0 %v6304_v44  ;;  %4353 = vmatpush1.bf16.msra.mxu1 %v6339_v42  ;;  %v6331_v42 = vld [vmem:[%s7304_s4 + $0x110] ss:$12 sps:$4 sm:$0xff]  }
 0x2b4   :  { %v7046_v34 = vadd.f32 %v3144_v59, %v3104_v29  ;;  %v7048_v22 = vpop.f32.mrf.mxu1  ;;  %4354 = vmatprep.subr.bf16.mxu1 %v6345_v25  ;;  %4384 = vmatprep.mubr.bf16.mxu1 %v6615_v10  ;;  %v3106_v41 = vadd.f32 %v7041_v31, %v3065_v46  ;;  %v6333_v25 = vld [vmem:[%s7304_s4 + $0xf8] ss:$12 sps:$4 sm:$0xff]   ;;  %v6370_v46 = vld [vmem:[%s7304_s4 + $0x308] ss:$12 sps:$4 sm:$0xff]  }
 0x2b5   :  { %v3107_v32 = vpop.f32.mrf.mxu0 }
 0x2b6   :  { %v3148_v35 = vpop.f32.mrf.mxu1  ;;  %4330 = vmatpush2.bf16.msra.mxu0 %v6302_v30  ;;  %v3147_v2 = vadd.f32 %v7048_v22, %v3106_v41 }
 0x2b7   :  { %v3108_v36 = vpop.f32.mrf.mxu0  ;;  %4331 = vmatprep.subr.bf16.mxu0 %v6307_v33  ;;  %4355 = vmatpush1.bf16.msra.mxu1 %v6343_v45  ;;  %v6325_v35 = vld [vmem:[%s7304_s4 + $0x158] ss:$12 sps:$4 sm:$0xff]  }
 0x2b8   :  { %v3149_v37 = vpop.f32.mrf.mxu1  ;;  %4356 = vmatprep.subr.bf16.mxu1 %v6349_v47  ;;  %v6327_v36 = vld [vmem:[%s7304_s4 + $0x140] ss:$12 sps:$4 sm:$0xff]  }
 0x2b9   :  { %v6329_v37 = vld [vmem:[%s7304_s4 + $0x128] ss:$12 sps:$4 sm:$0xff]  }
 0x2ba   :  { %4332 = vmatpush2.bf16.msra.mxu0 %v6305_v51  ;;  %v6326_v51 = vld [vmem:[%s7304_s4 + $0x98] ss:$12 sps:$4 sm:$0xff]  }
 0x2bb   :  { %4333 = vmatprep.subr.bf16.mxu0 %v6310_v24  ;;  %4357 = vmatpush1.bf16.msra.mxu1 %v6347_v15  ;;  %v6328_v24 = vld [vmem:[%s7304_s4 + $0x80] ss:$12 sps:$4 sm:$0xff]  }
 0x2bc   :  { %4358 = vmatprep.subr.bf16.mxu1 %v6353_v54  ;;  %v6337_v54 = vld [vmem:[%s7304_s4 + $0xc8] ss:$12 sps:$4 sm:$0xff]  }
 0x2be   :  { %4334 = vmatpush2.bf16.msra.mxu0 %v6308_v38  ;;  %v6334_v38 = vld [vmem:[%s7304_s4 + $0x38] ss:$12 sps:$4 sm:$0xff]  }
 0x2bf   :  { %4335 = vmatprep.subr.bf16.mxu0 %v6313_v43  ;;  %4359 = vmatpush1.bf16.msra.mxu1 %v6351_v20  ;;  %v6335_v43 = vld [vmem:[%s7304_s4 + $0xe0] ss:$12 sps:$4 sm:$0xff]  }
 0x2c0   :  { %4360 = vmatprep.subr.bf16.mxu1 %v6357_v23  ;;  %v6338_v23 = vld [vmem:[%s7304_s4 + $0x8] ss:$12 sps:$4 sm:$0xff]  }
 0x2c2   :  { %4336 = vmatpush2.bf16.msra.mxu0 %v6311_v48 }
 0x2c3   :  { %4337 = vmatprep.subr.bf16.mxu0 %v6316_v53  ;;  %4361 = vmatpush1.bf16.msra.mxu1 %v6355_v60  ;;  %v6336_v53 = vld [vmem:[%s7304_s4 + $0x20] ss:$12 sps:$4 sm:$0xff]   ;;  %v6616_v60 = vmov 0.0  }
 0x2c4   :  { %4362 = vmatprep.subr.bf16.mxu1 %v6361_v62  ;;  %v6346_v62 = vld [vmem:[%s7304_s4 + $0x398] ss:$12 sps:$4 sm:$0xff]  }
 0x2c6   :  { %4338 = vmatpush2.bf16.msra.mxu0 %v6314_v55 }
 0x2c7   :  { %4339 = vmatprep.subr.bf16.mxu0 %v6319_v49  ;;  %4363 = vmatpush1.bf16.msra.mxu1 %v6359_v0  ;;  %v6362_v0 = vld [vmem:[%s7304_s4 + $0x338] ss:$12 sps:$4 sm:$0xff]  }
 0x2c8   :  { %4364 = vmatprep.subr.bf16.mxu1 %v6365_v1 }
 0x2ca   :  { %4340 = vmatpush2.bf16.msra.mxu0 %v6317_v57 }
 0x2cb   :  { %4341 = vmatprep.subr.bf16.mxu0 %v6322_v58  ;;  %4365 = vmatpush1.bf16.msra.mxu1 %v6363_v6  ;;  %v6342_v58 = vld [vmem:[%s7304_s4 + $0x3b0] ss:$12 sps:$4 sm:$0xff]  }
 0x2cc   :  { %4366 = vmatprep.subr.bf16.mxu1 %v6369_v3 }
 0x2ce   :  { %4342 = vmatpush2.bf16.msra.mxu0 %v6320_v17  ;;  %v6350_v17 = vld [vmem:[%s7304_s4 + $0x380] ss:$12 sps:$4 sm:$0xff]  }
 0x2cf   :  { %5528 = vmatprep.subr.bf16.mxu0 %v6323_v63  ;;  %4367 = vmatpush1.bf16.msra.mxu1 %v6367_v7  ;;  %v6358_v63 = vld [vmem:[%s7304_s4 + $0x350] ss:$12 sps:$4 sm:$0xff]   ;;  %v6366_v7 = vld [vmem:[%s7304_s4 + $0x320] ss:$12 sps:$4 sm:$0xff]  }
 0x2d0   :  { %5550 = vmatprep.subr.bf16.mxu1 %v6371_v9 }
 0x2f1   :  { %v3185_v50 = vpop.f32.mrf.mxu0 }
 0x2f2   :  { %v3186_v14 = vadd.f32 %v3185_v50, %v7046_v34  ;;  %v3226_v5 = vpop.f32.mrf.mxu1  ;;  %v6324_v34 = vld [vmem:[%s7304_s4 + $0xb0] ss:$12 sps:$4 sm:$0xff]   ;;  %v736_v50 = vsub.s32 4, %v6824_v52 }
 0x2f3   :  { %v3187_v8 = vpop.f32.mrf.mxu0 }
 0x2f4   :  { %v3227_v16 = vadd.f32 %v3226_v5, %v3186_v14  ;;  %v3188_v4 = vadd.f32 %v3187_v8, %v3147_v2  ;;  %v3228_v18 = vpop.f32.mrf.mxu1  ;;  %v737_v2 = vrot.slane %v7138_v39, %v736_v50  ;;  %v6372_v39 = vld [vmem:[%s7304_s4 + $0x230] ss:$12 sps:$4 sm:$0xff]   ;;  %v3613_v50 = vld [vmem:[#allocation10] sm:$0x7] }
 0x2f5   :  { %v3189_v44 = vpop.f32.mrf.mxu0 }
 0x2f6   :  { %vm3435_vm2 = vcmp.gt.f32.partialorder %v3227_v16, 0.0  ;;  %v3440_v27 = vmul.f32 0.01, %v3227_v16  ;;  %v3229_v28 = vadd.f32 %v3228_v18, %v3188_v4  ;;  %v3230_v29 = vpop.f32.mrf.mxu1 }
 0x2f7   :  { %v3190_v59 = vpop.f32.mrf.mxu0 }
 0x2f8   :  { %vm3436_vm3 = vcmp.gt.f32.partialorder %v3229_v28, 0.0  ;;  %v3441_v12 = vmul.f32 0.01, %v3229_v28  ;;  %v3231_v30 = vpop.f32.mrf.mxu1  ;;  %v3445_v31 = vsel %vm3435_vm2, %v3227_v16, %v3440_v27 }
 0x2f9   :  { %v7150_v22 = vpack.c.bf16 %v3445_v31, %v3445_v31 }
 0x2fa   :  { %v3446_v33 = vsel %vm3436_vm3, %v3229_v28, %v3441_v12 }
 0x2fb   :  { %v7145_v32 = vpack.c.bf16 %v3446_v33, %v3446_v33 }
 0x2fd   :  { %4343 = vmatprep.mubr.bf16.mxu0 %v7145_v32 }
 0x2fe   :  { %4344 = vmatmul.mubr.bf16.vlgmr.msra.gmra.mxu0 %v7150_v22 }
 0x2ff   :  { %5529 = vmatpush3.bf16.msra.mxu0 %v6324_v34  ;;  %4425 = vmatprep.mubr.bf16.mxu0 %v6892_v19  ;;  %v6330_v19 = vld [vmem:[%s7304_s4 + $0x68] ss:$12 sps:$4 sm:$0xff]  }
 0x300   :  { %5530 = vmatprep.subr.bf16.mxu0 %v6325_v35 }
 0x303   :  { %5531 = vmatpush3.bf16.msra.mxu0 %v6326_v51  ;;  %v6373_v51 = vld [vmem:[%s7304_s4 + $0x2d8] ss:$12 sps:$4 sm:$0xff]  }
 0x304   :  { %5532 = vmatprep.subr.bf16.mxu0 %v6327_v36  ;;  %v6374_v36 = vld [vmem:[%s7304_s4 + $0x218] ss:$12 sps:$4 sm:$0xff]  }
 0x307   :  { %5533 = vmatpush3.bf16.msra.mxu0 %v6328_v24  ;;  %v6375_v24 = vld [vmem:[%s7304_s4 + $0x2c0] ss:$12 sps:$4 sm:$0xff]  }
 0x308   :  { %5534 = vmatprep.subr.bf16.mxu0 %v6329_v37  ;;  %v6376_v37 = vld [vmem:[%s7304_s4 + $0x200] ss:$12 sps:$4 sm:$0xff]  }
 0x30b   :  { %5535 = vmatpush3.bf16.msra.mxu0 %v6330_v19  ;;  %v6378_v19 = vld [vmem:[%s7304_s4 + $0x1e8] ss:$12 sps:$4 sm:$0xff]  }
 0x30c   :  { %5536 = vmatprep.subr.bf16.mxu0 %v6331_v42  ;;  %v6379_v42 = vld [vmem:[%s7304_s4 + $0x290] ss:$12 sps:$4 sm:$0xff]  }
 0x30f   :  { %5537 = vmatpush3.bf16.msra.mxu0 %v6332_v26  ;;  %v6380_v26 = vld [vmem:[%s7304_s4 + $0x1d0] ss:$12 sps:$4 sm:$0xff]  }
 0x310   :  { %5538 = vmatprep.subr.bf16.mxu0 %v6333_v25  ;;  %v6381_v25 = vld [vmem:[%s7304_s4 + $0x278] ss:$12 sps:$4 sm:$0xff]  }
 0x311   :  { %v5434_v45 = vpop.f32.mrf.mxu0 }
 0x312   :  { %v5456_v47 = vpop.f32.mrf.mxu1 }
 0x313   :  { %5539 = vmatpush3.bf16.msra.mxu0 %v6334_v38  ;;  %v5435_v48 = vpop.f32.mrf.mxu0  ;;  %v6382_v38 = vld [vmem:[%s7304_s4 + $0x1b8] ss:$12 sps:$4 sm:$0xff]  }
 0x314   :  { %v5457_v15 = vpop.f32.mrf.mxu1  ;;  %5540 = vmatprep.subr.bf16.mxu0 %v6335_v43  ;;  %v5436_v14 = vadd.f32 %v5435_v48, %v5434_v45  ;;  %v6383_v43 = vld [vmem:[%s7304_s4 + $0x260] ss:$12 sps:$4 sm:$0xff]   ;;  %v6385_v48 = vld [vmem:[%s7304_s4 + $0x248] ss:$12 sps:$4 sm:$0xff]  }
 0x315   :  { %v5437_v55 = vpop.f32.mrf.mxu0  ;;  %v5458_v8 = vadd.f32 %v5457_v15, %v5456_v47  ;;  %v6384_v47 = vld [vmem:[%s7304_s4 + $0x1a0] ss:$12 sps:$4 sm:$0xff]  }
 0x316   :  { %v5459_v49 = vpop.f32.mrf.mxu1  ;;  %v3268_v5 = vadd.f32 %v5436_v14, %v737_v2  ;;  %v3618_v2 = vrot.slane %v3613_v50, %v720_v56  ;;  %v3622_v14 = vrot.slane %v3613_v50, %v724_v61  ;;  %v6408_v56 = vld [vmem:[#allocation11 + $0x80] sm:$0xff]  }
 0x317   :  { %5541 = vmatpush3.bf16.msra.mxu0 %v6336_v53  ;;  %v5438_v20 = vpop.f32.mrf.mxu0  ;;  %v6387_v49 = vld [vmem:[#allocation13 + $0x8] sm:$0xff]  }
 0x318   :  { %v5460_v57 = vpop.f32.mrf.mxu1  ;;  %5542 = vmatprep.subr.bf16.mxu0 %v6337_v54  ;;  %v3308_v4 = vadd.f32 %v5458_v8, %v3268_v5  ;;  %v6386_v54 = vld [vmem:[%s7304_s4 + $0x188] ss:$12 sps:$4 sm:$0xff]   ;;  %v6388_v20 = vld [vmem:[#allocation13] sm:$0xff]  }
 0x319   :  { %v6389_v57 = vld [vmem:[#allocation11 + $0x78] sm:$0xff]  }
 0x31b   :  { %5543 = vmatpush3.bf16.msra.mxu0 %v6338_v23  ;;  %v4565_v23 = vld [vmem:[#allocation5] sm:$0xff] }
 0x31c   :  { %5611 = vmatprep.subr.bf16.mxu0 %v6616_v60 }
 0x31e   :  { %4426 = vmatmul.mubr.bf16.vlgmr.msra.gmra.mxu0 %v7034_v21  ;;  %v6354_v21 = vld [vmem:[%s7304_s4 + $0x368] ss:$12 sps:$4 sm:$0xff]  }
 0x31f   :  { %5612 = vmatpush3.bf16.msra.mxu0 %v6342_v58  ;;  %5627 = vmatprep.mubr.msk.bf16.mxu0 %vm6617_vm4, %v6616_v60  ;;  %v4566_v58 = vpack.c.bf16 %v4565_v23, %v4565_v23 }
 0x320   :  { %5613 = vmatprep.subr.bf16.mxu0 %v6616_v60 }
 0x323   :  { %5614 = vmatpush3.bf16.msra.mxu0 %v6346_v62  ;;  %v6390_v62 = vld [vmem:[#allocation11 + $0x38] sm:$0xff]  }
 0x324   :  { %5615 = vmatprep.subr.bf16.mxu0 %v6616_v60 }
 0x327   :  { %5616 = vmatpush3.bf16.msra.mxu0 %v6350_v17  ;;  %v6391_v17 = vld [vmem:[#allocation11 + $0x70] sm:$0xff]  }
 0x328   :  { %5617 = vmatprep.subr.bf16.mxu0 %v6616_v60 }
 0x32b   :  { %5618 = vmatpush3.bf16.msra.mxu0 %v6354_v21  ;;  %v6392_v21 = vld [vmem:[#allocation11 + $0x30] sm:$0xff]  }
 0x32c   :  { %5619 = vmatprep.subr.bf16.mxu0 %v6616_v60 }
 0x32f   :  { %5620 = vmatpush3.bf16.msra.mxu0 %v6358_v63  ;;  %v6394_v63 = vld [vmem:[#allocation11 + $0x28] sm:$0xff]  }
 0x330   :  { %5621 = vmatprep.subr.bf16.mxu0 %v6616_v60 }
 0x331   :  { %v5478_v1 = vpop.f32.mrf.mxu0 }
 0x332   :  { %v5500_v6 = vpop.f32.mrf.mxu1 }
 0x333   :  { %v5479_v3 = vpop.f32.mrf.mxu0  ;;  %5622 = vmatpush3.bf16.msra.mxu0 %v6362_v0  ;;  %v6395_v0 = vld [vmem:[#allocation11 + $0x60] sm:$0xff]  }
 0x334   :  { %v5501_v9 = vpop.f32.mrf.mxu1  ;;  %5623 = vmatprep.subr.bf16.mxu0 %v6616_v60  ;;  %v5480_v16 = vadd.f32 %v5479_v3, %v5478_v1  ;;  %v6396_v1 = vld [vmem:[#allocation11 + $0x20] sm:$0xff]   ;;  %v6398_v3 = vld [vmem:[#allocation11 + $0x18] sm:$0xff]  }
 0x335   :  { %v5481_v10 = vpop.f32.mrf.mxu0  ;;  %v5502_v27 = vadd.f32 %v5501_v9, %v5500_v6  ;;  %v6397_v6 = vld [vmem:[#allocation11 + $0x58] sm:$0xff]   ;;  %v6400_v9 = vld [vmem:[#allocation11 + $0x10] sm:$0xff]  }
 0x336   :  { %v5503_v11 = vpop.f32.mrf.mxu1  ;;  %v3348_v18 = vadd.f32 %v5480_v16, %v3308_v4  ;;  %v6401_v10 = vld [vmem:[#allocation11 + $0x48] sm:$0xff]  }
 0x337   :  { %v5482_v40 = vpop.f32.mrf.mxu0  ;;  %5624 = vmatpush3.bf16.msra.mxu0 %v6366_v7  ;;  %v6399_v7 = vld [vmem:[#allocation11 + $0x50] sm:$0xff]   ;;  %v6402_v11 = vld [vmem:[#allocation11 + $0x8] sm:$0xff]  }
 0x338   :  { %v5504_v41 = vpop.f32.mrf.mxu1  ;;  %5625 = vmatprep.subr.bf16.mxu0 %v6616_v60  ;;  %v3388_v29 = vadd.f32 %v5502_v27, %v3348_v18  ;;  %v6403_v40 = vld [vmem:[#allocation11 + $0x40] sm:$0xff]  }
 0x339   :  { %v6405_v41 = vld [vmem:[#allocation11 + $0x98] sm:$0xff]  }
 0x33b   :  { %5626 = vmatpush3.bf16.msra.mxu0 %v6370_v46  ;;  %v6404_v46 = vld [vmem:[#allocation11] sm:$0xff]  }
 0x33c   :  { %5639 = vmatprep.subr.bf16.mxu0 %v6616_v60 }
 0x351   :  { %v5522_v44 = vpop.f32.mrf.mxu0 }
 0x353   :  { %v5523_v28 = vpop.f32.mrf.mxu0 }
 0x354   :  { %v5524_v59 = vadd.f32 %v5523_v28, %v5522_v44  ;;  %v6406_v44 = vld [vmem:[#allocation11 + $0x90] sm:$0xff]  }
 0x355   :  { %v5525_v12 = vpop.f32.mrf.mxu0 }
 0x356   :  { %v3428_v30 = vadd.f32 %v5524_v59, %v3388_v29  ;;  %v6407_v59 = vld [vmem:[#allocation11 + $0x88] sm:$0xff]  }
 0x357   :  { %v5526_v31 = vpop.f32.mrf.mxu0 }
 0x358   :  { %vm3437_vm5 = vcmp.gt.f32.partialorder %v3428_v30, 0.0  ;;  %v3442_v33 = vmul.f32 0.01, %v3428_v30 }
 0x35a   :  { %v3447_v34 = vsel %vm3437_vm5, %v3428_v30, %v3442_v33 }
 0x35b   :  { %v3452_v35 = vpack.c.bf16 %v3447_v34, %v3447_v34 }
 0x35d   :  { %4385 = vmatmul.mubr.bf16.vlgmr.msra.gmra.mxu1 %v3452_v35  ;;  %5628 = vmatmul.mubr.bf16.vlgmr.msra.gmra.mxu0 %v3452_v35 }
 0x35e   :  { %5551 = vmatpush3.bf16.msra.mxu1 %v6372_v39  ;;  %4465 = vmatprep.mubr.bf16.mxu1 %v7145_v32  ;;  %v6377_v32 = vld [vmem:[%s7304_s4 + $0x2a8] ss:$12 sps:$4 sm:$0xff]  }
 0x35f   :  { %5552 = vmatprep.subr.bf16.mxu1 %v6373_v51  ;;  %5647 = vmatprep.mubr.msk.bf16.mxu0 %vm6617_vm4, %v6616_v60 }
 0x360   :  { %5640 = vmatpush3.bf16.msra.mxu0 %v6405_v41 }
 0x361   :  { %5641 = vmatprep.subr.bf16.mxu0 %v6616_v60 }
 0x362   :  { %5553 = vmatpush3.bf16.msra.mxu1 %v6374_v36 }
 0x363   :  { %5554 = vmatprep.subr.bf16.mxu1 %v6375_v24 }
 0x364   :  { %5642 = vmatpush3.bf16.msra.mxu0 %v6406_v44 }
 0x365   :  { %5643 = vmatprep.subr.bf16.mxu0 %v6616_v60 }
 0x366   :  { %5555 = vmatpush3.bf16.msra.mxu1 %v6376_v37 }
 0x367   :  { %5556 = vmatprep.subr.bf16.mxu1 %v6377_v32 }
 0x368   :  { %5644 = vmatpush3.bf16.msra.mxu0 %v6407_v59 }
 0x369   :  { %5645 = vmatprep.subr.bf16.mxu0 %v6616_v60 }
 0x36a   :  { %5557 = vmatpush3.bf16.msra.mxu1 %v6378_v19 }
 0x36b   :  { %5558 = vmatprep.subr.bf16.mxu1 %v6379_v42 }
 0x36c   :  { %5646 = vmatpush3.bf16.msra.mxu0 %v6408_v56 }
 0x36e   :  { %5559 = vmatpush3.bf16.msra.mxu1 %v6380_v26 }
 0x36f   :  { %5560 = vmatprep.subr.bf16.mxu1 %v6381_v25 }
 0x372   :  { %v4304_v45 = vpop.f32.mrf.mxu1  ;;  %5561 = vmatpush3.bf16.msra.mxu1 %v6382_v38 }
 0x373   :  { %5562 = vmatprep.subr.bf16.mxu1 %v6383_v43  ;;  %v4305_v5 = vadd.f32 %v4304_v45, %v3618_v2 }
 0x374   :  { %v4306_v53 = vpop.f32.mrf.mxu1 }
 0x375   :  { %v4307_v16 = vadd.f32 %v4306_v53, %v3622_v14 }
 0x376   :  { %v4308_v15 = vpop.f32.mrf.mxu1  ;;  %5563 = vmatpush3.bf16.msra.mxu1 %v6384_v47  ;;  %v3626_v47 = vrot.slane %v3613_v50, %v728_v13  ;;  %v5416_v50 = vld [vmem:[#allocation16] ss:$0 sm:$0xff] }
 0x377   :  { %5564 = vmatprep.subr.bf16.mxu1 %v6385_v48 }
 0x378   :  { %v4309_v55 = vpop.f32.mrf.mxu1 }
 0x37a   :  { %5565 = vmatpush3.bf16.msra.mxu1 %v6386_v54 }
 0x37b   :  { %5631 = vmatprep.subr.bf16.mxu1 %v6616_v60 }
 0x37d   :  { %4466 = vmatmul.mubr.bf16.vlgmr.msra.gmra.mxu1 %v7150_v22  ;;  %v6393_v22 = vld [vmem:[#allocation11 + $0x68] sm:$0xff]  }
 0x37e   :  { %5632 = vmatpush3.bf16.msra.mxu1 %v6387_v49  ;;  %5635 = vmatprep.mubr.msk.bf16.mxu1 %vm6617_vm4, %v6616_v60 }
 0x37f   :  { %5633 = vmatprep.subr.bf16.mxu1 %v6616_v60 }
 0x382   :  { %5634 = vmatpush3.bf16.msra.mxu1 %v6388_v20 }
 0x383   :  { %5584 = vmatprep.subr.bf16.mxu1 %v6389_v57 }
 0x385   :  { %5636 = vmatmul.mubr.msk.bf16.vlgmr.msra.gmra.mxu1 %vm4583_vm6, %v4566_v58 }
 0x386   :  { %5585 = vmatpush3.bf16.msra.mxu1 %v6390_v62 }
 0x387   :  { %5586 = vmatprep.subr.bf16.mxu1 %v6391_v17 }
 0x38a   :  { %5587 = vmatpush3.bf16.msra.mxu1 %v6392_v21 }
 0x38b   :  { %5588 = vmatprep.subr.bf16.mxu1 %v6393_v22 }
 0x38e   :  { %5589 = vmatpush3.bf16.msra.mxu1 %v6394_v63 }
 0x38f   :  { %5590 = vmatprep.subr.bf16.mxu1 %v6395_v0 }
 0x392   :  { %5591 = vmatpush3.bf16.msra.mxu1 %v6396_v1 }
 0x393   :  { %5592 = vmatprep.subr.bf16.mxu1 %v6397_v6 }
 0x396   :  { %5593 = vmatpush3.bf16.msra.mxu1 %v6398_v3 }
 0x397   :  { %5594 = vmatprep.subr.bf16.mxu1 %v6399_v7 }
 0x39a   :  { %5595 = vmatpush3.bf16.msra.mxu1 %v6400_v9  ;;  %v5415_v9 = vld [vmem:[#allocation14] ss:$0 sm:$0xff] }
 0x39b   :  { %5596 = vmatprep.subr.bf16.mxu1 %v6401_v10 }
 0x39e   :  { %5597 = vmatpush3.bf16.msra.mxu1 %v6402_v11 }
 0x39f   :  { %5598 = vmatprep.subr.bf16.mxu1 %v6403_v40 }
 0x3a2   :  { %5599 = vmatpush3.bf16.msra.mxu1 %v6404_v46 }
 0x3be   :  { %v4345_v8 = vpop.f32.mrf.mxu0 }
 0x3bf   :  { %v4346_v4 = vadd.f32 %v4345_v8, %v4305_v5  ;;  %v5417_v8 = vld [vmem:[#allocation2] ss:$0 sm:$0xff] }
 0x3c0   :  { %v4347_v18 = vpop.f32.mrf.mxu0 }
 0x3c1   :  { %v4348_v27 = vadd.f32 %v4347_v18, %v4307_v16 }
 0x3c2   :  { %v4349_v28 = vpop.f32.mrf.mxu0 }
 0x3c4   :  { %v4350_v29 = vpop.f32.mrf.mxu0 }
 0x3de   :  { %v5544_v12 = vpop.f32.mrf.mxu0 }
 0x3e0   :  { %v5545_v61 = vpop.f32.mrf.mxu0 }
 0x3e1   :  { %v5546_v30 = vadd.f32 %v5545_v61, %v5544_v12 }
 0x3e2   :  { %v5547_v31 = vpop.f32.mrf.mxu0 }
 0x3e3   :  { %v4428_v15 = vadd.f32 %v5546_v30, %v3626_v47 }
 0x3e4   :  { %v5548_v33 = vpop.f32.mrf.mxu0 }
 0x41d   :  { %v4386_v34 = vpop.f32.mrf.mxu1  ;;  %v4507_v39 = vpop.f32.mrf.mxu0 }
 0x41e   :  { %v4387_v35 = vadd.f32 %v4386_v34, %v4346_v4 }
 0x41f   :  { %v4388_v51 = vpop.f32.mrf.mxu1  ;;  %v5629_v36 = vpop.f32.mrf.mxu0 }
 0x420   :  { %vm4513_vm7 = vcmp.gt.f32.partialorder %v4387_v35, 0.0  ;;  %v4516_v24 = vmul.f32 0.01, %v4387_v35  ;;  %v4389_v37 = vadd.f32 %v4388_v51, %v4348_v27 }
 0x421   :  { %v4390_v32 = vpop.f32.mrf.mxu1  ;;  %v4510_v19 = vpop.f32.mrf.mxu0 }
 0x422   :  { %vm4514_vm8 = vcmp.gt.f32.partialorder %v4389_v37, 0.0  ;;  %v4517_v42 = vmul.f32 0.01, %v4389_v37  ;;  %v4519_v60 = vsel %vm4513_vm7, %v4387_v35, %v4516_v24 }
 0x423   :  { %v4391_v26 = vpop.f32.mrf.mxu1  ;;  %v5630_v25 = vpop.f32.mrf.mxu0  ;;  %v4522_v45 = vpack.c.bf16 %v4519_v60, %v4519_v60 }
 0x424   :  { %v4520_v38 = vsel %vm4514_vm8, %v4389_v37, %v4517_v42 }
 0x425   :  { %v4523_v43 = vpack.c.bf16 %v4520_v38, %v4520_v38 }
 0x427   :  { %4783 = vmatprep.mubr.bf16.mxu1 %v4523_v43 }
 0x428   :  { %4784 = vmatmul.mubr.bf16.vlgmr.msra.gmra.mxu1 %v4522_v45 }
 0x43d   :  { %v5566_v48 = vpop.f32.mrf.mxu1 }
 0x43f   :  { %v5567_v53 = vpop.f32.mrf.mxu1 }
 0x440   :  { %v5568_v54 = vadd.f32 %v5567_v53, %v5566_v48 }
 0x441   :  { %v5569_v55 = vpop.f32.mrf.mxu1 }
 0x442   :  { %v4468_v49 = vadd.f32 %v5568_v54, %v4428_v15 }
 0x443   :  { %v5570_v20 = vpop.f32.mrf.mxu1 }
 0x444   :  { %v4508_v23 = vadd.f32 %v4507_v39, %v4468_v49 }
 0x445   :  { %v4621_v57 = vpop.f32.mrf.mxu1 }
 0x446   :  { %vm4515_vm9 = vcmp.gt.f32.partialorder %v4508_v23, 0.0  ;;  %v4518_v58 = vmul.f32 0.01, %v4508_v23 }
 0x447   :  { %v5637_v62 = vpop.f32.mrf.mxu1 }
 0x448   :  { %v4521_v17 = vsel %vm4515_vm9, %v4508_v23, %v4518_v58 }
 0x449   :  { %v4524_v21 = vpack.c.bf16 %v4521_v17, %v4521_v17  ;;  %v4624_v22 = vpop.f32.mrf.mxu1 }
 0x44b   :  { %5648 = vmatmul.mubr.msk.bf16.vlgmr.msra.gmra.mxu0 %vm4747_vm10, %v4524_v21  ;;  %v5638_v63 = vpop.f32.mrf.mxu1 }
 0x4e8   :  { %v5600_v52 = vpop.f32.mrf.mxu1 }
 0x4ea   :  { %v5601_v13 = vpop.f32.mrf.mxu1 }
 0x4eb   :  { %v5602_v6 = vadd.f32 %v5601_v13, %v5600_v52 }
 0x4ec   :  { %v5603_v0 = vpop.f32.mrf.mxu1 }
 0x4ed   :  { %v4786_v3 = vadd.f32 %v5602_v6, %v4621_v57 }
 0x4ee   :  { %v5604_v1 = vpop.f32.mrf.mxu1 }
 0x50b   :  { %v4825_v7 = vpop.f32.mrf.mxu0 }
 0x50c   :  { %v4826_v10 = vadd.f32 %v4825_v7, %v4786_v3 }
 0x50d   :  { %v5649_v11 = vpop.f32.mrf.mxu0 }
 0x50e   :  { %v4838_v40 = vadd.f32 %v5415_v9, %v4826_v10 }
 0x50f   :  { %v4828_v46 = vpop.f32.mrf.mxu0 }
 0x510   :  { %vm4839_vm11 = vcmp.gt.f32.partialorder %v4838_v40, 0.0  ;;  %v4840_v41 = vmul.f32 0.01, %v4838_v40 }
 0x511   :  { %v5650_v2 = vpop.f32.mrf.mxu0 }
 0x512   :  { %v4841_v14 = vsel %vm4839_vm11, %v4838_v40, %v4840_v41 }
 0x513   :  { %v4849_v5 = vmul.f32 %v5416_v50, %v4841_v14 }
 0x515   :  { %4850 = vadd.xlane.f32.xlu1 %v4849_v5 }
 0x59e   :  { %v4851_v16 = vpop.xlane.xlu1 %4850 }
 0x59f   :  { %v4859_v4 = vadd.f32 %v5417_v8, %v4851_v16 }
 0x5a1   :  { %4861 = vst.msk [vmem:[%s7311_s11] sm:$0xff] %vm4860_vm12, %v4859_v4 }
 0x5a2   :  { %4866 = vsyncpa [#allocation4], 1 }
 0x5a3   :  { %4867 = vsyncpa [#allocation6], 1 }
 0x5a4   :  { %4868 = vsyncpa [#allocation9], 1 }
 0x5a5   :  { %4869 = vsyncpa [#allocation12], 1 }
 0x5a6   :  { %4870 = vsyncpa [#allocation15], 1 }

</bundles_post_ra>
